<compile_context>
chip_gen: v5e
topology: v5e:2x2
jax: 0.10.0
libtpu: 0.0.40
codegen_flags: <defaults>
</compile_context>

<pallas_src>
import functools

import jax
import jax.numpy as jnp
from jax.experimental import pallas as pl
from jax.experimental.pallas import tpu as pltpu


def _round_up(x, m):
    return (x + m - 1) // m * m


def _pad2d(m, rows, cols):
    return jnp.pad(m, ((0, rows - m.shape[0]), (0, cols - m.shape[1])))


def _vmem_limit_bytes():
    """~70% of physical VMEM (generation-aware), with a conservative fallback."""
    try:
        cap = pltpu.get_tpu_info().vmem_capacity_bytes
        return int(min(cap * 0.7, 96 * 1024 * 1024))
    except Exception:
        return 48 * 1024 * 1024


def _pick_tile(n, want, mult):
    """Largest tile <= want that divides n and is a multiple of mult (or n itself)."""
    want = min(want, n)
    if want == n:
        return n
    for t in range(want, 0, -1):
        if n % t == 0 and t % mult == 0:
            return t
    return n


# ---------------------------------------------------------------------------
# Kernels
# ---------------------------------------------------------------------------

def _fused_kernel(a_ref, x_ref, w1_ref, b1_ref, w2_ref, b2_ref, out_ref):
    # Small-N path: everything resident in VMEM, single invocation.
    f32, bf16 = jnp.float32, jnp.bfloat16
    xw1 = jnp.dot(x_ref[...], w1_ref[...], preferred_element_type=f32).astype(bf16)
    h = jnp.maximum(jnp.dot(a_ref[...], xw1, preferred_element_type=f32)
                    + b1_ref[...], 0.0)                                   # f32
    hw2 = jnp.dot(h.astype(bf16), w2_ref[...], preferred_element_type=f32).astype(bf16)
    out_ref[...] = jnp.dot(a_ref[...], hw2, preferred_element_type=f32) + b2_ref[...]


def _layer1_kernel(a_ref, x_ref, w1_ref, b1_ref, w2_ref, hw2_ref, acc_ref):
    # HW2_rows = relu(A_rows @ (X @ W1) + b1) @ W2, K-tiled over A_hat columns.
    # xw1 for the current column block is recomputed in-kernel (tiny GEMM,
    # F=16 lanes streamed instead of a 128-lane XW1 intermediate).
    k = pl.program_id(1)

    @pl.when(k == 0)
    def _():
        acc_ref[...] = jnp.zeros_like(acc_ref)

    xw1_blk = jnp.dot(x_ref[...], w1_ref[...],
                      preferred_element_type=jnp.float32).astype(jnp.bfloat16)
    acc_ref[...] += jnp.dot(a_ref[...], xw1_blk,
                            preferred_element_type=jnp.float32)

    @pl.when(k == pl.num_programs(1) - 1)
    def _():
        h = jnp.maximum(acc_ref[...] + b1_ref[...], 0.0)          # f32 epilogue
        hw2_ref[...] = jnp.dot(h.astype(w2_ref.dtype), w2_ref[...],
                               preferred_element_type=jnp.float32
                               ).astype(hw2_ref.dtype)


def _layer2_kernel(a_ref, hw2_ref, b2_ref, out_ref, acc_ref, *,
                   col_tile, hw2_resident):
    # out_rows = A_rows @ HW2 + b2, K-tiled over A_hat columns.
    # HW2 is VMEM-resident (constant index map) and sliced per K step when it
    # fits; otherwise it arrives pre-sliced via its BlockSpec.
    k = pl.program_id(1)

    @pl.when(k == 0)
    def _():
        acc_ref[...] = jnp.zeros_like(acc_ref)

    if hw2_resident:
        start = pl.multiple_of(k * col_tile, col_tile)
        hw2_blk = hw2_ref[pl.ds(start, col_tile), :]
    else:
        hw2_blk = hw2_ref[...]

    acc_ref[...] += jnp.dot(a_ref[...], hw2_blk,
                            preferred_element_type=jnp.float32)

    @pl.when(k == pl.num_programs(1) - 1)
    def _():
        out_ref[...] = acc_ref[...] + b2_ref[...]


# ---------------------------------------------------------------------------
# Forward wrapper
# ---------------------------------------------------------------------------

def gae_conv_forward(a_hat, x, w1, b1, w2, b2, *,
                     row_tile=512, col_tile=512, force_tiled=False):
    """out = A_hat @ (relu(A_hat @ (X @ W1) + b1) @ W2) + b2."""
    N, F = x.shape
    H = w1.shape[1]
    D = w2.shape[1]
    H_pad = _round_up(H, 128)
    D_pad = _round_up(D, 128)

    f32, bf16 = jnp.float32, jnp.bfloat16
    vmem_limit = _vmem_limit_bytes()

    # bf16 matmul operands (f32 accumulation inside kernels), lane-dense padding.
    a_bf = a_hat.astype(bf16)
    x_bf = x.astype(bf16)
    w1_p = _pad2d(w1, F, H_pad).astype(bf16)
    w2_p = _pad2d(w2, H_pad, D_pad).astype(bf16)
    b1_p = jnp.pad(b1.astype(f32), (0, H_pad - H)).reshape(1, H_pad)
    b2_p = jnp.pad(b2.astype(f32), (0, D_pad - D)).reshape(1, D_pad)

    # --- small-N fully fused path (A + intermediates resident in VMEM) -------
    fused_vmem = (2 * N * N * 2                       # A (allow double buffer)
                  + 2 * N * F * 2                     # X
                  + 4 * N * H_pad * 4                 # xw1 / h temporaries
                  + 4 * N * D_pad * 4                 # hw2 / out
                  + F * H_pad * 2 + H_pad * D_pad * 2 + (H_pad + D_pad) * 4)
    if (not force_tiled) and fused_vmem <= vmem_limit // 2:
        out_pad = pl.pallas_call(
            _fused_kernel,
            out_shape=jax.ShapeDtypeStruct((N, D_pad), f32),
            compiler_params=pltpu.CompilerParams(vmem_limit_bytes=vmem_limit),
            cost_estimate=pl.CostEstimate(
                flops=2 * N * F * H_pad + 2 * N * N * H_pad
                      + 2 * N * H_pad * D_pad + 2 * N * N * D_pad,
                transcendentals=0,
                bytes_accessed=N * N * 2 + N * F * 2 + F * H_pad * 2
                               + H_pad * D_pad * 2 + (H_pad + D_pad) * 4
                               + N * D_pad * 4,
            ),
        )(a_bf, x_bf, w1_p, b1_p, w2_p, b2_p)
        return out_pad[:, :D]

    # --- tiled two-pass path --------------------------------------------------
    row_tile = _pick_tile(N, row_tile, 16)            # bf16 native sublane tile
    col_tile = _pick_tile(N, col_tile, 128)
    # Keep >= 2 row blocks so the "parallel" axis can shard across v7x's 2 TCs.
    if N // row_tile < 2:
        half = _pick_tile(N, max(row_tile // 2, 16), 16)
        if N // half >= 2:
            row_tile = half
    assert N % row_tile == 0 and N % col_tile == 0
    assert row_tile == N or row_tile % 16 == 0
    assert col_tile == N or col_tile % 128 == 0

    grid = (N // row_tile, N // col_tile)

    # --- layer 1: HW2 = relu(A_hat @ (X @ W1) + b1) @ W2 ---------------------
    hw2 = pl.pallas_call(
        _layer1_kernel,
        out_shape=jax.ShapeDtypeStruct((N, D_pad), bf16),
        grid_spec=pltpu.PrefetchScalarGridSpec(
            num_scalar_prefetch=0,
            grid=grid,
            in_specs=[
                pl.BlockSpec((row_tile, col_tile), lambda i, k: (i, k)),  # A_hat
                pl.BlockSpec((col_tile, F), lambda i, k: (k, 0)),         # X (narrow)
                pl.BlockSpec((F, H_pad), lambda i, k: (0, 0)),            # W1
                pl.BlockSpec((1, H_pad), lambda i, k: (0, 0)),            # b1
                pl.BlockSpec((H_pad, D_pad), lambda i, k: (0, 0)),        # W2
            ],
            out_specs=pl.BlockSpec((row_tile, D_pad), lambda i, k: (i, 0)),
            scratch_shapes=[pltpu.VMEM((row_tile, H_pad), f32)],
        ),
        compiler_params=pltpu.CompilerParams(
            dimension_semantics=("parallel", "arbitrary"),
            vmem_limit_bytes=vmem_limit,
        ),
        cost_estimate=pl.CostEstimate(
            flops=2 * N * N * H_pad + grid[0] * 2 * N * F * H_pad
                  + 2 * N * H_pad * D_pad,
            transcendentals=0,
            bytes_accessed=(N * N * 2 + grid[0] * N * F * 2 + F * H_pad * 2
                            + H_pad * 4 + H_pad * D_pad * 2 + N * D_pad * 2),
        ),
    )(a_bf, x_bf, w1_p, b1_p, w2_p)

    # --- layer 2: out = A_hat @ HW2 + b2 --------------------------------------
    # Keep HW2 resident in VMEM when it fits (avoids re-streaming it once per
    # row tile); otherwise fall back to the k-indexed streamed spec.
    hw2_resident = (2 * N * D_pad * 2) <= vmem_limit // 4
    if hw2_resident:
        hw2_spec = pl.BlockSpec((N, D_pad), lambda i, k: (0, 0))
        hw2_read_bytes = N * D_pad * 2
    else:
        hw2_spec = pl.BlockSpec((col_tile, D_pad), lambda i, k: (k, 0))
        hw2_read_bytes = grid[0] * N * D_pad * 2

    out_pad = pl.pallas_call(
        functools.partial(_layer2_kernel, col_tile=col_tile,
                          hw2_resident=hw2_resident),
        out_shape=jax.ShapeDtypeStruct((N, D_pad), f32),
        grid_spec=pltpu.PrefetchScalarGridSpec(
            num_scalar_prefetch=0,
            grid=grid,
            in_specs=[
                pl.BlockSpec((row_tile, col_tile), lambda i, k: (i, k)),  # A_hat
                hw2_spec,                                                 # HW2
                pl.BlockSpec((1, D_pad), lambda i, k: (0, 0)),            # b2
            ],
            out_specs=pl.BlockSpec((row_tile, D_pad), lambda i, k: (i, 0)),
            scratch_shapes=[pltpu.VMEM((row_tile, D_pad), f32)],
        ),
        compiler_params=pltpu.CompilerParams(
            dimension_semantics=("parallel", "arbitrary"),
            vmem_limit_bytes=vmem_limit,
        ),
        cost_estimate=pl.CostEstimate(
            flops=2 * N * N * D_pad,
            transcendentals=0,
            bytes_accessed=N * N * 2 + hw2_read_bytes + D_pad * 4 + N * D_pad * 4,
        ),
    )(a_bf, hw2, b2_p)

    return out_pad[:, :D]


# ---------------------------------------------------------------------------
# Plain-JAX glue: sparse edge_index -> dense normalized adjacency (gcn_norm)
# ---------------------------------------------------------------------------

def build_normalized_adjacency(edge_index, num_nodes, *, add_self_loops=True):
    """Dense GCN normalization matching PyG gcn_norm semantics."""
    src, dst = edge_index[0], edge_index[1]
    a = jnp.zeros((num_nodes, num_nodes), jnp.float32)
    a = a.at[dst, src].add(1.0)
    if add_self_loops:
        eye = jnp.eye(num_nodes, dtype=jnp.float32)
        a = a * (1.0 - eye) + eye
    deg = a.sum(axis=1)
    dinv = jnp.where(deg > 0, 1.0 / jnp.sqrt(deg), 0.0)
    return dinv[:, None] * a * dinv[None, :]


def glorot(key, shape):
    fan_in, fan_out = shape
    limit = jnp.sqrt(6.0 / (fan_in + fan_out))
    return jax.random.uniform(key, shape, jnp.float32, -limit, limit)


# ---------------------------------------------------------------------------
# References
# ---------------------------------------------------------------------------

def _reference_f32(a_hat, x, w1, b1, w2, b2):
    h = jnp.maximum(a_hat @ (x @ w1) + b1[None, :], 0.0)
    return a_hat @ (h @ w2) + b2[None, :]


def _reference_bf16_path(a_hat, x, w1, b1, w2, b2):
    """Plain-JAX mirror of the kernel's bf16-operand / f32-accumulate path."""
    f32, bf16 = jnp.float32, jnp.bfloat16
    ab = a_hat.astype(bf16)
    xw1 = jnp.dot(x.astype(bf16), w1.astype(bf16),
                  preferred_element_type=f32).astype(bf16)
    h = jnp.maximum(jnp.dot(ab, xw1, preferred_element_type=f32) + b1[None, :], 0.0)
    hw2 = jnp.dot(h.astype(bf16), w2.astype(bf16),
                  preferred_element_type=f32).astype(bf16)
    return jnp.dot(ab, hw2, preferred_element_type=f32) + b2[None, :]


if __name__ == "__main__":
    key = jax.random.PRNGKey(0)
    k_edges, k_feat, k_w1, k_b1, k_w2, k_b2 = jax.random.split(key, 6)

    # Small synthetic graph.
    N = 512          # nodes
    F = 16           # num_node_features
    HIDDEN = 32      # hidden_dim
    DIM = 8          # output dim
    NUM_EDGES = 2048

    ij = jax.random.randint(k_edges, (2, NUM_EDGES), 0, N, dtype=jnp.int32)
    edge_index = jnp.concatenate([ij, jnp.stack([ij[1], ij[0]])], axis=1)  # symmetrize

    x = jax.random.normal(k_feat, (N, F), jnp.float32)

    # GCNConv params: weight (in, out) glorot; small nonzero biases to exercise
    # the bias path (PyG default init would be zeros).
    w1 = glorot(k_w1, (F, HIDDEN))
    b1 = 0.05 * jax.random.normal(k_b1, (HIDDEN,), jnp.float32)
    w2 = glorot(k_w2, (HIDDEN, DIM))
    b2 = 0.05 * jax.random.normal(k_b2, (DIM,), jnp.float32)

    a_hat = build_normalized_adjacency(edge_index, N, add_self_loops=True)

    # Small-N fully fused path (default dispatch at this size).
    out_fused = gae_conv_forward(a_hat, x, w1, b1, w2, b2)
    out_fused = jax.block_until_ready(out_fused)
    assert out_fused.shape == (N, DIM)

    # Tiled two-pass path (grid (2, 2) at N=512) — exercised explicitly.
    out_tiled = gae_conv_forward(a_hat, x, w1, b1, w2, b2,
                                 row_tile=256, col_tile=256, force_tiled=True)
    out_tiled = jax.block_until_ready(out_tiled)
    assert out_tiled.shape == (N, DIM)

    ref_bf16 = _reference_bf16_path(a_hat, x, w1, b1, w2, b2)
    ref_f32 = _reference_f32(a_hat, x, w1, b1, w2, b2)

    for name, out in (("fused", out_fused), ("tiled", out_tiled)):
        # Exact-path check (same bf16 casts / f32 accumulation) — tight tolerance.
        assert jnp.allclose(out, ref_bf16, atol=1e-2, rtol=1e-2), \
            (name, float(jnp.max(jnp.abs(out - ref_bf16))))
        # Semantics check vs the pure-f32 GCN forward — loose (bf16 rounding).
        assert jnp.allclose(out, ref_f32, atol=1.5e-1, rtol=1.5e-1), \
            (name, float(jnp.max(jnp.abs(out - ref_f32))))

    print("KERNEL_OK")
</pallas_src>

<mosaic_0001>
module attributes {stable_mosaic.version = 11 : i64} {
  func.func @_fused_kernel(%arg0: memref<512x512xbf16, #tpu.memory_space<vmem>>, %arg1: memref<512x16xbf16, #tpu.memory_space<vmem>>, %arg2: memref<16x128xbf16, #tpu.memory_space<vmem>>, %arg3: memref<1x128xf32, #tpu.memory_space<vmem>>, %arg4: memref<128x128xbf16, #tpu.memory_space<vmem>>, %arg5: memref<1x128xf32, #tpu.memory_space<vmem>>, %arg6: memref<512x128xf32, #tpu.memory_space<vmem>>) attributes {dimension_semantics = [], scalar_prefetch = 0 : i64, scratch_operands = 0 : i64, tpu.core_type = #tpu.core_type<tc>} {
    %c0 = arith.constant 0 : index
    %c0_0 = arith.constant 0 : index
    %0 = vector.load %arg1[%c0, %c0_0] : memref<512x16xbf16, #tpu.memory_space<vmem>>, vector<512x16xbf16>
    %c0_1 = arith.constant 0 : index
    %c0_2 = arith.constant 0 : index
    %1 = vector.load %arg2[%c0_1, %c0_2] : memref<16x128xbf16, #tpu.memory_space<vmem>>, vector<16x128xbf16>
    %cst = arith.constant dense<0.000000e+00> : vector<512x128xf32>
    %2 = tpu.matmul %0, %1, %cst {dimension_numbers = #tpu.dot_dimension_numbers<[1], [0], [0], [1], [0, 0, 1, 1], [], []>} : vector<512x16xbf16>, vector<16x128xbf16>, vector<512x128xf32> -> vector<512x128xf32>
    %3 = arith.truncf %2 : vector<512x128xf32> to vector<512x128xbf16>
    %c0_3 = arith.constant 0 : index
    %c0_4 = arith.constant 0 : index
    %4 = vector.load %arg0[%c0_3, %c0_4] : memref<512x512xbf16, #tpu.memory_space<vmem>>, vector<512x512xbf16>
    %cst_5 = arith.constant dense<0.000000e+00> : vector<512x128xf32>
    %5 = tpu.matmul %4, %3, %cst_5 {dimension_numbers = #tpu.dot_dimension_numbers<[1], [0], [0], [1], [0, 0, 1, 1], [], []>} : vector<512x512xbf16>, vector<512x128xbf16>, vector<512x128xf32> -> vector<512x128xf32>
    %c0_6 = arith.constant 0 : index
    %c0_7 = arith.constant 0 : index
    %6 = vector.load %arg3[%c0_6, %c0_7] : memref<1x128xf32, #tpu.memory_space<vmem>>, vector<1x128xf32>
    %7 = vector.broadcast %6 : vector<1x128xf32> to vector<512x128xf32>
    %8 = arith.addf %5, %7 : vector<512x128xf32>
    %cst_8 = arith.constant 0.000000e+00 : f32
    %9 = vector.broadcast %cst_8 : f32 to vector<512x128xf32>
    %10 = arith.maximumf %8, %9 : vector<512x128xf32>
    %11 = arith.truncf %10 : vector<512x128xf32> to vector<512x128xbf16>
    %c0_9 = arith.constant 0 : index
    %c0_10 = arith.constant 0 : index
    %12 = vector.load %arg4[%c0_9, %c0_10] : memref<128x128xbf16, #tpu.memory_space<vmem>>, vector<128x128xbf16>
    %cst_11 = arith.constant dense<0.000000e+00> : vector<512x128xf32>
    %13 = tpu.matmul %11, %12, %cst_11 {dimension_numbers = #tpu.dot_dimension_numbers<[1], [0], [0], [1], [0, 0, 1, 1], [], []>} : vector<512x128xbf16>, vector<128x128xbf16>, vector<512x128xf32> -> vector<512x128xf32>
    %14 = arith.truncf %13 : vector<512x128xf32> to vector<512x128xbf16>
    %c0_12 = arith.constant 0 : index
    %c0_13 = arith.constant 0 : index
    %15 = vector.load %arg0[%c0_12, %c0_13] : memref<512x512xbf16, #tpu.memory_space<vmem>>, vector<512x512xbf16>
    %cst_14 = arith.constant dense<0.000000e+00> : vector<512x128xf32>
    %16 = tpu.matmul %15, %14, %cst_14 {dimension_numbers = #tpu.dot_dimension_numbers<[1], [0], [0], [1], [0, 0, 1, 1], [], []>} : vector<512x512xbf16>, vector<512x128xbf16>, vector<512x128xf32> -> vector<512x128xf32>
    %c0_15 = arith.constant 0 : index
    %c0_16 = arith.constant 0 : index
    %17 = vector.load %arg5[%c0_15, %c0_16] : memref<1x128xf32, #tpu.memory_space<vmem>>, vector<1x128xf32>
    %18 = vector.broadcast %17 : vector<1x128xf32> to vector<512x128xf32>
    %19 = arith.addf %16, %18 : vector<512x128xf32>
    %c0_17 = arith.constant 0 : index
    %c0_18 = arith.constant 0 : index
    %20 = vector.load %arg6[%c0_17, %c0_18] : memref<512x128xf32, #tpu.memory_space<vmem>>, vector<512x128xf32>
    tpu.vector_store %arg6[%c0_17, %c0_18], %19 {strides = array<i32>} : memref<512x128xf32, #tpu.memory_space<vmem>>, vector<512x128xf32>,
    return
  }
}

</mosaic_0001>

<bundles_post_ra>
// kernel: tpu_custom_call.1
= control target key start
LH: loop header
LB: loop body
LE: loop exit
PB: predicated region body
PF: predicated region fallthrough
CT: control target
= control target key end

     0   :  { %11 = vsyncpa [#allocation3], 0  ;;  %s5622_s0 = inlined_call_operand.hbm [shape: bf16[512,512], index: 0, kind: input, shape index: {}]   ;;  %s5623_s1 = inlined_call_operand.vmem [shape: bf16[512,16], index: 1, kind: input, shape index: {}]   ;;  %s5624_s2 = inlined_call_operand.vmem [shape: bf16[16,128], index: 2, kind: input, shape index: {}]   ;;  %s5625_s3 = inlined_call_operand.vmem [shape: f32[1,128], index: 3, kind: input, shape index: {}]   ;;  %s5626_s4 = inlined_call_operand.vmem [shape: bf16[128,128], index: 4, kind: input, shape index: {}]   ;;  %s5627_s5 = inlined_call_operand.vmem [shape: f32[1,128], index: 5, kind: input, shape index: {}]   ;;  %s5628_s6 = inlined_call_operand.hbm [shape: f32[512,128], index: 6, kind: output, shape index: {}]  }
   0x1   :  { %12 = vsyncpa [#allocation4], 0  ;;  %s17_s23 = sshll.u32 %s5622_s0, 4  ;;  %s4091_s24 = smov [#allocation2]   ;;  %s18_s23 = int_to_ptr.hbm [resolvable:$true] %s17_s23 }
   0x2   :  { %s19_s25 = sshll.u32 %s4091_s24, 4  ;;  %s4092_s26 = smov 256   ;;  %s20_s25 = int_to_ptr.vmem [resolvable:$true] %s19_s25 }
   0x3   :  { %s4093_s27 = smov 16  }
   0x4   :  { %25 = dma.hbm_to_vmem [thread:$0]  %s18_s23, 16384, %s20_s25, [#allocation3], %s4092_s26, %s4092_s26, %s4093_s27  }
   0x5   :  { %4087 = dma.done.wait [#allocation3], 16384  }
   0x6   :  { %4088 = vsyncadd [#allocation3], 4294950912  ;;  %v3883_v0 = vld [vmem:[%s5624_s2] sm:$0xff]  ;;  %v3868_v2 = vld [vmem:[%s5623_s1 + $0x88] sm:$0xff]  ;;  %vm273_vm0 = vcmask 130048   ;;  %s3130_s14 = sshll.u32 %s5628_s6, 4  ;;  %s3131_s14 = int_to_ptr.hbm [resolvable:$true] %s3130_s14 }
   0x7   :  { %v3851_v1 = vld [vmem:[%s5623_s1] sm:$0xff]  ;;  %377 = vmatpush.bf16.msra.mxu0 %v3883_v0  ;;  %4020 = vmatpush.bf16.msra.mxu3 %v3883_v0  ;;  %v3852_v3 = vld [vmem:[%s5623_s1 + $0x8] sm:$0xff]  ;;  %v3869_v4 = vld [vmem:[%s5623_s1 + $0x90] sm:$0xff]  ;;  %s4095_s15 = smov 128  }
   0x8   :  { %v3853_v5 = vld [vmem:[%s5623_s1 + $0x10] sm:$0xff]  ;;  %v3870_v6 = vld [vmem:[%s5623_s1 + $0x98] sm:$0xff]  ;;  %v3871_v8 = vld [vmem:[%s5623_s1 + $0xa0] sm:$0xff] }
   0x9   :  { %v3854_v7 = vld [vmem:[%s5623_s1 + $0x18] sm:$0xff]  ;;  %v3855_v9 = vld [vmem:[%s5623_s1 + $0x20] sm:$0xff]  ;;  %v3872_v10 = vld [vmem:[%s5623_s1 + $0xa8] sm:$0xff] }
   0xa   :  { %3275 = vmatmul.msk.bf16.vlgmr.msra.gmra.mxu0 %vm273_vm0, %v3851_v1  ;;  %3292 = vmatmul.msk.bf16.vlgmr.msra.gmra.mxu3 %vm273_vm0, %v3868_v2  ;;  %v3856_v11 = vld [vmem:[%s5623_s1 + $0x28] sm:$0xff]  ;;  %v3873_v12 = vld [vmem:[%s5623_s1 + $0xb0] sm:$0xff]  ;;  %v3874_v14 = vld [vmem:[%s5623_s1 + $0xb8] sm:$0xff] }
   0xb   :  { %v3857_v13 = vld [vmem:[%s5623_s1 + $0x30] sm:$0xff]  ;;  %v3858_v15 = vld [vmem:[%s5623_s1 + $0x38] sm:$0xff]  ;;  %v3875_v16 = vld [vmem:[%s5623_s1 + $0xc0] sm:$0xff] }
   0xc   :  { %v3859_v17 = vld [vmem:[%s5623_s1 + $0x40] sm:$0xff]  ;;  %v3876_v18 = vld [vmem:[%s5623_s1 + $0xc8] sm:$0xff]  ;;  %v3877_v25 = vld [vmem:[%s5623_s1 + $0xd0] sm:$0xff] }
   0xd   :  { %v3860_v24 = vld [vmem:[%s5623_s1 + $0x48] sm:$0xff]  ;;  %v3861_v31 = vld [vmem:[%s5623_s1 + $0x50] sm:$0xff]  ;;  %v3878_v32 = vld [vmem:[%s5623_s1 + $0xd8] sm:$0xff] }
   0xe   :  { %v3862_v38 = vld [vmem:[%s5623_s1 + $0x58] sm:$0xff]  ;;  %v3879_v39 = vld [vmem:[%s5623_s1 + $0xe0] sm:$0xff]  ;;  %v3880_v46 = vld [vmem:[%s5623_s1 + $0xe8] sm:$0xff] }
   0xf   :  { %v3863_v45 = vld [vmem:[%s5623_s1 + $0x60] sm:$0xff]  ;;  %v3864_v51 = vld [vmem:[%s5623_s1 + $0x68] sm:$0xff]  ;;  %v3881_v52 = vld [vmem:[%s5623_s1 + $0xf0] sm:$0xff] }
  0x10   :  { %v3865_v57 = vld [vmem:[%s5623_s1 + $0x70] sm:$0xff]  ;;  %v3882_v58 = vld [vmem:[%s5623_s1 + $0xf8] sm:$0xff] }
  0x11   :  { %v3866_v63 = vld [vmem:[%s5623_s1 + $0x78] sm:$0xff] }
  0x1a   :  { %3276 = vmatmul.msk.bf16.gmra.mxu0 %vm273_vm0, %v3852_v3  ;;  %3293 = vmatmul.msk.bf16.gmra.mxu3 %vm273_vm0, %v3869_v4 }
  0x2a   :  { %3277 = vmatmul.msk.bf16.gmra.mxu0 %vm273_vm0, %v3853_v5  ;;  %3294 = vmatmul.msk.bf16.gmra.mxu3 %vm273_vm0, %v3870_v6 }
  0x3a   :  { %3278 = vmatmul.msk.bf16.gmra.mxu0 %vm273_vm0, %v3854_v7  ;;  %3295 = vmatmul.msk.bf16.gmra.mxu3 %vm273_vm0, %v3871_v8 }
  0x4a   :  { %3279 = vmatmul.msk.bf16.gmra.mxu0 %vm273_vm0, %v3855_v9  ;;  %3296 = vmatmul.msk.bf16.gmra.mxu3 %vm273_vm0, %v3872_v10 }
  0x5a   :  { %3280 = vmatmul.msk.bf16.gmra.mxu0 %vm273_vm0, %v3856_v11  ;;  %3297 = vmatmul.msk.bf16.gmra.mxu3 %vm273_vm0, %v3873_v12 }
  0x6a   :  { %3281 = vmatmul.msk.bf16.gmra.mxu0 %vm273_vm0, %v3857_v13  ;;  %3298 = vmatmul.msk.bf16.gmra.mxu3 %vm273_vm0, %v3874_v14 }
  0x7a   :  { %3282 = vmatmul.msk.bf16.gmra.mxu0 %vm273_vm0, %v3858_v15  ;;  %3299 = vmatmul.msk.bf16.gmra.mxu3 %vm273_vm0, %v3875_v16 }
  0x87   :  { %v379_v19 = vpop.f32.mrf.mxu0 }
  0x8a   :  { %3283 = vmatmul.msk.bf16.gmra.mxu0 %vm273_vm0, %v3859_v17  ;;  %3300 = vmatmul.msk.bf16.gmra.mxu3 %vm273_vm0, %v3876_v18 }
  0x8d   :  { %v4210_v20 = vpop.f32.mrf.mxu3 }
  0x8f   :  { %v381_v21 = vpop.f32.mrf.mxu0 }
  0x90   :  { %v4212_v22 = vpack.c.bf16 %v381_v21, %v379_v19  ;;  %v3950_v21 = vld [vmem:[#allocation2 + $0x20c] sm:$0xf0] }
  0x95   :  { %v4214_v23 = vpop.f32.mrf.mxu3 }
  0x96   :  { %v556_v15 = vpack.c.bf16 %v4214_v23, %v4210_v20  ;;  %v3565_v20 = vld [vmem:[#allocation2 + $0x200] sm:$0xf] }
  0x97   :  { %v384_v26 = vpop.f32.mrf.mxu0 }
  0x9a   :  { %3284 = vmatmul.msk.bf16.gmra.mxu0 %vm273_vm0, %v3860_v24  ;;  %3301 = vmatmul.msk.bf16.gmra.mxu3 %vm273_vm0, %v3877_v25  ;;  %v4300_v24 = vor.u32 %v3950_v21, %v3565_v20  ;;  %v3677_v20 = vld [vmem:[#allocation2 + $0x2e0] sm:$0xf]  ;;  %v3978_v21 = vld [vmem:[#allocation2 + $0x2ec] sm:$0xf0] }
  0x9c   :  { %5736 = vst [vmem:[#allocation8_spill] sm:$0xff] %v4300_v24 }
  0x9d   :  { %v4224_v27 = vpop.f32.mrf.mxu3 }
  0x9f   :  { %v386_v28 = vpop.f32.mrf.mxu0 }
  0xa0   :  { %v4226_v29 = vpack.c.bf16 %v386_v28, %v384_v26  ;;  %v3581_v28 = vld [vmem:[#allocation2 + $0x220] sm:$0xf] }
  0xa5   :  { %v4228_v30 = vpop.f32.mrf.mxu3 }
  0xa6   :  { %v557_v13 = vpack.c.bf16 %v4228_v30, %v4224_v27 }
  0xa7   :  { %v389_v33 = vpop.f32.mrf.mxu0 }
  0xaa   :  { %3285 = vmatmul.msk.bf16.gmra.mxu0 %vm273_vm0, %v3861_v31  ;;  %3302 = vmatmul.msk.bf16.gmra.mxu3 %vm273_vm0, %v3878_v32 }
  0xad   :  { %v474_v34 = vpop.f32.mrf.mxu3 }
  0xaf   :  { %v391_v35 = vpop.f32.mrf.mxu0 }
  0xb0   :  { %v4238_v36 = vpack.c.bf16 %v391_v35, %v389_v33  ;;  %v3958_v35 = vld [vmem:[#allocation2 + $0x24c] sm:$0xf0] }
  0xb5   :  { %v476_v37 = vpop.f32.mrf.mxu3 }
  0xb6   :  { %v558_v9 = vpack.c.bf16 %v476_v37, %v474_v34 }
  0xb7   :  { %v394_v40 = vpop.f32.mrf.mxu0 }
  0xba   :  { %3286 = vmatmul.msk.bf16.gmra.mxu0 %vm273_vm0, %v3862_v38  ;;  %3303 = vmatmul.msk.bf16.gmra.mxu3 %vm273_vm0, %v3879_v39 }
  0xbd   :  { %v479_v41 = vpop.f32.mrf.mxu3 }
  0xbf   :  { %v396_v42 = vpop.f32.mrf.mxu0 }
  0xc0   :  { %v542_v43 = vpack.c.bf16 %v396_v42, %v394_v40  ;;  %v3962_v42 = vld [vmem:[#allocation2 + $0x26c] sm:$0xf0] }
  0xc5   :  { %v481_v44 = vpop.f32.mrf.mxu3 }
  0xc6   :  { %v559_v7 = vpack.c.bf16 %v481_v44, %v479_v41  ;;  %v3613_v41 = vld [vmem:[#allocation2 + $0x260] sm:$0xf] }
  0xc7   :  { %v399_v47 = vpop.f32.mrf.mxu0  ;;  %v4323_v44 = vor.u32 %v3962_v42, %v3613_v41  ;;  %v3894_v41 = vld [vmem:[#allocation2 + $0x4c] sm:$0xf0] }
  0xc9   :  { %5739 = vst [vmem:[#allocation11_spill] sm:$0xff] %v4323_v44 }
  0xca   :  { %3287 = vmatmul.msk.bf16.gmra.mxu0 %vm273_vm0, %v3863_v45  ;;  %3304 = vmatmul.msk.bf16.gmra.mxu3 %vm273_vm0, %v3880_v46 }
  0xcd   :  { %v484_v48 = vpop.f32.mrf.mxu3 }
  0xcf   :  { %v401_v49 = vpop.f32.mrf.mxu0 }
  0xd0   :  { %v543_v14 = vpack.c.bf16 %v401_v49, %v399_v47  ;;  %v3966_v49 = vld [vmem:[#allocation2 + $0x28c] sm:$0xf0] }
  0xd5   :  { %v486_v50 = vpop.f32.mrf.mxu3 }
  0xd6   :  { %v560_v3 = vpack.c.bf16 %v486_v50, %v484_v48  ;;  %v3629_v48 = vld [vmem:[#allocation2 + $0x280] sm:$0xf] }
  0xd7   :  { %v404_v53 = vpop.f32.mrf.mxu0 }
  0xda   :  { %3288 = vmatmul.msk.bf16.gmra.mxu0 %vm273_vm0, %v3864_v51  ;;  %3305 = vmatmul.msk.bf16.gmra.mxu3 %vm273_vm0, %v3881_v52  ;;  %v4326_v51 = vor.u32 %v3966_v49, %v3629_v48  ;;  %v3898_v48 = vld [vmem:[#allocation2 + $0x6c] sm:$0xf0] }
  0xdc   :  { %5740 = vst [vmem:[#allocation12_spill] sm:$0xff] %v4326_v51 }
  0xdd   :  { %v489_v54 = vpop.f32.mrf.mxu3 }
  0xdf   :  { %v406_v55 = vpop.f32.mrf.mxu0 }
  0xe0   :  { %v544_v12 = vpack.c.bf16 %v406_v55, %v404_v53  ;;  %v3645_v55 = vld [vmem:[#allocation2 + $0x2a0] sm:$0xf] }
  0xe5   :  { %v491_v56 = vpop.f32.mrf.mxu3 }
  0xe6   :  { %v561_v2 = vpack.c.bf16 %v491_v56, %v489_v54  ;;  %v3970_v56 = vld [vmem:[#allocation2 + $0x2ac] sm:$0xf0] }
  0xe7   :  { %v409_v59 = vpop.f32.mrf.mxu0 }
  0xea   :  { %3289 = vmatmul.msk.bf16.gmra.mxu0 %vm273_vm0, %v3865_v57  ;;  %3306 = vmatmul.msk.bf16.gmra.mxu3 %vm273_vm0, %v3882_v58  ;;  %v4329_v58 = vor.u32 %v3970_v56, %v3645_v55  ;;  %v3373_v56 = vld [vmem:[#allocation2 + $0x80] sm:$0xf] }
  0xec   :  { %5741 = vst [vmem:[#allocation13_spill] sm:$0xff] %v4329_v58 }
  0xed   :  { %v494_v60 = vpop.f32.mrf.mxu3 }
  0xef   :  { %v411_v61 = vpop.f32.mrf.mxu0 }
  0xf0   :  { %v545_v8 = vpack.c.bf16 %v411_v61, %v409_v59  ;;  %v3867_v59 = vld [vmem:[%s5623_s1 + $0x80] sm:$0xff]  ;;  %s4096_s1 = smov 8  }
  0xf5   :  { %v496_v62 = vpop.f32.mrf.mxu3 }
  0xf6   :  { %v562_v0 = vpack.c.bf16 %v496_v62, %v494_v60 }
  0xf7   :  { %v414_v1 = vpop.f32.mrf.mxu0 }
  0xf8   :  { %1681 = vmatpush.bf16.msrb.mxu3 %v562_v0 }
  0xfa   :  { %3290 = vmatmul.msk.bf16.gmra.mxu0 %vm273_vm0, %v3866_v63 }
  0xfc   :  { %1682 = vmatpush.bf16.msrb.mxu3 %v561_v2  ;;  %v3974_v2 = vld [vmem:[#allocation2 + $0x2cc] sm:$0xf0] }
  0xfd   :  { %v4276_v4 = vpop.f32.mrf.mxu3 }
  0xff   :  { %v416_v5 = vpop.f32.mrf.mxu0 }
 0x100   :  { %v546_v6 = vpack.c.bf16 %v416_v5, %v414_v1  ;;  %1683 = vmatpush.bf16.msrb.mxu3 %v560_v3  ;;  %v3661_v1 = vld [vmem:[#allocation2 + $0x2c0] sm:$0xf] }
 0x101   :  { %v4336_v5 = vor.u32 %v3974_v2, %v3661_v1  ;;  %v3389_v1 = vld [vmem:[#allocation2 + $0xa0] sm:$0xf]  ;;  %v3906_v2 = vld [vmem:[#allocation2 + $0xac] sm:$0xf0] }
 0x102   :  { %1343 = vmatpush.bf16.msra.mxu1 %v546_v6  ;;  %4021 = vmatpush.bf16.msra.mxu2 %v546_v6 }
 0x103   :  { %5742 = vst [vmem:[#allocation14_spill] sm:$0xff] %v4336_v5 }
 0x104   :  { %1684 = vmatpush.bf16.msrb.mxu3 %v559_v7 }
 0x105   :  { %v4278_v10 = vpop.f32.mrf.mxu3 }
 0x106   :  { %1344 = vmatpush.bf16.msra.mxu1 %v545_v8  ;;  %4022 = vmatpush.bf16.msra.mxu2 %v545_v8 }
 0x107   :  { %v4280_v11 = vpop.f32.mrf.mxu0 }
 0x108   :  { %1685 = vmatpush.bf16.msrb.mxu3 %v558_v9 }
 0x10a   :  { %1345 = vmatpush.bf16.msra.mxu1 %v544_v12  ;;  %4023 = vmatpush.bf16.msra.mxu2 %v544_v12 }
 0x10b   :  { %3291 = vmatmul.msk.bf16.gmra.mxu0 %vm273_vm0, %v3867_v59 }
 0x10c   :  { %1686 = vmatpush.bf16.msrb.mxu3 %v557_v13 }
 0x10d   :  { %v4286_v16 = vpop.f32.mrf.mxu3 }
 0x10e   :  { %1346 = vmatpush.bf16.msra.mxu1 %v543_v14  ;;  %4024 = vmatpush.bf16.msra.mxu2 %v543_v14 }
 0x10f   :  { %v4288_v17 = vpop.f32.mrf.mxu0 }
 0x110   :  { %1687 = vmatpush.bf16.msrb.mxu3 %v556_v15 }
 0x112   :  { %1347 = vmatpush.bf16.msra.mxu1 %v542_v43  ;;  %4025 = vmatpush.bf16.msra.mxu2 %v542_v43 }
 0x115   :  { %v4290_v18 = vpop.f32.mrf.mxu3 }
 0x116   :  { %1348 = vmatpush.bf16.msra.mxu1 %v4238_v36  ;;  %4026 = vmatpush.bf16.msra.mxu2 %v4238_v36 }
 0x117   :  { %v4294_v19 = vpop.f32.mrf.mxu0 }
 0x11a   :  { %1349 = vmatpush.bf16.msra.mxu1 %v4226_v29  ;;  %4027 = vmatpush.bf16.msra.mxu2 %v4226_v29  ;;  %v3954_v29 = vld [vmem:[#allocation2 + $0x22c] sm:$0xf0] }
 0x11b   :  { %v4311_v31 = vor.u32 %v3954_v29, %v3581_v28  ;;  %v564_v28 = vpack.c.bf16 %v4290_v18, %v4286_v16  ;;  %v3309_v29 = vld [vmem:[#allocation2] sm:$0xf] }
 0x11d   :  { %v4298_v23 = vpop.f32.mrf.mxu3  ;;  %5737 = vst [vmem:[#allocation9_spill] sm:$0xff] %v4311_v31 }
 0x11e   :  { %1350 = vmatpush.bf16.msra.mxu1 %v4212_v22  ;;  %4028 = vmatpush.bf16.msra.mxu2 %v4212_v22  ;;  %v3597_v22 = vld [vmem:[#allocation2 + $0x240] sm:$0xf] }
 0x11f   :  { %v4304_v25 = vpop.f32.mrf.mxu0  ;;  %v4318_v37 = vor.u32 %v3958_v35, %v3597_v22  ;;  %v3886_v22 = vld [vmem:[#allocation2 + $0xc] sm:$0xf0]  ;;  %v4343_v35 = vor.u32 %v3978_v21, %v3677_v20 }
 0x120   :  { %v548_v18 = vpack.c.bf16 %v4304_v25, %v4294_v19  ;;  %v3709_v19 = vld [vmem:[#allocation2 + $0x320] sm:$0xf]  ;;  %v3986_v25 = vld [vmem:[#allocation2 + $0x32c] sm:$0xf0] }
 0x121   :  { %1431 = vmatmul.bf16.vlgmr.msra.gmra.mxu2 %v4300_v24  ;;  %5738 = vst [vmem:[#allocation10_spill] sm:$0xff] %v4318_v37 }
 0x122   :  { %5743 = vst [vmem:[#allocation15_spill] sm:$0xff] %v4343_v35 }
 0x125   :  { %v4307_v26 = vpop.f32.mrf.mxu3 }
 0x126   :  { %v565_v14 = vpack.c.bf16 %v4307_v26, %v4298_v23  ;;  %v563_v23 = vpack.c.bf16 %v4278_v10, %v4276_v4  ;;  %v3693_v26 = vld [vmem:[#allocation2 + $0x300] sm:$0xf] }
 0x127   :  { %v4309_v27 = vpop.f32.mrf.mxu0 }
 0x12d   :  { %v514_v30 = vpop.f32.mrf.mxu3 }
 0x12f   :  { %v4313_v32 = vpop.f32.mrf.mxu0 }
 0x130   :  { %v549_v16 = vpack.c.bf16 %v4313_v32, %v4309_v27 }
 0x131   :  { %1436 = vmatmul.bf16.gmra.mxu2 %v4311_v31 }
 0x135   :  { %v516_v33 = vpop.f32.mrf.mxu3 }
 0x136   :  { %v566_v12 = vpack.c.bf16 %v516_v33, %v514_v30  ;;  %v3982_v33 = vld [vmem:[#allocation2 + $0x30c] sm:$0xf0] }
 0x137   :  { %v4316_v34 = vpop.f32.mrf.mxu0  ;;  %v4359_v4 = vor.u32 %v3982_v33, %v3693_v26  ;;  %v4006_v26 = vld [vmem:[#allocation2 + $0x3cc] sm:$0xf0] }
 0x139   :  { %5744 = vst [vmem:[#allocation16_spill] sm:$0xff] %v4359_v4 }
 0x13d   :  { %v519_v36 = vpop.f32.mrf.mxu3 }
 0x13f   :  { %v4320_v38 = vpop.f32.mrf.mxu0 }
 0x140   :  { %v550_v30 = vpack.c.bf16 %v4320_v38, %v4316_v34  ;;  %v547_v34 = vpack.c.bf16 %v4288_v17, %v4280_v11  ;;  %v3325_v38 = vld [vmem:[#allocation2 + $0x20] sm:$0xf]  ;;  %v4369_v11 = vor.u32 %v3986_v25, %v3709_v19  ;;  %v3885_v25 = vld [vmem:[#allocation2 + $0xc] sm:$0xf] }
 0x141   :  { %1441 = vmatmul.bf16.gmra.mxu2 %v4318_v37  ;;  %v3907_v37 = vld [vmem:[#allocation2 + $0xb4] sm:$0xf0] }
 0x142   :  { %5746 = vst [vmem:[#allocation18_spill] sm:$0xff] %v4369_v11 }
 0x145   :  { %v521_v39 = vpop.f32.mrf.mxu3 }
 0x146   :  { %v567_v8 = vpack.c.bf16 %v521_v39, %v519_v36  ;;  %v4345_v36 = vor.u32 %v3886_v22, %v3309_v29  ;;  %v3890_v39 = vld [vmem:[#allocation2 + $0x2c] sm:$0xf0]  ;;  %v3317_v22 = vld [vmem:[#allocation2 + $0x8] sm:$0xf] }
 0x147   :  { %v439_v40 = vpop.f32.mrf.mxu0  ;;  %v4361_v10 = vor.u32 %v3890_v39, %v3325_v38  ;;  %v3914_v38 = vld [vmem:[#allocation2 + $0xec] sm:$0xf0] }
 0x148   :  { %1351 = vmatmul.bf16.vlgmr.msra.gmra.mxu1 %v4345_v36 }
 0x149   :  { %5745 = vst [vmem:[#allocation17_spill] sm:$0xff] %v4361_v10 }
 0x14d   :  { %v524_v43 = vpop.f32.mrf.mxu3 }
 0x14f   :  { %v441_v45 = vpop.f32.mrf.mxu0 }
 0x150   :  { %v551_v15 = vpack.c.bf16 %v441_v45, %v439_v40  ;;  %v3341_v40 = vld [vmem:[#allocation2 + $0x40] sm:$0xf]  ;;  %v3990_v45 = vld [vmem:[#allocation2 + $0x34c] sm:$0xf0] }
 0x151   :  { %1446 = vmatmul.bf16.gmra.mxu2 %v4323_v44  ;;  %v4371_v17 = vor.u32 %v3894_v41, %v3341_v40  ;;  %v3319_v40 = vld [vmem:[#allocation2 + $0x18] sm:$0xf0]  ;;  %v3397_v44 = vld [vmem:[#allocation2 + $0xa8] sm:$0xf] }
 0x152   :  { %v4428_v41 = vor.u32 %v3885_v25, %v3319_v40  ;;  %v3922_v25 = vld [vmem:[#allocation2 + $0x12c] sm:$0xf0] }
 0x153   :  { %5747 = vst [vmem:[#allocation19_spill] sm:$0xff] %v4371_v17 }
 0x154   :  { %5759 = vst [vmem:[#allocation31_spill] sm:$0xff] %v4428_v41 }
 0x155   :  { %v526_v46 = vpop.f32.mrf.mxu3 }
 0x156   :  { %v568_v3 = vpack.c.bf16 %v526_v46, %v524_v43  ;;  %v3725_v43 = vld [vmem:[#allocation2 + $0x340] sm:$0xf] }
 0x157   :  { %v444_v47 = vpop.f32.mrf.mxu0  ;;  %v4379_v49 = vor.u32 %v3990_v45, %v3725_v43  ;;  %v3333_v45 = vld [vmem:[#allocation2 + $0x28] sm:$0xf] }
 0x158   :  { %1356 = vmatmul.bf16.gmra.mxu1 %v4361_v10  ;;  %v3929_v10 = vld [vmem:[#allocation2 + $0x16c] sm:$0xf] }
 0x159   :  { %5748 = vst [vmem:[#allocation20_spill] sm:$0xff] %v4379_v49 }
 0x15d   :  { %v529_v50 = vpop.f32.mrf.mxu3 }
 0x15f   :  { %v446_v52 = vpop.f32.mrf.mxu0 }
 0x160   :  { %v552_v13 = vpack.c.bf16 %v446_v52, %v444_v47  ;;  %v3357_v47 = vld [vmem:[#allocation2 + $0x60] sm:$0xf] }
 0x161   :  { %1451 = vmatmul.bf16.gmra.mxu2 %v4326_v51 }
 0x165   :  { %v531_v53 = vpop.f32.mrf.mxu3 }
 0x166   :  { %v569_v0 = vpack.c.bf16 %v531_v53, %v529_v50  ;;  %v4381_v50 = vor.u32 %v3898_v48, %v3357_v47  ;;  %v3741_v53 = vld [vmem:[#allocation2 + $0x360] sm:$0xf]  ;;  %v3891_v47 = vld [vmem:[#allocation2 + $0x34] sm:$0xf0] }
 0x167   :  { %v449_v54 = vpop.f32.mrf.mxu0  ;;  %v4433_v48 = vor.u32 %v3891_v47, %v3333_v45  ;;  %v3893_v47 = vld [vmem:[#allocation2 + $0x4c] sm:$0xf] }
 0x168   :  { %1361 = vmatmul.bf16.gmra.mxu1 %v4371_v17  ;;  %5749 = vst [vmem:[#allocation21_spill] sm:$0xff] %v4381_v50 }
 0x169   :  { %5760 = vst [vmem:[#allocation32_spill] sm:$0xff] %v4433_v48 }
 0x16d   :  { %v534_v57 = vpop.f32.mrf.mxu3 }
 0x16f   :  { %v451_v60 = vpop.f32.mrf.mxu0 }
 0x170   :  { %v553_v9 = vpack.c.bf16 %v451_v60, %v449_v54  ;;  %v3994_v54 = vld [vmem:[#allocation2 + $0x36c] sm:$0xf0] }
 0x171   :  { %1456 = vmatmul.bf16.gmra.mxu2 %v4329_v58  ;;  %v4389_v59 = vor.u32 %v3994_v54, %v3741_v53  ;;  %v3805_v53 = vld [vmem:[#allocation2 + $0x3e0] sm:$0xf]  ;;  %v4010_v54 = vld [vmem:[#allocation2 + $0x3ec] sm:$0xf0]  ;;  %v3383_v58 = vld [vmem:[#allocation2 + $0x98] sm:$0xf0] }
 0x173   :  { %5750 = vst [vmem:[#allocation22_spill] sm:$0xff] %v4389_v59 }
 0x175   :  { %v536_v61 = vpop.f32.mrf.mxu3 }
 0x176   :  { %v570_v62 = vpack.c.bf16 %v536_v61, %v534_v57  ;;  %v3902_v57 = vld [vmem:[#allocation2 + $0x8c] sm:$0xf0] }
 0x177   :  { %v454_v63 = vpop.f32.mrf.mxu0  ;;  %v4391_v60 = vor.u32 %v3902_v57, %v3373_v56 }
 0x178   :  { %1850 = vmatpush.bf16.msrb.mxu0 %v570_v62  ;;  %1366 = vmatmul.bf16.gmra.mxu1 %v4381_v50  ;;  %v3757_v62 = vld [vmem:[#allocation2 + $0x380] sm:$0xf] }
 0x179   :  { %5751 = vst [vmem:[#allocation23_spill] sm:$0xff] %v4391_v60 }
 0x17c   :  { %1851 = vmatpush.bf16.msrb.mxu0 %v569_v0 }
 0x17f   :  { %v456_v6 = vpop.f32.mrf.mxu0 }
 0x180   :  { %1852 = vmatpush.bf16.msrb.mxu0 %v568_v3  ;;  %v554_v7 = vpack.c.bf16 %v456_v6, %v454_v63  ;;  %v3998_v63 = vld [vmem:[#allocation2 + $0x38c] sm:$0xf0]  ;;  %v4401_v6 = vor.u32 %v3906_v2, %v3389_v1  ;;  %v4440_v1 = vor.u32 %v4010_v54, %v3805_v53  ;;  %v3351_v53 = vld [vmem:[#allocation2 + $0x58] sm:$0xf0] }
 0x181   :  { %1461 = vmatmul.bf16.gmra.mxu2 %v4336_v5  ;;  %v4399_v3 = vor.u32 %v3998_v63, %v3757_v62  ;;  %v3437_v62 = vld [vmem:[#allocation2 + $0x100] sm:$0xf]  ;;  %v3918_v63 = vld [vmem:[#allocation2 + $0x10c] sm:$0xf0]  ;;  %v4466_v54 = vor.u32 %v3893_v47, %v3351_v53  ;;  %v3901_v5 = vld [vmem:[#allocation2 + $0x8c] sm:$0xf] }
 0x182   :  { %1512 = vmatpush.bf16.msrb.mxu2 %v554_v7  ;;  %5753 = vst [vmem:[#allocation25_spill] sm:$0xff] %v4401_v6  ;;  %v4442_v2 = vor.u32 %v3918_v63, %v3437_v62  ;;  %v3926_v47 = vld [vmem:[#allocation2 + $0x14c] sm:$0xf0] }
 0x183   :  { %5752 = vst [vmem:[#allocation24_spill] sm:$0xff] %v4399_v3 }
 0x184   :  { %1853 = vmatpush.bf16.msrb.mxu0 %v567_v8  ;;  %v3773_v8 = vld [vmem:[#allocation2 + $0x3a0] sm:$0xf]  ;;  %5761 = vst [vmem:[#allocation33_spill] sm:$0xff] %v4440_v1 }
 0x185   :  { %5762 = vst [vmem:[#allocation34_spill] sm:$0xff] %v4442_v2 }
 0x186   :  { %1513 = vmatpush.bf16.msrb.mxu2 %v553_v9  ;;  %v4002_v9 = vld [vmem:[#allocation2 + $0x3ac] sm:$0xf0]  ;;  %5767 = vst [vmem:[#allocation39_spill] sm:$0xff] %v4466_v54 }
 0x188   :  { %1854 = vmatpush.bf16.msrb.mxu0 %v566_v12  ;;  %1371 = vmatmul.bf16.gmra.mxu1 %v4391_v60  ;;  %v459_v20 = vpop.f32.mrf.mxu0 }
 0x18a   :  { %1514 = vmatpush.bf16.msrb.mxu2 %v552_v13  ;;  %v3405_v13 = vld [vmem:[#allocation2 + $0xc0] sm:$0xf] }
 0x18c   :  { %1855 = vmatpush.bf16.msrb.mxu0 %v565_v14  ;;  %v3910_v14 = vld [vmem:[#allocation2 + $0xcc] sm:$0xf0] }
 0x18d   :  { %v4411_v21 = vor.u32 %v3910_v14, %v3405_v13 }
 0x18e   :  { %1515 = vmatpush.bf16.msrb.mxu2 %v551_v15  ;;  %v4409_v15 = vor.u32 %v4002_v9, %v3773_v8  ;;  %v3889_v8 = vld [vmem:[#allocation2 + $0x2c] sm:$0xf]  ;;  %v3335_v9 = vld [vmem:[#allocation2 + $0x38] sm:$0xf0] }
 0x18f   :  { %5755 = vst [vmem:[#allocation27_spill] sm:$0xff] %v4411_v21  ;;  %v4446_v13 = vor.u32 %v3889_v8, %v3335_v9  ;;  %v3365_v8 = vld [vmem:[#allocation2 + $0x68] sm:$0xf]  ;;  %v3899_v9 = vld [vmem:[#allocation2 + $0x74] sm:$0xf0] }
 0x190   :  { %1856 = vmatpush.bf16.msrb.mxu0 %v564_v28  ;;  %5754 = vst [vmem:[#allocation26_spill] sm:$0xff] %v4409_v15  ;;  %v461_v29 = vpop.f32.mrf.mxu0 }
 0x191   :  { %1466 = vmatmul.bf16.gmra.mxu2 %v4343_v35  ;;  %5763 = vst [vmem:[#allocation35_spill] sm:$0xff] %v4446_v13 }
 0x192   :  { %1516 = vmatpush.bf16.msrb.mxu2 %v550_v30  ;;  %v3887_v30 = vld [vmem:[#allocation2 + $0x14] sm:$0xf0] }
 0x194   :  { %1857 = vmatpush.bf16.msrb.mxu0 %v563_v23  ;;  %v555_v23 = vpack.c.bf16 %v461_v29, %v459_v20  ;;  %v3349_v29 = vld [vmem:[#allocation2 + $0x48] sm:$0xf] }
 0x196   :  { %1517 = vmatpush.bf16.msrb.mxu2 %v549_v16  ;;  %v4417_v16 = vor.u32 %v3887_v30, %v3317_v22  ;;  %1688 = vmatpush.bf16.msrb.mxu3 %v555_v23  ;;  %v3895_v22 = vld [vmem:[#allocation2 + $0x54] sm:$0xf0]  ;;  %v3884_v23 = vld [vmem:[#allocation2 + $0x4] sm:$0xf] }
 0x197   :  { %1858 = vmatmul.bf16.vlgmr.msrb.gmra.mxu0 %v4428_v41  ;;  %v4453_v30 = vor.u32 %v3895_v22, %v3349_v29  ;;  %v4473_v29 = vor.u32 %v3899_v9, %v3365_v8  ;;  %v3888_v22 = vld [vmem:[#allocation2 + $0x24] sm:$0xf]  ;;  %v3413_v41 = vld [vmem:[#allocation2 + $0xc8] sm:$0xf] }
 0x198   :  { %1376 = vmatmul.bf16.gmra.mxu1 %v4401_v6  ;;  %5756 = vst [vmem:[#allocation28_spill] sm:$0xff] %v4417_v16  ;;  %v3921_v6 = vld [vmem:[#allocation2 + $0x12c] sm:$0xf] }
 0x199   :  { %1689 = vmatmul.bf16.vlgmr.msrb.gmra.mxu3 %v4417_v16  ;;  %5764 = vst [vmem:[#allocation36_spill] sm:$0xff] %v4453_v30  ;;  %v3942_v16 = vld [vmem:[#allocation2 + $0x1cc] sm:$0xf0] }
 0x19a   :  { %1518 = vmatpush.bf16.msrb.mxu2 %v548_v18  ;;  %v3789_v18 = vld [vmem:[#allocation2 + $0x3c0] sm:$0xf]  ;;  %5768 = vst [vmem:[#allocation40_spill] sm:$0xff] %v4473_v29 }
 0x19b   :  { %v4422_v39 = vor.u32 %v4006_v26, %v3789_v18  ;;  %v3311_v18 = vld [vmem:[#allocation2 + $0x10] sm:$0xf0] }
 0x19c   :  { %v4460_v40 = vor.u32 %v3884_v23, %v3311_v18  ;;  %v3327_v23 = vld [vmem:[#allocation2 + $0x30] sm:$0xf0] }
 0x19d   :  { %5757 = vst [vmem:[#allocation29_spill] sm:$0xff] %v4422_v39  ;;  %v4480_v53 = vor.u32 %v3888_v22, %v3327_v23  ;;  %v3892_v23 = vld [vmem:[#allocation2 + $0x44] sm:$0xf] }
 0x19e   :  { %1519 = vmatpush.bf16.msrb.mxu2 %v547_v34  ;;  %v3421_v34 = vld [vmem:[#allocation2 + $0xe0] sm:$0xf]  ;;  %5765 = vst [vmem:[#allocation37_spill] sm:$0xff] %v4460_v40 }
 0x19f   :  { %v4424_v19 = vor.u32 %v3914_v38, %v3421_v34  ;;  %v3453_v38 = vld [vmem:[#allocation2 + $0x120] sm:$0xf]  ;;  %5770 = vst [vmem:[#allocation42_spill] sm:$0xff] %v4480_v53 }
 0x1a0   :  { %v4462_v45 = vor.u32 %v3922_v25, %v3453_v38  ;;  %v3469_v25 = vld [vmem:[#allocation2 + $0x140] sm:$0xf] }
 0x1a1   :  { %1471 = vmatmul.bf16.gmra.mxu2 %v4359_v4  ;;  %5758 = vst [vmem:[#allocation30_spill] sm:$0xff] %v4424_v19 }
 0x1a2   :  { %5766 = vst [vmem:[#allocation38_spill] sm:$0xff] %v4462_v45 }
 0x1a4   :  { %v4365_v27 = vpop.f32.mrf.mxu2 }
 0x1a7   :  { %1863 = vmatmul.bf16.gmra.mxu0 %v4446_v13 }
 0x1a8   :  { %1381 = vmatmul.bf16.gmra.mxu1 %v4411_v21  ;;  %v3447_v21 = vld [vmem:[#allocation2 + $0x118] sm:$0xf0] }
 0x1a9   :  { %1694 = vmatmul.bf16.gmra.mxu3 %v4433_v48  ;;  %v3429_v48 = vld [vmem:[#allocation2 + $0xe8] sm:$0xf] }
 0x1ac   :  { %v4367_v32 = vpop.f32.mrf.mxu2 }
 0x1b1   :  { %1476 = vmatmul.bf16.gmra.mxu2 %v4369_v11 }
 0x1b4   :  { %v4375_v42 = vpop.f32.mrf.mxu2 }
 0x1b7   :  { %1868 = vmatmul.bf16.gmra.mxu0 %v4466_v54  ;;  %v3399_v54 = vld [vmem:[#allocation2 + $0xb8] sm:$0xf0] }
 0x1b8   :  { %1386 = vmatmul.bf16.gmra.mxu1 %v4424_v19 }
 0x1b9   :  { %1699 = vmatmul.bf16.gmra.mxu3 %v4453_v30  ;;  %v3415_v30 = vld [vmem:[#allocation2 + $0xd8] sm:$0xf0] }
 0x1bc   :  { %v4377_v46 = vpop.f32.mrf.mxu2 }
 0x1c1   :  { %1481 = vmatmul.bf16.gmra.mxu2 %v4379_v49  ;;  %v3903_v49 = vld [vmem:[#allocation2 + $0x94] sm:$0xf0] }
 0x1c4   :  { %v4385_v52 = vpop.f32.mrf.mxu2 }
 0x1c5   :  { %v4438_v57 = vpop.f32.mrf.mxu1 }
 0x1c8   :  { %1391 = vmatmul.bf16.gmra.mxu1 %v4442_v2  ;;  %v3407_v2 = vld [vmem:[#allocation2 + $0xd0] sm:$0xf0] }
 0x1c9   :  { %1704 = vmatmul.bf16.gmra.mxu3 %v4473_v29  ;;  %v3909_v29 = vld [vmem:[#allocation2 + $0xcc] sm:$0xf] }
 0x1cc   :  { %v4387_v55 = vpop.f32.mrf.mxu2 }
 0x1cd   :  { %v4451_v20 = vpop.f32.mrf.mxu1 }
 0x1d1   :  { %1486 = vmatmul.bf16.gmra.mxu2 %v4389_v59  ;;  %v3381_v59 = vld [vmem:[#allocation2 + $0x88] sm:$0xf] }
 0x1d2   :  { %v4493_v22 = vor.u32 %v3903_v49, %v3381_v59  ;;  %v4506_v49 = vor.u32 %v3901_v5, %v3383_v58  ;;  %v3501_v58 = vld [vmem:[#allocation2 + $0x180] sm:$0xf]  ;;  %v3934_v5 = vld [vmem:[#allocation2 + $0x18c] sm:$0xf0] }
 0x1d4   :  { %v4395_v61 = vpop.f32.mrf.mxu2  ;;  %5774 = vst [vmem:[#allocation46_spill] sm:$0xff] %v4493_v22 }
 0x1d5   :  { %v4458_v34 = vpop.f32.mrf.mxu1  ;;  %5778 = vst [vmem:[#allocation50_spill] sm:$0xff] %v4506_v49 }
 0x1d8   :  { %1396 = vmatmul.bf16.gmra.mxu1 %v4462_v45  ;;  %v3431_v45 = vld [vmem:[#allocation2 + $0xf8] sm:$0xf0] }
 0x1d9   :  { %1709 = vmatmul.bf16.gmra.mxu3 %v4493_v22 }
 0x1dc   :  { %v4397_v0 = vpop.f32.mrf.mxu2 }
 0x1dd   :  { %v4471_v63 = vpop.f32.mrf.mxu1 }
 0x1e1   :  { %1491 = vmatmul.bf16.gmra.mxu2 %v4399_v3 }
 0x1e4   :  { %v4405_v7 = vpop.f32.mrf.mxu2 }
 0x1e5   :  { %v4478_v38 = vpop.f32.mrf.mxu1 }
 0x1ec   :  { %v4407_v12 = vpop.f32.mrf.mxu2 }
 0x1ed   :  { %v4491_v3 = vpop.f32.mrf.mxu1 }
 0x1f1   :  { %1496 = vmatmul.bf16.gmra.mxu2 %v4409_v15  ;;  %v3367_v15 = vld [vmem:[#allocation2 + $0x78] sm:$0xf0] }
 0x1f4   :  { %v4415_v28 = vpop.f32.mrf.mxu2 }
 0x1f5   :  { %v4498_v11 = vpop.f32.mrf.mxu1 }
 0x1fc   :  { %v4420_v33 = vpop.f32.mrf.mxu2 }
 0x1fd   :  { %v4511_v51 = vpop.f32.mrf.mxu1 }
 0x201   :  { %1501 = vmatmul.bf16.gmra.mxu2 %v4422_v39  ;;  %v3897_v39 = vld [vmem:[#allocation2 + $0x6c] sm:$0xf] }
 0x202   :  { %v4486_v8 = vor.u32 %v3897_v39, %v3367_v15  ;;  %v3485_v15 = vld [vmem:[#allocation2 + $0x160] sm:$0xf]  ;;  %v3930_v39 = vld [vmem:[#allocation2 + $0x16c] sm:$0xf0] }
 0x203   :  { %v4502_v35 = vor.u32 %v3930_v39, %v3485_v15  ;;  %v3359_v15 = vld [vmem:[#allocation2 + $0x70] sm:$0xf0] }
 0x204   :  { %v4431_v43 = vpop.f32.mrf.mxu2  ;;  %5772 = vst [vmem:[#allocation44_spill] sm:$0xff] %v4486_v8  ;;  %1873 = vmatmul.bf16.gmra.mxu0 %v4486_v8  ;;  %v3905_v8 = vld [vmem:[#allocation2 + $0xac] sm:$0xf] }
 0x205   :  { %5777 = vst [vmem:[#allocation49_spill] sm:$0xff] %v4502_v35  ;;  %v4518_v31 = vpop.f32.mrf.mxu1 }
 0x20c   :  { %v4436_v56 = vpop.f32.mrf.mxu2 }
 0x20d   :  { %v4531_v13 = vpop.f32.mrf.mxu1 }
 0x211   :  { %1506 = vmatmul.bf16.gmra.mxu2 %v4440_v1  ;;  %v4482_v1 = vor.u32 %v3926_v47, %v3469_v25  ;;  %v3343_v25 = vld [vmem:[#allocation2 + $0x50] sm:$0xf0] }
 0x212   :  { %v4500_v4 = vor.u32 %v3892_v23, %v3343_v25  ;;  %v4513_v23 = vor.u32 %v3907_v37, %v3397_v44  ;;  %v3896_v25 = vld [vmem:[#allocation2 + $0x64] sm:$0xf]  ;;  %v4526_v37 = vor.u32 %v3905_v8, %v3399_v54  ;;  %v3517_v54 = vld [vmem:[#allocation2 + $0x1a0] sm:$0xf]  ;;  %v3938_v8 = vld [vmem:[#allocation2 + $0x1ac] sm:$0xf0] }
 0x213   :  { %5771 = vst [vmem:[#allocation43_spill] sm:$0xff] %v4482_v1  ;;  %1401 = vmatmul.bf16.gmra.mxu1 %v4482_v1  ;;  %v4520_v24 = vor.u32 %v3896_v25, %v3359_v15  ;;  %v3900_v15 = vld [vmem:[#allocation2 + $0x84] sm:$0xf]  ;;  %v3913_v1 = vld [vmem:[#allocation2 + $0xec] sm:$0xf] }
 0x214   :  { %v4449_v14 = vpop.f32.mrf.mxu2  ;;  %5776 = vst [vmem:[#allocation48_spill] sm:$0xff] %v4500_v4  ;;  %1878 = vmatmul.bf16.gmra.mxu0 %v4506_v49  ;;  %1714 = vmatmul.bf16.gmra.mxu3 %v4513_v23  ;;  %v4522_v49 = vor.u32 %v3934_v5, %v3501_v58  ;;  %v3375_v58 = vld [vmem:[#allocation2 + $0x90] sm:$0xf0] }
 0x215   :  { %5780 = vst [vmem:[#allocation52_spill] sm:$0xff] %v4513_v23  ;;  %v3911_v23 = vld [vmem:[#allocation2 + $0xd4] sm:$0xf0]  ;;  %v4540_v22 = vor.u32 %v3900_v15, %v3375_v58  ;;  %v3904_v58 = vld [vmem:[#allocation2 + $0xa4] sm:$0xf] }
 0x216   :  { %5782 = vst [vmem:[#allocation54_spill] sm:$0xff] %v4520_v24  ;;  %v4533_v25 = vor.u32 %v3911_v23, %v3413_v41  ;;  %v4546_v41 = vor.u32 %v3909_v29, %v3415_v30 }
 0x217   :  { %5783 = vst [vmem:[#allocation55_spill] sm:$0xff] %v4522_v49 }
 0x218   :  { %5784 = vst [vmem:[#allocation56_spill] sm:$0xff] %v4526_v37 }
 0x219   :  { %5786 = vst [vmem:[#allocation58_spill] sm:$0xff] %v4533_v25 }
 0x21a   :  { %5788 = vst [vmem:[#allocation60_spill] sm:$0xff] %v4540_v22 }
 0x21b   :  { %5790 = vst [vmem:[#allocation62_spill] sm:$0xff] %v4546_v41 }
 0x21c   :  { %v4456_v26 = vpop.f32.mrf.mxu2 }
 0x221   :  { %1520 = vmatmul.bf16.vlgmr.msrb.gmra.mxu2 %v4460_v40  ;;  %v3493_v40 = vld [vmem:[#allocation2 + $0x168] sm:$0xf] }
 0x223   :  { %1406 = vmatmul.bf16.gmra.mxu1 %v4502_v35  ;;  %v3915_v35 = vld [vmem:[#allocation2 + $0xf4] sm:$0xf0] }
 0x224   :  { %v4469_v62 = vpop.f32.mrf.mxu2  ;;  %1883 = vmatmul.bf16.gmra.mxu0 %v4526_v37  ;;  %1719 = vmatmul.bf16.gmra.mxu3 %v4533_v25  ;;  %v4542_v37 = vor.u32 %v3938_v8, %v3517_v54  ;;  %v4553_v15 = vor.u32 %v3915_v35, %v3429_v48  ;;  %v3391_v54 = vld [vmem:[#allocation2 + $0xb0] sm:$0xf0]  ;;  %v4566_v35 = vor.u32 %v3913_v1, %v3431_v45 }
 0x225   :  { %v4558_v30 = vor.u32 %v3904_v58, %v3391_v54  ;;  %v4019_v58 = vld [vmem:[%s5626_s4 + $0x38] sm:$0xff]  ;;  %v4018_v1 = vld [vmem:[%s5626_s4 + $0x30] sm:$0xff] }
 0x226   :  { %5789 = vst [vmem:[#allocation61_spill] sm:$0xff] %v4542_v37  ;;  %2179 = vmatpush.bf16.msrb.mxu1 %v4019_v58 }
 0x227   :  { %5792 = vst [vmem:[#allocation64_spill] sm:$0xff] %v4553_v15 }
 0x228   :  { %5794 = vst [vmem:[#allocation66_spill] sm:$0xff] %v4558_v30 }
 0x229   :  { %5796 = vst [vmem:[#allocation68_spill] sm:$0xff] %v4566_v35 }
 0x22a   :  { %2180 = vmatpush.bf16.msrb.mxu1 %v4018_v1 }
 0x22c   :  { %v4476_v18 = vpop.f32.mrf.mxu2 }
 0x22d   :  { %5769 = vst [vmem:[#allocation41_spill] sm:$0xff] %v4476_v18  ;;  %v3495_v18 = vld [vmem:[#allocation2 + $0x178] sm:$0xf0] }
 0x231   :  { %1525 = vmatmul.bf16.gmra.mxu2 %v4480_v53 }
 0x233   :  { %1411 = vmatmul.bf16.gmra.mxu1 %v4522_v49  ;;  %v4538_v49 = vpop.f32.mrf.mxu1 }
 0x234   :  { %v4489_v9 = vpop.f32.mrf.mxu2  ;;  %1888 = vmatmul.bf16.gmra.mxu0 %v4546_v41  ;;  %1724 = vmatmul.bf16.gmra.mxu3 %v4553_v15  ;;  %v3908_v15 = vld [vmem:[#allocation2 + $0xc4] sm:$0xf] }
 0x235   :  { %5773 = vst [vmem:[#allocation45_spill] sm:$0xff] %v4489_v9  ;;  %v4584_v19 = vor.u32 %v3908_v15, %v3407_v2  ;;  %v4016_v15 = vld [vmem:[%s5626_s4 + $0x20] sm:$0xff] }
 0x237   :  { %5800 = vst [vmem:[#allocation72_spill] sm:$0xff] %v4584_v19 }
 0x23b   :  { %v4551_v25 = vpop.f32.mrf.mxu1 }
 0x23c   :  { %v4496_v47 = vpop.f32.mrf.mxu2 }
 0x23d   :  { %5775 = vst [vmem:[#allocation47_spill] sm:$0xff] %v4496_v47 }
 0x241   :  { %1530 = vmatmul.bf16.gmra.mxu2 %v4500_v4  ;;  %v3463_v4 = vld [vmem:[#allocation2 + $0x138] sm:$0xf0] }
 0x243   :  { %1416 = vmatmul.bf16.gmra.mxu1 %v4542_v37  ;;  %v3533_v37 = vld [vmem:[#allocation2 + $0x1c0] sm:$0xf]  ;;  %v4562_v41 = vpop.f32.mrf.mxu1 }
 0x244   :  { %v4509_v59 = vpop.f32.mrf.mxu2  ;;  %v4560_v29 = vor.u32 %v3942_v16, %v3533_v37  ;;  %1893 = vmatmul.bf16.gmra.mxu0 %v4566_v35  ;;  %v3445_v16 = vld [vmem:[#allocation2 + $0x108] sm:$0xf]  ;;  %v3919_v37 = vld [vmem:[#allocation2 + $0x114] sm:$0xf0]  ;;  %v3549_v35 = vld [vmem:[#allocation2 + $0x1e0] sm:$0xf] }
 0x245   :  { %5779 = vst [vmem:[#allocation51_spill] sm:$0xff] %v4509_v59  ;;  %v4574_v54 = vor.u32 %v3919_v37, %v3445_v16  ;;  %v4017_v16 = vld [vmem:[%s5626_s4 + $0x28] sm:$0xff]  ;;  %v4591_v37 = vpop.f32.mrf.mxu3 }
 0x246   :  { %5795 = vst [vmem:[#allocation67_spill] sm:$0xff] %v4560_v29  ;;  %2181 = vmatpush.bf16.msrb.mxu1 %v4017_v16  ;;  %v4015_v16 = vld [vmem:[%s5626_s4 + $0x18] sm:$0xff] }
 0x247   :  { %5798 = vst [vmem:[#allocation70_spill] sm:$0xff] %v4574_v54  ;;  %1729 = vmatmul.bf16.gmra.mxu3 %v4574_v54  ;;  %v3917_v54 = vld [vmem:[#allocation2 + $0x10c] sm:$0xf] }
 0x248   :  { %v4597_v1 = vor.u32 %v3917_v54, %v3447_v21  ;;  %v3461_v21 = vld [vmem:[#allocation2 + $0x128] sm:$0xf]  ;;  %v3923_v54 = vld [vmem:[#allocation2 + $0x134] sm:$0xf0] }
 0x24a   :  { %5802 = vst [vmem:[#allocation74_spill] sm:$0xff] %v4597_v1  ;;  %2182 = vmatpush.bf16.msrb.mxu1 %v4016_v15 }
 0x24c   :  { %v4516_v39 = vpop.f32.mrf.mxu2 }
 0x24d   :  { %5781 = vst [vmem:[#allocation53_spill] sm:$0xff] %v4516_v39  ;;  %v3455_v39 = vld [vmem:[#allocation2 + $0x130] sm:$0xf0] }
 0x24e   :  { %2183 = vmatpush.bf16.msrb.mxu1 %v4015_v16 }
 0x251   :  { %1535 = vmatmul.bf16.gmra.mxu2 %v4520_v24  ;;  %v3912_v24 = vld [vmem:[#allocation2 + $0xe4] sm:$0xf] }
 0x253   :  { %1421 = vmatmul.bf16.gmra.mxu1 %v4560_v29  ;;  %v4576_v29 = vpop.f32.mrf.mxu1 }
 0x254   :  { %v4529_v44 = vpop.f32.mrf.mxu2  ;;  %1898 = vmatmul.bf16.gmra.mxu0 %v4597_v1  ;;  %v4014_v1 = vld [vmem:[%s5626_s4 + $0x10] sm:$0xff] }
 0x255   :  { %5785 = vst [vmem:[#allocation57_spill] sm:$0xff] %v4529_v44  ;;  %2184 = vmatpush.bf16.msrb.mxu1 %v4014_v1  ;;  %v3479_v44 = vld [vmem:[#allocation2 + $0x158] sm:$0xf0] }
 0x25b   :  { %v4599_v2 = vpop.f32.mrf.mxu1 }
 0x25c   :  { %v4536_v5 = vpop.f32.mrf.mxu2 }
 0x25d   :  { %5787 = vst [vmem:[#allocation59_spill] sm:$0xff] %v4536_v5  ;;  %v3925_v5 = vld [vmem:[#allocation2 + $0x14c] sm:$0xf] }
 0x261   :  { %1540 = vmatmul.bf16.gmra.mxu2 %v4540_v22  ;;  %v4594_v22 = vpop.f32.mrf.mxu0 }
 0x264   :  { %v4549_v23 = vpop.f32.mrf.mxu2 }
 0x265   :  { %5791 = vst [vmem:[#allocation63_spill] sm:$0xff] %v4549_v23  ;;  %v3927_v23 = vld [vmem:[#allocation2 + $0x154] sm:$0xf0] }
 0x26c   :  { %v4556_v8 = vpop.f32.mrf.mxu2 }
 0x26d   :  { %5793 = vst [vmem:[#allocation65_spill] sm:$0xff] %v4556_v8  ;;  %v3477_v8 = vld [vmem:[#allocation2 + $0x148] sm:$0xf] }
 0x271   :  { %1545 = vmatmul.bf16.gmra.mxu2 %v4558_v30  ;;  %v3946_v30 = vld [vmem:[#allocation2 + $0x1ec] sm:$0xf0] }
 0x272   :  { %v4586_v58 = vor.u32 %v3946_v30, %v3549_v35  ;;  %v4607_v35 = vpop.f32.mrf.mxu3 }
 0x274   :  { %v4569_v48 = vpop.f32.mrf.mxu2  ;;  %5801 = vst [vmem:[#allocation73_spill] sm:$0xff] %v4586_v58  ;;  %1426 = vmatmul.bf16.gmra.mxu1 %v4586_v58  ;;  %v4612_v58 = vpop.f32.mrf.mxu0 }
 0x275   :  { %5797 = vst [vmem:[#allocation69_spill] sm:$0xff] %v4569_v48 }
 0x27a   :  { %v4626_v16 = vpop.f32.mrf.mxu3 }
 0x27c   :  { %v4582_v45 = vpop.f32.mrf.mxu2 }
 0x27d   :  { %5799 = vst [vmem:[#allocation71_spill] sm:$0xff] %v4582_v45  ;;  %v3423_v45 = vld [vmem:[#allocation2 + $0xf0] sm:$0xf0] }
 0x27e   :  { %v4624_v48 = vor.u32 %v3912_v24, %v3423_v45  ;;  %v4012_v24 = vld [vmem:[%s5626_s4] sm:$0xff] }
 0x280   :  { %5806 = vst [vmem:[#allocation78_spill] sm:$0xff] %v4624_v48 }
 0x281   :  { %1550 = vmatmul.bf16.gmra.mxu2 %v4584_v19  ;;  %v4614_v19 = vor.u32 %v3923_v54, %v3461_v21  ;;  %v4013_v21 = vld [vmem:[%s5626_s4 + $0x8] sm:$0xff]  ;;  %v4631_v54 = vpop.f32.mrf.mxu0 }
 0x282   :  { %2185 = vmatpush.bf16.msrb.mxu1 %v4013_v21 }
 0x283   :  { %5804 = vst [vmem:[#allocation76_spill] sm:$0xff] %v4614_v19  ;;  %1734 = vmatmul.bf16.gmra.mxu3 %v4614_v19  ;;  %v4634_v19 = vor.u32 %v3921_v6, %v3463_v4  ;;  %v3916_v4 = vld [vmem:[#allocation2 + $0x104] sm:$0xf]  ;;  %v3439_v6 = vld [vmem:[#allocation2 + $0x110] sm:$0xf0] }
 0x284   :  { %v4605_v30 = vpop.f32.mrf.mxu2 }
 0x285   :  { %5803 = vst [vmem:[#allocation75_spill] sm:$0xff] %v4605_v30  ;;  %v4622_v30 = vpop.f32.mrf.mxu1  ;;  %1903 = vmatmul.bf16.gmra.mxu0 %v4634_v19 }
 0x286   :  { %5807 = vst [vmem:[#allocation79_spill] sm:$0xff] %v4634_v19  ;;  %2186 = vmatpush.bf16.msrb.mxu1 %v4012_v24  ;;  %v4653_v19 = vor.u32 %v3916_v4, %v3439_v6 }
 0x288   :  { %5811 = vst [vmem:[#allocation83_spill] sm:$0xff] %v4653_v19 }
 0x289   :  { %v4646_v21 = vpop.f32.mrf.mxu0 }
 0x28c   :  { %v4620_v15 = vpop.f32.mrf.mxu2 }
 0x28d   :  { %5805 = vst [vmem:[#allocation77_spill] sm:$0xff] %v4620_v15  ;;  %v4642_v1 = vpop.f32.mrf.mxu1  ;;  %v4644_v15 = vpop.f32.mrf.mxu3 }
 0x291   :  { %1555 = vmatmul.bf16.gmra.mxu2 %v4624_v48  ;;  %v4648_v48 = vor.u32 %v3927_v23, %v3477_v8  ;;  %v4659_v53 = vpop.f32.mrf.mxu0  ;;  %v4662_v23 = vor.u32 %v3925_v5, %v3479_v44  ;;  %v4667_v8 = vld [vmem:[%s5625_s3] ss:$0 sm:$0xff]  ;;  %v3920_v5 = vld [vmem:[#allocation2 + $0x124] sm:$0xf] }
 0x292   :  { %v1353_v6 = vadd.f32 %v4667_v8, %v4438_v57 }
 0x293   :  { %5809 = vst [vmem:[#allocation81_spill] sm:$0xff] %v4648_v48  ;;  %1739 = vmatmul.bf16.gmra.mxu3 %v4648_v48 }
 0x294   :  { %v4640_v45 = vpop.f32.mrf.mxu2  ;;  %5812 = vst [vmem:[#allocation84_spill] sm:$0xff] %v4662_v23 }
 0x295   :  { %5808 = vst [vmem:[#allocation80_spill] sm:$0xff] %v4640_v45  ;;  %v4655_v45 = vpop.f32.mrf.mxu3  ;;  %v4657_v24 = vpop.f32.mrf.mxu1  ;;  %1908 = vmatmul.bf16.gmra.mxu0 %v4662_v23  ;;  %v1355_v23 = vadd.f32 %v4667_v8, %v4451_v20 }
 0x299   :  { %v4674_v50 = vpop.f32.mrf.mxu0 }
 0x29c   :  { %v4651_v60 = vpop.f32.mrf.mxu2 }
 0x29d   :  { %5810 = vst [vmem:[#allocation82_spill] sm:$0xff] %v4651_v60  ;;  %v4672_v48 = vpop.f32.mrf.mxu3  ;;  %v4678_v59 = vpop.f32.mrf.mxu1 }
 0x2a1   :  { %1560 = vmatmul.bf16.gmra.mxu2 %v4653_v19  ;;  %v3931_v19 = vld [vmem:[#allocation2 + $0x174] sm:$0xf0]  ;;  %v4690_v9 = vpop.f32.mrf.mxu0 }
 0x2a2   :  { %v4676_v44 = vor.u32 %v3931_v19, %v3493_v40 }
 0x2a4   :  { %v1521_v4 = vpop.f32.mrf.mxu2  ;;  %5813 = vst [vmem:[#allocation85_spill] sm:$0xff] %v4676_v44  ;;  %1744 = vmatmul.bf16.gmra.mxu3 %v4676_v44  ;;  %v3933_v44 = vld [vmem:[#allocation2 + $0x18c] sm:$0xf] }
 0x2a5   :  { %v1522_v60 = vadd.f32 %v1521_v4, %v1353_v6  ;;  %v4684_v4 = vor.u32 %v3920_v5, %v3455_v39  ;;  %v4686_v6 = vpop.f32.mrf.mxu3  ;;  %v4697_v5 = vpop.f32.mrf.mxu1 }
 0x2a7   :  { %v1691_v17 = vadd.f32 %v4591_v37, %v1522_v60  ;;  %v4694_v60 = vor.u32 %v3929_v10, %v3495_v18  ;;  %v3935_v10 = vld [vmem:[#allocation2 + $0x194] sm:$0xf0] }
 0x2a9   :  { %v1860_v19 = vadd.f32 %v4594_v22, %v1691_v17  ;;  %5814 = vst [vmem:[#allocation86_spill] sm:$0xff] %v4694_v60  ;;  %1913 = vmatmul.bf16.gmra.mxu0 %v4694_v60  ;;  %v1358_v17 = vadd.f32 %v4667_v8, %v4458_v34 }
 0x2ab   :  { %v2019_v37 = vmax.f32 %v1860_v19, 0.0  ;;  %v3924_v19 = vld [vmem:[#allocation2 + $0x144] sm:$0xf] }
 0x2ac   :  { %v1523_v57 = vpop.f32.mrf.mxu2 }
 0x2ad   :  { %v1524_v47 = vadd.f32 %v1523_v57, %v1355_v23  ;;  %v3509_v57 = vld [vmem:[#allocation2 + $0x188] sm:$0xf] }
 0x2ae   :  { %v4705_v18 = vor.u32 %v3935_v10, %v3509_v57 }
 0x2af   :  { %v1693_v40 = vadd.f32 %v4607_v35, %v1524_v47  ;;  %v4701_v47 = vpop.f32.mrf.mxu3 }
 0x2b0   :  { %5815 = vst [vmem:[#allocation87_spill] sm:$0xff] %v4705_v18 }
 0x2b1   :  { %v1862_v20 = vadd.f32 %v4612_v58, %v1693_v40  ;;  %1565 = vmatmul.bf16.gmra.mxu2 %v4684_v4  ;;  %v4703_v58 = vpop.f32.mrf.mxu0  ;;  %v3471_v40 = vld [vmem:[#allocation2 + $0x150] sm:$0xf0] }
 0x2b3   :  { %v2020_v23 = vmax.f32 %v1862_v20, 0.0  ;;  %v1360_v20 = vadd.f32 %v4667_v8, %v4471_v63  ;;  %v3511_v63 = vld [vmem:[#allocation2 + $0x198] sm:$0xf0] }
 0x2b4   :  { %v1526_v39 = vpop.f32.mrf.mxu2  ;;  %1749 = vmatmul.bf16.gmra.mxu3 %v4705_v18  ;;  %v3937_v18 = vld [vmem:[#allocation2 + $0x1ac] sm:$0xf] }
 0x2b5   :  { %v2083_v22 = vpack.c.bf16 %v2020_v23, %v2019_v37  ;;  %v1527_v35 = vadd.f32 %v1526_v39, %v1358_v17  ;;  %v4711_v23 = vor.u32 %v3924_v19, %v3471_v40  ;;  %v4713_v39 = vpop.f32.mrf.mxu1 }
 0x2b7   :  { %2187 = vmatmul.bf16.vlgmr.msrb.gmra.mxu1 %v2083_v22  ;;  %v1696_v60 = vadd.f32 %v4626_v16, %v1527_v35  ;;  %5816 = vst [vmem:[#allocation88_spill] sm:$0xff] %v4711_v23  ;;  %v4715_v17 = vpop.f32.mrf.mxu3  ;;  %v4723_v35 = vor.u32 %v3933_v44, %v3511_v63  ;;  %v3939_v44 = vld [vmem:[#allocation2 + $0x1b4] sm:$0xf0] }
 0x2b9   :  { %v1865_v22 = vadd.f32 %v4631_v54, %v1696_v60  ;;  %v4719_v10 = vpop.f32.mrf.mxu0  ;;  %5817 = vst [vmem:[#allocation89_spill] sm:$0xff] %v4723_v35  ;;  %1918 = vmatmul.bf16.gmra.mxu0 %v4723_v35  ;;  %v1363_v54 = vadd.f32 %v4667_v8, %v4478_v38  ;;  %v1365_v35 = vadd.f32 %v4667_v8, %v4491_v3 }
 0x2bb   :  { %v2021_v19 = vmax.f32 %v1865_v22, 0.0  ;;  %v3928_v22 = vld [vmem:[#allocation2 + $0x164] sm:$0xf] }
 0x2bc   :  { %v1528_v34 = vpop.f32.mrf.mxu2 }
 0x2bd   :  { %v1529_v37 = vadd.f32 %v1528_v34, %v1360_v20 }
 0x2bf   :  { %v1698_v57 = vadd.f32 %v4644_v15, %v1529_v37  ;;  %v4728_v15 = vpop.f32.mrf.mxu3  ;;  %v4730_v37 = vpop.f32.mrf.mxu1 }
 0x2c1   :  { %v1867_v16 = vadd.f32 %v4646_v21, %v1698_v57  ;;  %1570 = vmatmul.bf16.gmra.mxu2 %v4711_v23  ;;  %v4732_v21 = vpop.f32.mrf.mxu0  ;;  %v3525_v57 = vld [vmem:[#allocation2 + $0x1a8] sm:$0xf]  ;;  %v3527_v23 = vld [vmem:[#allocation2 + $0x1b8] sm:$0xf0] }
 0x2c2   :  { %v4734_v63 = vor.u32 %v3939_v44, %v3525_v57 }
 0x2c3   :  { %v2022_v40 = vmax.f32 %v1867_v16, 0.0  ;;  %v3487_v16 = vld [vmem:[#allocation2 + $0x170] sm:$0xf0] }
 0x2c4   :  { %v1531_v20 = vpop.f32.mrf.mxu2  ;;  %5818 = vst [vmem:[#allocation90_spill] sm:$0xff] %v4734_v63  ;;  %1754 = vmatmul.bf16.gmra.mxu3 %v4734_v63  ;;  %v3941_v63 = vld [vmem:[#allocation2 + $0x1cc] sm:$0xf] }
 0x2c5   :  { %v2084_v60 = vpack.c.bf16 %v2022_v40, %v2021_v19  ;;  %v1532_v34 = vadd.f32 %v1531_v20, %v1363_v54  ;;  %v4740_v20 = vor.u32 %v3928_v22, %v3487_v16 }
 0x2c7   :  { %2192 = vmatmul.bf16.gmra.mxu1 %v2084_v60  ;;  %v1701_v38 = vadd.f32 %v4655_v45, %v1532_v34  ;;  %v4742_v54 = vpop.f32.mrf.mxu3  ;;  %v4750_v45 = vor.u32 %v3937_v18, %v3527_v23  ;;  %v4752_v34 = vpop.f32.mrf.mxu1  ;;  %v3943_v18 = vld [vmem:[#allocation2 + $0x1d4] sm:$0xf0] }
 0x2c9   :  { %v1870_v60 = vadd.f32 %v4659_v53, %v1701_v38  ;;  %v4746_v44 = vpop.f32.mrf.mxu0  ;;  %5819 = vst [vmem:[#allocation91_spill] sm:$0xff] %v4750_v45  ;;  %1923 = vmatmul.bf16.gmra.mxu0 %v4750_v45  ;;  %v1368_v53 = vadd.f32 %v4667_v8, %v4498_v11 }
 0x2cc   :  { %v1533_v19 = vpop.f32.mrf.mxu2 }
 0x2cd   :  { %v1534_v40 = vadd.f32 %v1533_v19, %v1365_v35  ;;  %v2023_v35 = vmax.f32 %v1870_v60, 0.0  ;;  %v3503_v60 = vld [vmem:[#allocation2 + $0x190] sm:$0xf0] }
 0x2cf   :  { %v1703_v57 = vadd.f32 %v4672_v48, %v1534_v40  ;;  %v4757_v38 = vpop.f32.mrf.mxu3  ;;  %v3541_v40 = vld [vmem:[#allocation2 + $0x1c8] sm:$0xf] }
 0x2d0   :  { %v4761_v23 = vor.u32 %v3943_v18, %v3541_v40 }
 0x2d1   :  { %v1872_v3 = vadd.f32 %v4674_v50, %v1703_v57  ;;  %1575 = vmatmul.bf16.gmra.mxu2 %v4740_v20  ;;  %v4759_v50 = vpop.f32.mrf.mxu0  ;;  %v3932_v57 = vld [vmem:[#allocation2 + $0x184] sm:$0xf] }
 0x2d2   :  { %5820 = vst [vmem:[#allocation92_spill] sm:$0xff] %v4761_v23 }
 0x2d3   :  { %v2024_v22 = vmax.f32 %v1872_v3, 0.0  ;;  %v1370_v3 = vadd.f32 %v4667_v8, %v4511_v51  ;;  %v3543_v51 = vld [vmem:[#allocation2 + $0x1d8] sm:$0xf0] }
 0x2d4   :  { %v1536_v16 = vpop.f32.mrf.mxu2  ;;  %1759 = vmatmul.bf16.gmra.mxu3 %v4761_v23 }
 0x2d5   :  { %v2085_v48 = vpack.c.bf16 %v2024_v22, %v2023_v35  ;;  %v1537_v19 = vadd.f32 %v1536_v16, %v1368_v53  ;;  %v4767_v35 = vpop.f32.mrf.mxu1  ;;  %v4769_v16 = vor.u32 %v3932_v57, %v3503_v60 }
 0x2d7   :  { %2197 = vmatmul.bf16.gmra.mxu1 %v2085_v48  ;;  %v1706_v45 = vadd.f32 %v4686_v6, %v1537_v19  ;;  %5821 = vst [vmem:[#allocation93_spill] sm:$0xff] %v4769_v16  ;;  %v4771_v53 = vpop.f32.mrf.mxu3  ;;  %v4779_v19 = vor.u32 %v3941_v63, %v3543_v51  ;;  %v3947_v63 = vld [vmem:[#allocation2 + $0x1f4] sm:$0xf0]  ;;  %v3519_v51 = vld [vmem:[#allocation2 + $0x1b0] sm:$0xf0] }
 0x2d9   :  { %v1875_v48 = vadd.f32 %v4690_v9, %v1706_v45  ;;  %v4775_v18 = vpop.f32.mrf.mxu0  ;;  %5822 = vst [vmem:[#allocation94_spill] sm:$0xff] %v4779_v19  ;;  %1928 = vmatmul.bf16.gmra.mxu0 %v4779_v19  ;;  %v1373_v9 = vadd.f32 %v4667_v8, %v4518_v31 }
 0x2db   :  { %v2025_v23 = vmax.f32 %v1875_v48, 0.0  ;;  %v3936_v48 = vld [vmem:[#allocation2 + $0x1a4] sm:$0xf] }
 0x2dc   :  { %v1538_v11 = vpop.f32.mrf.mxu2  ;;  %v4796_v19 = vor.u32 %v3936_v48, %v3519_v51 }
 0x2dd   :  { %v1539_v22 = vadd.f32 %v1538_v11, %v1370_v3 }
 0x2de   :  { %5824 = vst [vmem:[#allocation96_spill] sm:$0xff] %v4796_v19 }
 0x2df   :  { %v1708_v40 = vadd.f32 %v4701_v47, %v1539_v22  ;;  %v4784_v47 = vpop.f32.mrf.mxu1  ;;  %v4786_v60 = vpop.f32.mrf.mxu3  ;;  %v3557_v22 = vld [vmem:[#allocation2 + $0x1e8] sm:$0xf] }
 0x2e1   :  { %v1877_v6 = vadd.f32 %v4703_v58, %v1708_v40  ;;  %1580 = vmatmul.bf16.gmra.mxu2 %v4769_v16  ;;  %v4788_v58 = vpop.f32.mrf.mxu0  ;;  %v4790_v40 = vor.u32 %v3947_v63, %v3557_v22  ;;  %v3945_v16 = vld [vmem:[#allocation2 + $0x1ec] sm:$0xf] }
 0x2e3   :  { %v2026_v3 = vmax.f32 %v1877_v6, 0.0  ;;  %5823 = vst [vmem:[#allocation95_spill] sm:$0xff] %v4790_v40  ;;  %v1375_v6 = vadd.f32 %v4667_v8, %v4531_v13  ;;  %v3559_v13 = vld [vmem:[#allocation2 + $0x1f8] sm:$0xf0] }
 0x2e4   :  { %v1541_v57 = vpop.f32.mrf.mxu2  ;;  %1764 = vmatmul.bf16.gmra.mxu3 %v4790_v40 }
 0x2e5   :  { %v2086_v45 = vpack.c.bf16 %v2026_v3, %v2025_v23  ;;  %v1542_v11 = vadd.f32 %v1541_v57, %v1373_v9 }
 0x2e7   :  { %2202 = vmatmul.bf16.gmra.mxu1 %v2086_v45  ;;  %v1711_v31 = vadd.f32 %v4715_v17, %v1542_v11  ;;  %v4798_v57 = vpop.f32.mrf.mxu3  ;;  %v4802_v22 = vpop.f32.mrf.mxu1  ;;  %v4808_v11 = vor.u32 %v3945_v16, %v3559_v13  ;;  %v3535_v13 = vld [vmem:[#allocation2 + $0x1d0] sm:$0xf0] }
 0x2e9   :  { %v1880_v9 = vadd.f32 %v4719_v10, %v1711_v31  ;;  %v4804_v63 = vpop.f32.mrf.mxu0  ;;  %5825 = vst [vmem:[#allocation97_spill] sm:$0xff] %v4808_v11  ;;  %1933 = vmatmul.bf16.gmra.mxu0 %v4808_v11  ;;  %v1378_v10 = vadd.f32 %v4667_v8, %v4538_v49  ;;  %v3949_v11 = vld [vmem:[#allocation2 + $0x20c] sm:$0xf] }
 0x2eb   :  { %v2027_v48 = vmax.f32 %v1880_v9, 0.0  ;;  %v3940_v9 = vld [vmem:[#allocation2 + $0x1c4] sm:$0xf] }
 0x2ec   :  { %v1543_v23 = vpop.f32.mrf.mxu2 }
 0x2ed   :  { %v1544_v3 = vadd.f32 %v1543_v23, %v1375_v6 }
 0x2ef   :  { %v1713_v45 = vadd.f32 %v4728_v15, %v1544_v3  ;;  %v4813_v31 = vpop.f32.mrf.mxu3  ;;  %v4819_v16 = vpop.f32.mrf.mxu1 }
 0x2f1   :  { %v1882_v17 = vadd.f32 %v4732_v21, %v1713_v45  ;;  %1585 = vmatmul.bf16.gmra.mxu2 %v4796_v19  ;;  %v4815_v3 = vpop.f32.mrf.mxu0  ;;  %v3573_v21 = vld [vmem:[#allocation2 + $0x208] sm:$0xf]  ;;  %v3951_v45 = vld [vmem:[#allocation2 + $0x214] sm:$0xf0]  ;;  %v3575_v19 = vld [vmem:[#allocation2 + $0x218] sm:$0xf0] }
 0x2f2   :  { %v4817_v40 = vor.u32 %v3951_v45, %v3573_v21 }
 0x2f3   :  { %v2028_v51 = vmax.f32 %v1882_v17, 0.0  ;;  %v1380_v17 = vadd.f32 %v4667_v8, %v4551_v25 }
 0x2f4   :  { %v1546_v6 = vpop.f32.mrf.mxu2  ;;  %5826 = vst [vmem:[#allocation98_spill] sm:$0xff] %v4817_v40  ;;  %1769 = vmatmul.bf16.gmra.mxu3 %v4817_v40  ;;  %v3953_v40 = vld [vmem:[#allocation2 + $0x22c] sm:$0xf] }
 0x2f5   :  { %v2087_v15 = vpack.c.bf16 %v2028_v51, %v2027_v48  ;;  %v1547_v23 = vadd.f32 %v1546_v6, %v1378_v10  ;;  %v4825_v6 = vor.u32 %v3940_v9, %v3535_v13 }
 0x2f7   :  { %2207 = vmatmul.bf16.gmra.mxu1 %v2087_v15  ;;  %v1716_v49 = vadd.f32 %v4742_v54, %v1547_v23  ;;  %v4827_v10 = vpop.f32.mrf.mxu3  ;;  %v4835_v54 = vor.u32 %v3949_v11, %v3575_v19  ;;  %v4838_v9 = vpop.f32.mrf.mxu1  ;;  %v3955_v19 = vld [vmem:[#allocation2 + $0x234] sm:$0xf0] }
 0x2f9   :  { %v1885_v15 = vadd.f32 %v4746_v44, %v1716_v49  ;;  %v4831_v45 = vpop.f32.mrf.mxu0  ;;  %5827 = vst [vmem:[#allocation99_spill] sm:$0xff] %v4835_v54  ;;  %1938 = vmatmul.bf16.gmra.mxu0 %v4835_v54  ;;  %v1383_v44 = vadd.f32 %v4667_v8, %v4562_v41 }
 0x2fb   :  { %v2029_v23 = vmax.f32 %v1885_v15, 0.0  ;;  %v3944_v15 = vld [vmem:[#allocation2 + $0x1e4] sm:$0xf] }
 0x2fc   :  { %v1548_v48 = vpop.f32.mrf.mxu2 }
 0x2fd   :  { %v1549_v51 = vadd.f32 %v1548_v48, %v1380_v17 }
 0x2ff   :  { %v1718_v21 = vadd.f32 %v4757_v38, %v1549_v51  ;;  %v4842_v49 = vpop.f32.mrf.mxu3  ;;  %v3589_v51 = vld [vmem:[#allocation2 + $0x228] sm:$0xf] }
 0x300   :  { %v4846_v11 = vor.u32 %v3955_v19, %v3589_v51 }
 0x301   :  { %v1887_v25 = vadd.f32 %v4759_v50, %v1718_v21  ;;  %1590 = vmatmul.bf16.gmra.mxu2 %v4825_v6  ;;  %v4844_v50 = vpop.f32.mrf.mxu0  ;;  %v3551_v21 = vld [vmem:[#allocation2 + $0x1f0] sm:$0xf0] }
 0x302   :  { %5828 = vst [vmem:[#allocation100_spill] sm:$0xff] %v4846_v11 }
 0x303   :  { %v2030_v17 = vmax.f32 %v1887_v25, 0.0  ;;  %v1385_v25 = vadd.f32 %v4667_v8, %v4576_v29  ;;  %v3591_v29 = vld [vmem:[#allocation2 + $0x238] sm:$0xf0] }
 0x304   :  { %v1551_v13 = vpop.f32.mrf.mxu2  ;;  %1774 = vmatmul.bf16.gmra.mxu3 %v4846_v11  ;;  %v3957_v11 = vld [vmem:[#allocation2 + $0x24c] sm:$0xf] }
 0x305   :  { %v2088_v38 = vpack.c.bf16 %v2030_v17, %v2029_v23  ;;  %v1552_v48 = vadd.f32 %v1551_v13, %v1383_v44  ;;  %v4852_v17 = vor.u32 %v3944_v15, %v3551_v21  ;;  %v4854_v13 = vpop.f32.mrf.mxu1 }
 0x307   :  { %2212 = vmatmul.bf16.gmra.mxu1 %v2088_v38  ;;  %v1721_v54 = vadd.f32 %v4771_v53, %v1552_v48  ;;  %5829 = vst [vmem:[#allocation101_spill] sm:$0xff] %v4852_v17  ;;  %v4856_v44 = vpop.f32.mrf.mxu3  ;;  %v4864_v48 = vor.u32 %v3953_v40, %v3591_v29  ;;  %v3959_v40 = vld [vmem:[#allocation2 + $0x254] sm:$0xf0] }
 0x309   :  { %v1890_v38 = vadd.f32 %v4775_v18, %v1721_v54  ;;  %v4860_v19 = vpop.f32.mrf.mxu0  ;;  %5830 = vst [vmem:[#allocation102_spill] sm:$0xff] %v4864_v48  ;;  %1943 = vmatmul.bf16.gmra.mxu0 %v4864_v48  ;;  %v1388_v18 = vadd.f32 %v4667_v8, %v4599_v2  ;;  %v1390_v48 = vadd.f32 %v4667_v8, %v4622_v30 }
 0x30b   :  { %v2031_v15 = vmax.f32 %v1890_v38, 0.0  ;;  %v3948_v38 = vld [vmem:[#allocation2 + $0x204] sm:$0xf] }
 0x30c   :  { %v1553_v41 = vpop.f32.mrf.mxu2 }
 0x30d   :  { %v1554_v23 = vadd.f32 %v1553_v41, %v1385_v25 }
 0x30f   :  { %v1723_v51 = vadd.f32 %v4786_v60, %v1554_v23  ;;  %v4869_v60 = vpop.f32.mrf.mxu3  ;;  %v4871_v23 = vpop.f32.mrf.mxu1 }
 0x311   :  { %v1892_v53 = vadd.f32 %v4788_v58, %v1723_v51  ;;  %1595 = vmatmul.bf16.gmra.mxu2 %v4852_v17  ;;  %v4873_v58 = vpop.f32.mrf.mxu0  ;;  %v3605_v51 = vld [vmem:[#allocation2 + $0x248] sm:$0xf]  ;;  %v3607_v17 = vld [vmem:[#allocation2 + $0x258] sm:$0xf0] }
 0x312   :  { %v4875_v29 = vor.u32 %v3959_v40, %v3605_v51 }
 0x313   :  { %v2032_v21 = vmax.f32 %v1892_v53, 0.0  ;;  %v3567_v53 = vld [vmem:[#allocation2 + $0x210] sm:$0xf0] }
 0x314   :  { %v1556_v25 = vpop.f32.mrf.mxu2  ;;  %5831 = vst [vmem:[#allocation103_spill] sm:$0xff] %v4875_v29  ;;  %1779 = vmatmul.bf16.gmra.mxu3 %v4875_v29  ;;  %v3961_v29 = vld [vmem:[#allocation2 + $0x26c] sm:$0xf] }
 0x315   :  { %v2089_v54 = vpack.c.bf16 %v2032_v21, %v2031_v15  ;;  %v1557_v41 = vadd.f32 %v1556_v25, %v1388_v18  ;;  %v4881_v25 = vor.u32 %v3948_v38, %v3567_v53 }
 0x317   :  { %2217 = vmatmul.bf16.gmra.mxu1 %v2089_v54  ;;  %v1726_v2 = vadd.f32 %v4798_v57, %v1557_v41  ;;  %5832 = vst [vmem:[#allocation104_spill] sm:$0xff] %v4881_v25  ;;  %v4883_v18 = vpop.f32.mrf.mxu3  ;;  %v4891_v57 = vor.u32 %v3957_v11, %v3607_v17  ;;  %v4893_v41 = vpop.f32.mrf.mxu1  ;;  %v3963_v11 = vld [vmem:[#allocation2 + $0x274] sm:$0xf0] }
 0x319   :  { %v1895_v54 = vadd.f32 %v4804_v63, %v1726_v2  ;;  %v4887_v40 = vpop.f32.mrf.mxu0  ;;  %5833 = vst [vmem:[#allocation105_spill] sm:$0xff] %v4891_v57  ;;  %1948 = vmatmul.bf16.gmra.mxu0 %v4891_v57  ;;  %v1393_v63 = vadd.f32 %v4667_v8, %v4642_v1 }
 0x31c   :  { %v1558_v15 = vpop.f32.mrf.mxu2 }
 0x31d   :  { %v1559_v21 = vadd.f32 %v1558_v15, %v1390_v48  ;;  %v2033_v48 = vmax.f32 %v1895_v54, 0.0  ;;  %v3583_v54 = vld [vmem:[#allocation2 + $0x230] sm:$0xf0] }
 0x31f   :  { %v1728_v51 = vadd.f32 %v4813_v31, %v1559_v21  ;;  %v4898_v2 = vpop.f32.mrf.mxu3  ;;  %v3621_v21 = vld [vmem:[#allocation2 + $0x268] sm:$0xf]  ;;  %v4908_v1 = vpop.f32.mrf.mxu1 }
 0x320   :  { %v4902_v17 = vor.u32 %v3963_v11, %v3621_v21 }
 0x321   :  { %v1897_v30 = vadd.f32 %v4815_v3, %v1728_v51  ;;  %1600 = vmatmul.bf16.gmra.mxu2 %v4881_v25  ;;  %v4900_v3 = vpop.f32.mrf.mxu0  ;;  %v3952_v51 = vld [vmem:[#allocation2 + $0x224] sm:$0xf]  ;;  %v3735_v25 = vld [vmem:[#allocation2 + $0x358] sm:$0xf0] }
 0x322   :  { %5834 = vst [vmem:[#allocation106_spill] sm:$0xff] %v4902_v17 }
 0x323   :  { %v2034_v38 = vmax.f32 %v1897_v30, 0.0  ;;  %v1395_v30 = vadd.f32 %v4667_v8, %v4657_v24  ;;  %v3623_v24 = vld [vmem:[#allocation2 + $0x278] sm:$0xf0] }
 0x324   :  { %v1561_v53 = vpop.f32.mrf.mxu2  ;;  %1784 = vmatmul.bf16.gmra.mxu3 %v4902_v17 }
 0x325   :  { %v2090_v31 = vpack.c.bf16 %v2034_v38, %v2033_v48  ;;  %v1562_v15 = vadd.f32 %v1561_v53, %v1393_v63  ;;  %v4910_v53 = vor.u32 %v3952_v51, %v3583_v54 }
 0x327   :  { %2222 = vmatmul.bf16.gmra.mxu1 %v2090_v31  ;;  %v1731_v57 = vadd.f32 %v4827_v10, %v1562_v15  ;;  %5835 = vst [vmem:[#allocation107_spill] sm:$0xff] %v4910_v53  ;;  %v4912_v63 = vpop.f32.mrf.mxu3  ;;  %v4920_v15 = vor.u32 %v3961_v29, %v3623_v24  ;;  %v3967_v29 = vld [vmem:[#allocation2 + $0x294] sm:$0xf0]  ;;  %v3599_v24 = vld [vmem:[#allocation2 + $0x250] sm:$0xf0] }
 0x329   :  { %v1900_v31 = vadd.f32 %v4831_v45, %v1731_v57  ;;  %v4916_v11 = vpop.f32.mrf.mxu0  ;;  %5836 = vst [vmem:[#allocation108_spill] sm:$0xff] %v4920_v15  ;;  %1953 = vmatmul.bf16.gmra.mxu0 %v4920_v15  ;;  %v1398_v45 = vadd.f32 %v4667_v8, %v4678_v59 }
 0x32b   :  { %v2035_v17 = vmax.f32 %v1900_v31, 0.0  ;;  %v3956_v31 = vld [vmem:[#allocation2 + $0x244] sm:$0xf] }
 0x32c   :  { %v1563_v48 = vpop.f32.mrf.mxu2 }
 0x32d   :  { %v1564_v38 = vadd.f32 %v1563_v48, %v1395_v30 }
 0x32f   :  { %v1733_v21 = vadd.f32 %v4842_v49, %v1564_v38  ;;  %v4927_v57 = vpop.f32.mrf.mxu3  ;;  %v3637_v38 = vld [vmem:[#allocation2 + $0x288] sm:$0xf] }
 0x331   :  { %v1902_v10 = vadd.f32 %v4844_v50, %v1733_v21  ;;  %1605 = vmatmul.bf16.gmra.mxu2 %v4910_v53  ;;  %v4929_v50 = vpop.f32.mrf.mxu0  ;;  %v4931_v21 = vor.u32 %v3967_v29, %v3637_v38  ;;  %v3981_v53 = vld [vmem:[#allocation2 + $0x30c] sm:$0xf] }
 0x333   :  { %v2036_v30 = vmax.f32 %v1902_v10, 0.0  ;;  %5837 = vst [vmem:[#allocation109_spill] sm:$0xff] %v4931_v21  ;;  %v1400_v10 = vadd.f32 %v4667_v8, %v4697_v5 }
 0x334   :  { %v1566_v51 = vpop.f32.mrf.mxu2  ;;  %v4923_v54 = vpop.f32.mrf.mxu1  ;;  %1789 = vmatmul.bf16.gmra.mxu3 %v4931_v21 }
 0x335   :  { %v2091_v49 = vpack.c.bf16 %v2036_v30, %v2035_v17  ;;  %v1567_v48 = vadd.f32 %v1566_v51, %v1398_v45  ;;  %v4941_v45 = vor.u32 %v3956_v31, %v3599_v24 }
 0x337   :  { %2227 = vmatmul.bf16.gmra.mxu1 %v2091_v49  ;;  %v1736_v15 = vadd.f32 %v4856_v44, %v1567_v48  ;;  %5838 = vst [vmem:[#allocation110_spill] sm:$0xff] %v4941_v45  ;;  %v4943_v49 = vpop.f32.mrf.mxu3  ;;  %v3965_v44 = vld [vmem:[#allocation2 + $0x28c] sm:$0xf]  ;;  %v3639_v48 = vld [vmem:[#allocation2 + $0x298] sm:$0xf0] }
 0x339   :  { %v1905_v38 = vadd.f32 %v4860_v19, %v1736_v15  ;;  %v4947_v5 = vpop.f32.mrf.mxu0  ;;  %v1403_v19 = vadd.f32 %v4667_v8, %v4713_v39 }
 0x33c   :  { %v1568_v59 = vpop.f32.mrf.mxu2  ;;  %v4937_v17 = vpop.f32.mrf.mxu1 }
 0x33d   :  { %v1569_v30 = vadd.f32 %v1568_v59, %v1400_v10  ;;  %v4951_v10 = vor.u32 %v3965_v44, %v3639_v48  ;;  %v2037_v59 = vmax.f32 %v1905_v38, 0.0  ;;  %v3971_v44 = vld [vmem:[#allocation2 + $0x2b4] sm:$0xf0]  ;;  %v3615_v38 = vld [vmem:[#allocation2 + $0x270] sm:$0xf0] }
 0x33f   :  { %v1738_v29 = vadd.f32 %v4869_v60, %v1569_v30  ;;  %5839 = vst [vmem:[#allocation111_spill] sm:$0xff] %v4951_v10  ;;  %1958 = vmatmul.bf16.gmra.mxu0 %v4951_v10  ;;  %v4958_v15 = vpop.f32.mrf.mxu3  ;;  %v1405_v10 = vadd.f32 %v4667_v8, %v4730_v37 }
 0x341   :  { %v1907_v21 = vadd.f32 %v4873_v58, %v1738_v29  ;;  %1610 = vmatmul.bf16.gmra.mxu2 %v4941_v45  ;;  %v4960_v58 = vpop.f32.mrf.mxu0  ;;  %v3653_v29 = vld [vmem:[#allocation2 + $0x2a8] sm:$0xf] }
 0x342   :  { %v4962_v48 = vor.u32 %v3971_v44, %v3653_v29 }
 0x343   :  { %v2038_v51 = vmax.f32 %v1907_v21, 0.0  ;;  %v3960_v21 = vld [vmem:[#allocation2 + $0x264] sm:$0xf] }
 0x344   :  { %v1571_v31 = vpop.f32.mrf.mxu2  ;;  %v4954_v24 = vpop.f32.mrf.mxu1  ;;  %5840 = vst [vmem:[#allocation112_spill] sm:$0xff] %v4962_v48  ;;  %1794 = vmatmul.bf16.gmra.mxu3 %v4962_v48 }
 0x345   :  { %v2092_v60 = vpack.c.bf16 %v2038_v51, %v2037_v59  ;;  %v1572_v30 = vadd.f32 %v1571_v31, %v1403_v19  ;;  %v4972_v19 = vor.u32 %v3960_v21, %v3615_v38 }
 0x347   :  { %2232 = vmatmul.bf16.gmra.mxu1 %v2092_v60  ;;  %v1741_v45 = vadd.f32 %v4883_v18, %v1572_v30  ;;  %5841 = vst [vmem:[#allocation113_spill] sm:$0xff] %v4972_v19  ;;  %v4974_v60 = vpop.f32.mrf.mxu3  ;;  %v3969_v18 = vld [vmem:[#allocation2 + $0x2ac] sm:$0xf]  ;;  %v3655_v30 = vld [vmem:[#allocation2 + $0x2b8] sm:$0xf0] }
 0x349   :  { %v1910_v29 = vadd.f32 %v4887_v40, %v1741_v45  ;;  %v4978_v37 = vpop.f32.mrf.mxu0  ;;  %v1408_v40 = vadd.f32 %v4667_v8, %v4752_v34 }
 0x34c   :  { %v1573_v39 = vpop.f32.mrf.mxu2  ;;  %v4968_v51 = vpop.f32.mrf.mxu1 }
 0x34d   :  { %v1574_v59 = vadd.f32 %v1573_v39, %v1405_v10  ;;  %v4982_v10 = vor.u32 %v3969_v18, %v3655_v30  ;;  %v2039_v39 = vmax.f32 %v1910_v29, 0.0  ;;  %v3975_v18 = vld [vmem:[#allocation2 + $0x2d4] sm:$0xf0]  ;;  %v3631_v29 = vld [vmem:[#allocation2 + $0x290] sm:$0xf0] }
 0x34f   :  { %v1743_v44 = vadd.f32 %v4898_v2, %v1574_v59  ;;  %5842 = vst [vmem:[#allocation114_spill] sm:$0xff] %v4982_v10  ;;  %1963 = vmatmul.bf16.gmra.mxu0 %v4982_v10  ;;  %v4989_v45 = vpop.f32.mrf.mxu3  ;;  %v1410_v10 = vadd.f32 %v4667_v8, %v4767_v35 }
 0x351   :  { %v1912_v48 = vadd.f32 %v4900_v3, %v1743_v44  ;;  %1615 = vmatmul.bf16.gmra.mxu2 %v4972_v19  ;;  %v4991_v3 = vpop.f32.mrf.mxu0  ;;  %v3669_v44 = vld [vmem:[#allocation2 + $0x2c8] sm:$0xf] }
 0x352   :  { %v4993_v30 = vor.u32 %v3975_v18, %v3669_v44 }
 0x353   :  { %v2040_v31 = vmax.f32 %v1912_v48, 0.0  ;;  %v3964_v48 = vld [vmem:[#allocation2 + $0x284] sm:$0xf] }
 0x354   :  { %v1576_v21 = vpop.f32.mrf.mxu2  ;;  %v4985_v38 = vpop.f32.mrf.mxu1  ;;  %5843 = vst [vmem:[#allocation115_spill] sm:$0xff] %v4993_v30  ;;  %1799 = vmatmul.bf16.gmra.mxu3 %v4993_v30 }
 0x355   :  { %v2093_v2 = vpack.c.bf16 %v2040_v31, %v2039_v39  ;;  %v1577_v59 = vadd.f32 %v1576_v21, %v1408_v40  ;;  %v5003_v40 = vor.u32 %v3964_v48, %v3631_v29 }
 0x357   :  { %2237 = vmatmul.bf16.gmra.mxu1 %v2093_v2  ;;  %v1746_v19 = vadd.f32 %v4912_v63, %v1577_v59  ;;  %5844 = vst [vmem:[#allocation116_spill] sm:$0xff] %v5003_v40  ;;  %v5005_v2 = vpop.f32.mrf.mxu3  ;;  %v3973_v63 = vld [vmem:[#allocation2 + $0x2cc] sm:$0xf]  ;;  %v3671_v59 = vld [vmem:[#allocation2 + $0x2d8] sm:$0xf0] }
 0x359   :  { %v1915_v44 = vadd.f32 %v4916_v11, %v1746_v19  ;;  %v5009_v35 = vpop.f32.mrf.mxu0  ;;  %v1413_v11 = vadd.f32 %v4667_v8, %v4784_v47 }
 0x35c   :  { %v1578_v34 = vpop.f32.mrf.mxu2  ;;  %v4999_v31 = vpop.f32.mrf.mxu1 }
 0x35d   :  { %v1579_v39 = vadd.f32 %v1578_v34, %v1410_v10  ;;  %v5013_v10 = vor.u32 %v3973_v63, %v3671_v59  ;;  %v2041_v34 = vmax.f32 %v1915_v44, 0.0  ;;  %v3979_v63 = vld [vmem:[#allocation2 + $0x2f4] sm:$0xf0]  ;;  %v3647_v44 = vld [vmem:[#allocation2 + $0x2b0] sm:$0xf0] }
 0x35f   :  { %v1748_v18 = vadd.f32 %v4927_v57, %v1579_v39  ;;  %5845 = vst [vmem:[#allocation117_spill] sm:$0xff] %v5013_v10  ;;  %1968 = vmatmul.bf16.gmra.mxu0 %v5013_v10  ;;  %v5020_v19 = vpop.f32.mrf.mxu3  ;;  %v1415_v10 = vadd.f32 %v4667_v8, %v4802_v22 }
 0x361   :  { %v1917_v30 = vadd.f32 %v4929_v50, %v1748_v18  ;;  %1620 = vmatmul.bf16.gmra.mxu2 %v5003_v40  ;;  %v5022_v50 = vpop.f32.mrf.mxu0  ;;  %v3685_v18 = vld [vmem:[#allocation2 + $0x2e8] sm:$0xf] }
 0x362   :  { %v5024_v59 = vor.u32 %v3979_v63, %v3685_v18 }
 0x363   :  { %v2042_v21 = vmax.f32 %v1917_v30, 0.0  ;;  %v3968_v30 = vld [vmem:[#allocation2 + $0x2a4] sm:$0xf] }
 0x364   :  { %v1581_v48 = vpop.f32.mrf.mxu2  ;;  %v5016_v29 = vpop.f32.mrf.mxu1  ;;  %5846 = vst [vmem:[#allocation118_spill] sm:$0xff] %v5024_v59  ;;  %1804 = vmatmul.bf16.gmra.mxu3 %v5024_v59 }
 0x365   :  { %v2094_v57 = vpack.c.bf16 %v2042_v21, %v2041_v34  ;;  %v1582_v39 = vadd.f32 %v1581_v48, %v1413_v11  ;;  %v5034_v11 = vor.u32 %v3968_v30, %v3647_v44 }
 0x367   :  { %2242 = vmatmul.bf16.gmra.mxu1 %v2094_v57  ;;  %v1751_v40 = vadd.f32 %v4943_v49, %v1582_v39  ;;  %5847 = vst [vmem:[#allocation119_spill] sm:$0xff] %v5034_v11  ;;  %v5036_v57 = vpop.f32.mrf.mxu3  ;;  %v3977_v49 = vld [vmem:[#allocation2 + $0x2ec] sm:$0xf]  ;;  %v3687_v39 = vld [vmem:[#allocation2 + $0x2f8] sm:$0xf0] }
 0x369   :  { %v1920_v18 = vadd.f32 %v4947_v5, %v1751_v40  ;;  %v5040_v22 = vpop.f32.mrf.mxu0  ;;  %v1418_v5 = vadd.f32 %v4667_v8, %v4819_v16 }
 0x36c   :  { %v1583_v47 = vpop.f32.mrf.mxu2  ;;  %v5030_v21 = vpop.f32.mrf.mxu1 }
 0x36d   :  { %v1584_v34 = vadd.f32 %v1583_v47, %v1415_v10  ;;  %v5044_v10 = vor.u32 %v3977_v49, %v3687_v39  ;;  %v2043_v47 = vmax.f32 %v1920_v18, 0.0  ;;  %v3983_v49 = vld [vmem:[#allocation2 + $0x314] sm:$0xf0]  ;;  %v3663_v18 = vld [vmem:[#allocation2 + $0x2d0] sm:$0xf0] }
 0x36f   :  { %v1753_v63 = vadd.f32 %v4958_v15, %v1584_v34  ;;  %5848 = vst [vmem:[#allocation120_spill] sm:$0xff] %v5044_v10  ;;  %1973 = vmatmul.bf16.gmra.mxu0 %v5044_v10  ;;  %v5051_v40 = vpop.f32.mrf.mxu3  ;;  %v1420_v10 = vadd.f32 %v4667_v8, %v4838_v9  ;;  %v3703_v9 = vld [vmem:[#allocation2 + $0x318] sm:$0xf0] }
 0x371   :  { %v1922_v59 = vadd.f32 %v4960_v58, %v1753_v63  ;;  %1625 = vmatmul.bf16.gmra.mxu2 %v5034_v11  ;;  %v5053_v58 = vpop.f32.mrf.mxu0  ;;  %v3701_v63 = vld [vmem:[#allocation2 + $0x308] sm:$0xf] }
 0x372   :  { %v5055_v39 = vor.u32 %v3983_v49, %v3701_v63 }
 0x373   :  { %v2044_v48 = vmax.f32 %v1922_v59, 0.0  ;;  %v3972_v59 = vld [vmem:[#allocation2 + $0x2c4] sm:$0xf] }
 0x374   :  { %v1586_v30 = vpop.f32.mrf.mxu2  ;;  %v5047_v44 = vpop.f32.mrf.mxu1  ;;  %5849 = vst [vmem:[#allocation121_spill] sm:$0xff] %v5055_v39  ;;  %1809 = vmatmul.bf16.gmra.mxu3 %v5055_v39 }
 0x375   :  { %v2095_v15 = vpack.c.bf16 %v2044_v48, %v2043_v47  ;;  %v1587_v34 = vadd.f32 %v1586_v30, %v1418_v5  ;;  %v5063_v30 = vor.u32 %v3972_v59, %v3663_v18 }
 0x377   :  { %2247 = vmatmul.bf16.gmra.mxu1 %v2095_v15  ;;  %v1756_v11 = vadd.f32 %v4974_v60, %v1587_v34  ;;  %5850 = vst [vmem:[#allocation122_spill] sm:$0xff] %v5063_v30  ;;  %v5065_v5 = vpop.f32.mrf.mxu3  ;;  %v5073_v34 = vor.u32 %v3981_v53, %v3703_v9  ;;  %v3987_v53 = vld [vmem:[#allocation2 + $0x334] sm:$0xf0]  ;;  %v3679_v9 = vld [vmem:[#allocation2 + $0x2f0] sm:$0xf0] }
 0x379   :  { %v1925_v15 = vadd.f32 %v4978_v37, %v1756_v11  ;;  %v5069_v49 = vpop.f32.mrf.mxu0  ;;  %5851 = vst [vmem:[#allocation123_spill] sm:$0xff] %v5073_v34  ;;  %v1423_v37 = vadd.f32 %v4667_v8, %v4854_v13 }
 0x37b   :  { %v2045_v39 = vmax.f32 %v1925_v15, 0.0  ;;  %v3976_v15 = vld [vmem:[#allocation2 + $0x2e4] sm:$0xf] }
 0x37c   :  { %v1588_v16 = vpop.f32.mrf.mxu2  ;;  %v5061_v48 = vpop.f32.mrf.mxu1 }
 0x37d   :  { %v1589_v47 = vadd.f32 %v1588_v16, %v1420_v10 }
 0x37f   :  { %v1758_v63 = vadd.f32 %v4989_v45, %v1589_v47  ;;  %1978 = vmatmul.bf16.gmra.mxu0 %v5073_v34  ;;  %v5080_v11 = vpop.f32.mrf.mxu3  ;;  %v3717_v47 = vld [vmem:[#allocation2 + $0x328] sm:$0xf] }
 0x381   :  { %v1927_v60 = vadd.f32 %v4991_v3, %v1758_v63  ;;  %1630 = vmatmul.bf16.gmra.mxu2 %v5063_v30  ;;  %v5082_v3 = vpop.f32.mrf.mxu0  ;;  %v5084_v63 = vor.u32 %v3987_v53, %v3717_v47  ;;  %v3985_v30 = vld [vmem:[#allocation2 + $0x32c] sm:$0xf] }
 0x383   :  { %v2046_v10 = vmax.f32 %v1927_v60, 0.0  ;;  %5852 = vst [vmem:[#allocation124_spill] sm:$0xff] %v5084_v63  ;;  %v1425_v60 = vadd.f32 %v4667_v8, %v4871_v23  ;;  %v3719_v23 = vld [vmem:[#allocation2 + $0x338] sm:$0xf0] }
 0x384   :  { %v1591_v59 = vpop.f32.mrf.mxu2  ;;  %v5076_v18 = vpop.f32.mrf.mxu1  ;;  %1814 = vmatmul.bf16.gmra.mxu3 %v5084_v63 }
 0x385   :  { %v2096_v45 = vpack.c.bf16 %v2046_v10, %v2045_v39  ;;  %v1592_v16 = vadd.f32 %v1591_v59, %v1423_v37  ;;  %v5092_v59 = vor.u32 %v3976_v15, %v3679_v9 }
 0x387   :  { %2252 = vmatmul.bf16.gmra.mxu1 %v2096_v45  ;;  %v1761_v34 = vadd.f32 %v5005_v2, %v1592_v16  ;;  %5853 = vst [vmem:[#allocation125_spill] sm:$0xff] %v5092_v59  ;;  %v5094_v37 = vpop.f32.mrf.mxu3  ;;  %v5102_v16 = vor.u32 %v3985_v30, %v3719_v23  ;;  %v3991_v30 = vld [vmem:[#allocation2 + $0x354] sm:$0xf0]  ;;  %v3695_v23 = vld [vmem:[#allocation2 + $0x310] sm:$0xf0] }
 0x389   :  { %v1930_v45 = vadd.f32 %v5009_v35, %v1761_v34  ;;  %v5098_v53 = vpop.f32.mrf.mxu0  ;;  %5854 = vst [vmem:[#allocation126_spill] sm:$0xff] %v5102_v16  ;;  %v1428_v35 = vadd.f32 %v4667_v8, %v4893_v41 }
 0x38b   :  { %v2047_v63 = vmax.f32 %v1930_v45, 0.0  ;;  %v3980_v45 = vld [vmem:[#allocation2 + $0x304] sm:$0xf] }
 0x38c   :  { %v1593_v13 = vpop.f32.mrf.mxu2  ;;  %v5090_v39 = vpop.f32.mrf.mxu1 }
 0x38d   :  { %v1594_v10 = vadd.f32 %v1593_v13, %v1425_v60 }
 0x38f   :  { %v1763_v47 = vadd.f32 %v5020_v19, %v1594_v10  ;;  %1983 = vmatmul.bf16.gmra.mxu0 %v5102_v16  ;;  %v5109_v34 = vpop.f32.mrf.mxu3  ;;  %v3733_v10 = vld [vmem:[#allocation2 + $0x348] sm:$0xf] }
 0x391   :  { %v1932_v2 = vadd.f32 %v5022_v50, %v1763_v47  ;;  %1635 = vmatmul.bf16.gmra.mxu2 %v5092_v59  ;;  %v5111_v50 = vpop.f32.mrf.mxu0  ;;  %v5113_v47 = vor.u32 %v3991_v30, %v3733_v10  ;;  %v3989_v59 = vld [vmem:[#allocation2 + $0x34c] sm:$0xf] }
 0x393   :  { %v2048_v60 = vmax.f32 %v1932_v2, 0.0  ;;  %5855 = vst [vmem:[#allocation127_spill] sm:$0xff] %v5113_v47  ;;  %v1430_v2 = vadd.f32 %v4667_v8, %v4908_v1  ;;  %v5129_v1 = vor.u32 %v3989_v59, %v3735_v25  ;;  %v3749_v59 = vld [vmem:[#allocation2 + $0x368] sm:$0xf] }
 0x394   :  { %v1596_v15 = vpop.f32.mrf.mxu2  ;;  %v5105_v9 = vpop.f32.mrf.mxu1  ;;  %1819 = vmatmul.bf16.gmra.mxu3 %v5113_v47 }
 0x395   :  { %v2097_v19 = vpack.c.bf16 %v2048_v60, %v2047_v63  ;;  %v1597_v13 = vadd.f32 %v1596_v15, %v1428_v35  ;;  %v5119_v15 = vor.u32 %v3980_v45, %v3695_v23  ;;  %5857 = vst [vmem:[#allocation129_spill] sm:$0xff] %v5129_v1 }
 0x397   :  { %2257 = vmatmul.bf16.gmra.mxu1 %v2097_v19  ;;  %v1766_v16 = vadd.f32 %v5036_v57, %v1597_v13  ;;  %5856 = vst [vmem:[#allocation128_spill] sm:$0xff] %v5119_v15  ;;  %v5121_v35 = vpop.f32.mrf.mxu3 }
 0x399   :  { %v1935_v19 = vadd.f32 %v5040_v22, %v1766_v16  ;;  %v5125_v30 = vpop.f32.mrf.mxu0  ;;  %v5135_v22 = vld [vmem:[%s5625_s3] ss:$0 sm:$0xff] }
 0x39b   :  { %v2049_v57 = vmax.f32 %v1935_v19, 0.0  ;;  %v3984_v19 = vld [vmem:[#allocation2 + $0x324] sm:$0xf] }
 0x39c   :  { %v1598_v41 = vpop.f32.mrf.mxu2  ;;  %v2220_v63 = vpop.f32.mrf.mxu1 }
 0x39d   :  { %v1599_v60 = vadd.f32 %v1598_v41, %v1430_v2  ;;  %v3995_v41 = vld [vmem:[#allocation2 + $0x374] sm:$0xf0] }
 0x39f   :  { %v1768_v10 = vadd.f32 %v5051_v40, %v1599_v60  ;;  %1988 = vmatmul.bf16.gmra.mxu0 %v5129_v1  ;;  %v1433_v40 = vadd.f32 %v5135_v22, %v4365_v27  ;;  %v5143_v60 = vor.u32 %v3995_v41, %v3749_v59 }
 0x3a1   :  { %v1937_v8 = vadd.f32 %v5053_v58, %v1768_v10  ;;  %1640 = vmatmul.bf16.gmra.mxu2 %v5119_v15  ;;  %v5139_v58 = vpop.f32.mrf.mxu3  ;;  %v5141_v25 = vpop.f32.mrf.mxu0  ;;  %v3711_v10 = vld [vmem:[#allocation2 + $0x330] sm:$0xf0]  ;;  %v3751_v15 = vld [vmem:[#allocation2 + $0x378] sm:$0xf0] }
 0x3a3   :  { %v2050_v13 = vmax.f32 %v1937_v8, 0.0  ;;  %v1435_v8 = vadd.f32 %v5135_v22, %v4367_v32  ;;  %v3993_v32 = vld [vmem:[#allocation2 + $0x36c] sm:$0xf] }
 0x3a4   :  { %v1601_v45 = vpop.f32.mrf.mxu2  ;;  %v2223_v23 = vpop.f32.mrf.mxu1  ;;  %1824 = vmatmul.bf16.gmra.mxu3 %v5143_v60 }
 0x3a5   :  { %v2098_v16 = vpack.c.bf16 %v2050_v13, %v2049_v57  ;;  %v1602_v2 = vadd.f32 %v1601_v45, %v1433_v40  ;;  %v5149_v40 = vor.u32 %v3984_v19, %v3711_v10 }
 0x3a7   :  { %2262 = vmatmul.bf16.gmra.mxu1 %v2098_v16  ;;  %v1771_v1 = vadd.f32 %v5065_v5, %v1602_v2  ;;  %v2354_v5 = vpack.c.bf16 %v2220_v63, %v5105_v9  ;;  %v2353_v9 = vpack.c.bf16 %v5090_v39, %v5076_v18  ;;  %v1440_v18 = vadd.f32 %v5135_v22, %v4377_v46 }
 0x3a9   :  { %v5151_v16 = vpop.f32.mrf.mxu3  ;;  %v1940_v59 = vadd.f32 %v5069_v49, %v1771_v1  ;;  %v5155_v47 = vpop.f32.mrf.mxu0  ;;  %v1438_v1 = vadd.f32 %v5135_v22, %v4375_v42  ;;  %v3727_v42 = vld [vmem:[#allocation2 + $0x350] sm:$0xf0] }
 0x3ab   :  { %v2051_v19 = vmax.f32 %v1940_v59, 0.0  ;;  %v3988_v59 = vld [vmem:[#allocation2 + $0x344] sm:$0xf] }
 0x3ac   :  { %v1603_v27 = vpop.f32.mrf.mxu2  ;;  %v2225_v57 = vpop.f32.mrf.mxu1 }
 0x3ad   :  { %v1604_v13 = vadd.f32 %v1603_v27, %v1435_v8  ;;  %v2355_v45 = vpack.c.bf16 %v2225_v57, %v2223_v23  ;;  %v5160_v23 = vor.u32 %v3993_v32, %v3751_v15  ;;  %v3765_v27 = vld [vmem:[#allocation2 + $0x388] sm:$0xf]  ;;  %v3999_v57 = vld [vmem:[#allocation2 + $0x394] sm:$0xf0] }
 0x3af   :  { %v1773_v41 = vadd.f32 %v5080_v11, %v1604_v13  ;;  %2384 = vmatpush.bf16.msra.mxu2 %v2355_v45  ;;  %1993 = vmatmul.bf16.gmra.mxu0 %v5160_v23  ;;  %v2352_v13 = vpack.c.bf16 %v5061_v48, %v5047_v44  ;;  %v5175_v45 = vor.u32 %v3999_v57, %v3765_v27 }
 0x3b0   :  { %v5185_v44 = vor.u32 %v3988_v59, %v3727_v42  ;;  %v1443_v27 = vadd.f32 %v5135_v22, %v4385_v52  ;;  %v5860_v59 = vpack.c.bf16 %v4968_v51, %v4954_v24  ;;  %v4003_v42 = vld [vmem:[#allocation2 + $0x3b4] sm:$0xf0]  ;;  %v1445_v52 = vadd.f32 %v5135_v22, %v4387_v55 }
 0x3b1   :  { %v1942_v2 = vadd.f32 %v5082_v3, %v1773_v41  ;;  %1645 = vmatmul.bf16.gmra.mxu2 %v5149_v40  ;;  %v5169_v3 = vpop.f32.mrf.mxu3  ;;  %v5171_v15 = vpop.f32.mrf.mxu0 }
 0x3b3   :  { %2385 = vmatpush.bf16.msra.mxu2 %v2354_v5  ;;  %v2052_v10 = vmax.f32 %v1942_v2, 0.0 }
 0x3b4   :  { %v1606_v49 = vpop.f32.mrf.mxu2  ;;  %v5163_v11 = vpop.f32.mrf.mxu1  ;;  %1829 = vmatmul.bf16.gmra.mxu3 %v5175_v45 }
 0x3b5   :  { %v2099_v63 = vpack.c.bf16 %v2052_v10, %v2051_v19  ;;  %v1607_v8 = vadd.f32 %v1606_v49, %v1438_v1  ;;  %v3997_v49 = vld [vmem:[#allocation2 + $0x38c] sm:$0xf]  ;;  %v3767_v1 = vld [vmem:[#allocation2 + $0x398] sm:$0xf0] }
 0x3b7   :  { %2267 = vmatmul.bf16.gmra.mxu1 %v2099_v63  ;;  %2386 = vmatpush.bf16.msra.mxu2 %v2353_v9  ;;  %v1776_v39 = vadd.f32 %v5094_v37, %v1607_v8  ;;  %v5858_v37 = vpack.c.bf16 %v5030_v21, %v5016_v29  ;;  %v5198_v63 = vor.u32 %v3997_v49, %v3767_v1 }
 0x3b9   :  { %v5187_v48 = vpop.f32.mrf.mxu3  ;;  %v1945_v19 = vadd.f32 %v5098_v53, %v1776_v39  ;;  %v5859_v53 = vpack.c.bf16 %v4999_v31, %v4985_v38  ;;  %v3781_v31 = vld [vmem:[#allocation2 + $0x3a8] sm:$0xf]  ;;  %v3992_v39 = vld [vmem:[#allocation2 + $0x364] sm:$0xf] }
 0x3bb   :  { %2387 = vmatpush.bf16.msra.mxu2 %v2352_v13  ;;  %v2053_v8 = vmax.f32 %v1945_v19, 0.0  ;;  %v5861_v19 = vpack.c.bf16 %v4937_v17, %v4923_v54  ;;  %v4001_v54 = vld [vmem:[#allocation2 + $0x3ac] sm:$0xf]  ;;  %v3783_v17 = vld [vmem:[#allocation2 + $0x3b8] sm:$0xf0] }
 0x3bc   :  { %v1608_v41 = vpop.f32.mrf.mxu2  ;;  %v5181_v32 = vpop.f32.mrf.mxu1 }
 0x3bd   :  { %v1609_v5 = vadd.f32 %v1608_v41, %v1440_v18  ;;  %v5194_v10 = vpop.f32.mrf.mxu0  ;;  %v5215_v18 = vor.u32 %v4003_v42, %v3781_v31  ;;  %v3743_v41 = vld [vmem:[#allocation2 + $0x370] sm:$0xf0]  ;;  %v3797_v31 = vld [vmem:[#allocation2 + $0x3c8] sm:$0xf]  ;;  %v4007_v42 = vld [vmem:[#allocation2 + $0x3d4] sm:$0xf0] }
 0x3be   :  { %v5228_v49 = vor.u32 %v3992_v39, %v3743_v41  ;;  %v5249_v39 = vor.u32 %v4007_v42, %v3797_v31  ;;  %v3996_v41 = vld [vmem:[#allocation2 + $0x384] sm:$0xf] }
 0x3bf   :  { %v1778_v46 = vadd.f32 %v5109_v34, %v1609_v5  ;;  %2388 = vmatpush.bf16.msra.mxu2 %v5858_v37  ;;  %1998 = vmatmul.bf16.gmra.mxu0 %v5198_v63 }
 0x3c1   :  { %v1947_v9 = vadd.f32 %v5111_v50, %v1778_v46  ;;  %1650 = vmatmul.bf16.gmra.mxu2 %v5185_v44  ;;  %v5208_v50 = vpop.f32.mrf.mxu3 }
 0x3c3   :  { %2389 = vmatpush.bf16.msra.mxu2 %v5859_v53  ;;  %v2054_v34 = vmax.f32 %v1947_v9, 0.0  ;;  %v5238_v53 = vor.u32 %v4001_v54, %v3783_v17 }
 0x3c4   :  { %v1611_v29 = vpop.f32.mrf.mxu2  ;;  %v5204_v21 = vpop.f32.mrf.mxu1  ;;  %1834 = vmatmul.bf16.gmra.mxu3 %v5215_v18 }
 0x3c5   :  { %v2100_v57 = vpack.c.bf16 %v2054_v34, %v2053_v8  ;;  %v1612_v13 = vadd.f32 %v1611_v29, %v1443_v27  ;;  %v5213_v38 = vpop.f32.mrf.mxu0 }
 0x3c7   :  { %2272 = vmatmul.bf16.gmra.mxu1 %v2100_v57  ;;  %2390 = vmatpush.bf16.msra.mxu2 %v5860_v59  ;;  %v1781_v5 = vadd.f32 %v5121_v35, %v1612_v13 }
 0x3c9   :  { %v5230_v1 = vpop.f32.mrf.mxu3  ;;  %v1950_v55 = vadd.f32 %v5125_v30, %v1781_v5  ;;  %v1448_v30 = vadd.f32 %v5135_v22, %v4395_v61  ;;  %v1450_v5 = vadd.f32 %v5135_v22, %v4397_v0  ;;  %v4005_v0 = vld [vmem:[#allocation2 + $0x3cc] sm:$0xf] }
 0x3cb   :  { %2391 = vmatpush.bf16.msra.mxu2 %v5861_v19  ;;  %v2055_v34 = vmax.f32 %v1950_v55, 0.0 }
 0x3cc   :  { %v1613_v24 = vpop.f32.mrf.mxu2  ;;  %v5224_v51 = vpop.f32.mrf.mxu1 }
 0x3cd   :  { %v1614_v46 = vadd.f32 %v1613_v24, %v1445_v52  ;;  %v5234_v9 = vpop.f32.mrf.mxu0  ;;  %v3759_v52 = vld [vmem:[#allocation2 + $0x390] sm:$0xf0] }
 0x3cf   :  { %v1783_v35 = vadd.f32 %v5139_v58, %v1614_v46  ;;  %2003 = vmatmul.bf16.gmra.mxu0 %v5238_v53 }
 0x3d1   :  { %v1952_v8 = vadd.f32 %v5141_v25, %v1783_v35  ;;  %1655 = vmatmul.bf16.gmra.mxu2 %v5228_v49  ;;  %v5245_v13 = vpop.f32.mrf.mxu3  ;;  %v5259_v35 = vor.u32 %v3996_v41, %v3759_v52  ;;  %v4011_v41 = vld [vmem:[#allocation2 + $0x3f4] sm:$0xf0] }
 0x3d3   :  { %v2056_v29 = vmax.f32 %v1952_v8, 0.0 }
 0x3d4   :  { %v1616_v27 = vpop.f32.mrf.mxu2  ;;  %v5241_v57 = vpop.f32.mrf.mxu1  ;;  %1839 = vmatmul.bf16.gmra.mxu3 %v5249_v39 }
 0x3d5   :  { %v2101_v58 = vpack.c.bf16 %v2056_v29, %v2055_v34  ;;  %v1617_v59 = vadd.f32 %v1616_v27, %v1448_v30  ;;  %v5247_v25 = vpop.f32.mrf.mxu0  ;;  %v3799_v34 = vld [vmem:[#allocation2 + $0x3d8] sm:$0xf0] }
 0x3d6   :  { %v5269_v27 = vor.u32 %v4005_v0, %v3799_v34 }
 0x3d7   :  { %2277 = vmatmul.bf16.gmra.mxu1 %v2101_v58  ;;  %v1786_v19 = vadd.f32 %v5151_v16, %v1617_v59 }
 0x3d9   :  { %v1955_v54 = vadd.f32 %v5155_v47, %v1786_v19  ;;  %v5263_v8 = vpop.f32.mrf.mxu3  ;;  %v4000_v19 = vld [vmem:[#allocation2 + $0x3a4] sm:$0xf] }
 0x3db   :  { %v2057_v30 = vmax.f32 %v1955_v54, 0.0 }
 0x3dc   :  { %v1618_v61 = vpop.f32.mrf.mxu2  ;;  %v5255_v24 = vpop.f32.mrf.mxu1 }
 0x3dd   :  { %v1619_v46 = vadd.f32 %v1618_v61, %v1450_v5  ;;  %v5267_v29 = vpop.f32.mrf.mxu0  ;;  %v3775_v61 = vld [vmem:[#allocation2 + $0x3b0] sm:$0xf0] }
 0x3df   :  { %v1788_v17 = vadd.f32 %v5169_v3, %v1619_v46  ;;  %2008 = vmatmul.bf16.gmra.mxu0 %v5269_v27  ;;  %v1453_v3 = vadd.f32 %v5135_v22, %v4405_v7  ;;  %v1455_v46 = vadd.f32 %v5135_v22, %v4407_v12  ;;  %v3815_v12 = vld [vmem:[#allocation2 + $0x3f8] sm:$0xf0] }
 0x3e1   :  { %v1957_v16 = vadd.f32 %v5171_v15, %v1788_v17  ;;  %1660 = vmatmul.bf16.gmra.mxu2 %v5259_v35  ;;  %v3813_v15 = vld [vmem:[#allocation2 + $0x3e8] sm:$0xf]  ;;  %v5276_v52 = vpop.f32.mrf.mxu3 }
 0x3e2   :  { %v5278_v5 = vor.u32 %v4011_v41, %v3813_v15 }
 0x3e3   :  { %v2058_v58 = vmax.f32 %v1957_v16, 0.0 }
 0x3e4   :  { %v1621_v59 = vpop.f32.mrf.mxu2  ;;  %v5272_v47 = vpop.f32.mrf.mxu1  ;;  %1844 = vmatmul.bf16.gmra.mxu3 %v5278_v5 }
 0x3e5   :  { %v2102_v31 = vpack.c.bf16 %v2058_v58, %v2057_v30  ;;  %v1622_v42 = vadd.f32 %v1621_v59, %v1453_v3  ;;  %v1971_v17 = vpop.f32.mrf.mxu0  ;;  %v5288_v30 = vor.u32 %v4000_v19, %v3775_v61  ;;  %v4009_v3 = vld [vmem:[#allocation2 + $0x3ec] sm:$0xf] }
 0x3e7   :  { %2282 = vmatmul.bf16.gmra.mxu1 %v2102_v31  ;;  %v1791_v54 = vadd.f32 %v5187_v48, %v1622_v42  ;;  %v5294_v31 = vor.u32 %v4009_v3, %v3815_v12 }
 0x3e9   :  { %v1960_v58 = vadd.f32 %v5194_v10, %v1791_v54  ;;  %v1805_v41 = vpop.f32.mrf.mxu3  ;;  %v1458_v10 = vadd.f32 %v5135_v22, %v4415_v28 }
 0x3eb   :  { %v2059_v42 = vmax.f32 %v1960_v58, 0.0 }
 0x3ec   :  { %v1623_v7 = vpop.f32.mrf.mxu2  ;;  %v5284_v0 = vpop.f32.mrf.mxu1 }
 0x3ed   :  { %v1624_v34 = vadd.f32 %v1623_v7, %v1455_v46  ;;  %v1974_v61 = vpop.f32.mrf.mxu0  ;;  %v3791_v7 = vld [vmem:[#allocation2 + $0x3d0] sm:$0xf0] }
 0x3ef   :  { %v1793_v59 = vadd.f32 %v5208_v50, %v1624_v34  ;;  %2013 = vmatmul.bf16.gmra.mxu0 %v5294_v31  ;;  %v1460_v34 = vadd.f32 %v5135_v22, %v4420_v33 }
 0x3f1   :  { %v1962_v48 = vadd.f32 %v5213_v38, %v1793_v59  ;;  %1665 = vmatmul.bf16.gmra.mxu2 %v5288_v30  ;;  %v4004_v38 = vld [vmem:[#allocation2 + $0x3c4] sm:$0xf]  ;;  %v1807_v2 = vpop.f32.mrf.mxu3 }
 0x3f3   :  { %v2060_v15 = vmax.f32 %v1962_v48, 0.0  ;;  %v5306_v48 = vor.u32 %v4004_v38, %v3791_v7 }
 0x3f4   :  { %v1626_v46 = vpop.f32.mrf.mxu2  ;;  %v5297_v19 = vpop.f32.mrf.mxu1 }
 0x3f5   :  { %v2103_v50 = vpack.c.bf16 %v2060_v15, %v2059_v42  ;;  %v1627_v54 = vadd.f32 %v1626_v46, %v1458_v10  ;;  %v1976_v15 = vpop.f32.mrf.mxu0 }
 0x3f7   :  { %2287 = vmatmul.bf16.gmra.mxu1 %v2103_v50  ;;  %v1796_v58 = vadd.f32 %v5230_v1, %v1627_v54  ;;  %v1463_v54 = vadd.f32 %v5135_v22, %v4431_v43 }
 0x3f9   :  { %v1965_v28 = vadd.f32 %v5234_v9, %v1796_v58  ;;  %v4008_v58 = vld [vmem:[#allocation2 + $0x3e4] sm:$0xf] }
 0x3fb   :  { %v2061_v10 = vmax.f32 %v1965_v28, 0.0 }
 0x3fc   :  { %v1628_v59 = vpop.f32.mrf.mxu2  ;;  %v5304_v3 = vpop.f32.mrf.mxu1 }
 0x3fd   :  { %v1629_v12 = vadd.f32 %v1628_v59, %v1460_v34  ;;  %v1810_v34 = vpop.f32.mrf.mxu3  ;;  %v1979_v9 = vpop.f32.mrf.mxu0 }
 0x3ff   :  { %v1798_v42 = vadd.f32 %v5245_v13, %v1629_v12  ;;  %v3807_v13 = vld [vmem:[#allocation2 + $0x3f0] sm:$0xf0] }
 0x401   :  { %v1967_v46 = vadd.f32 %v5247_v25, %v1798_v42  ;;  %1670 = vmatmul.bf16.gmra.mxu2 %v5306_v48  ;;  %v1465_v25 = vadd.f32 %v5135_v22, %v4436_v56 }
 0x403   :  { %v2062_v33 = vmax.f32 %v1967_v46, 0.0  ;;  %v5319_v46 = vor.u32 %v4008_v58, %v3807_v13 }
 0x404   :  { %v1631_v50 = vpop.f32.mrf.mxu2  ;;  %v5312_v1 = vpop.f32.mrf.mxu1 }
 0x405   :  { %v2104_v38 = vpack.c.bf16 %v2062_v33, %v2061_v10  ;;  %v1632_v7 = vadd.f32 %v1631_v50, %v1463_v54  ;;  %v1812_v33 = vpop.f32.mrf.mxu3 }
 0x407   :  { %2292 = vmatmul.bf16.gmra.mxu1 %v2104_v38  ;;  %v1801_v59 = vadd.f32 %v5263_v8, %v1632_v7  ;;  %v1981_v38 = vpop.f32.mrf.mxu0  ;;  %v1468_v8 = vadd.f32 %v5135_v22, %v4449_v14 }
 0x409   :  { %v1970_v37 = vadd.f32 %v5267_v29, %v1801_v59  ;;  %v1470_v29 = vadd.f32 %v5135_v22, %v4456_v26 }
 0x40b   :  { %v2063_v50 = vmax.f32 %v1970_v37, 0.0 }
 0x40c   :  { %v1633_v12 = vpop.f32.mrf.mxu2  ;;  %v2255_v28 = vpop.f32.mrf.mxu1 }
 0x40d   :  { %v1634_v42 = vadd.f32 %v1633_v12, %v1465_v25 }
 0x40f   :  { %v1803_v43 = vadd.f32 %v5276_v52, %v1634_v42  ;;  %v1815_v52 = vpop.f32.mrf.mxu3  ;;  %v1984_v12 = vpop.f32.mrf.mxu0 }
 0x411   :  { %v1972_v10 = vadd.f32 %v1971_v17, %v1803_v43  ;;  %1675 = vmatmul.bf16.gmra.mxu2 %v5319_v46 }
 0x413   :  { %v2064_v54 = vmax.f32 %v1972_v10, 0.0 }
 0x414   :  { %v1636_v55 = vpop.f32.mrf.mxu2  ;;  %v2258_v56 = vpop.f32.mrf.mxu1 }
 0x415   :  { %v2105_v7 = vpack.c.bf16 %v2064_v54, %v2063_v50  ;;  %v1637_v25 = vadd.f32 %v1636_v55, %v1468_v8  ;;  %v1473_v55 = vadd.f32 %v5135_v22, %v4469_v62 }
 0x417   :  { %2297 = vmatmul.bf16.gmra.mxu1 %v2105_v7  ;;  %v1806_v58 = vadd.f32 %v1805_v41, %v1637_v25  ;;  %v1817_v26 = vpop.f32.mrf.mxu3  ;;  %v1986_v8 = vpop.f32.mrf.mxu0  ;;  %v5862_v7 = vld [vmem:[#allocation41_spill] sm:$0xff] }
 0x418   :  { %v1475_v25 = vadd.f32 %v5135_v22, %v5862_v7 }
 0x419   :  { %v1975_v37 = vadd.f32 %v1974_v61, %v1806_v58 }
 0x41b   :  { %v2065_v10 = vmax.f32 %v1975_v37, 0.0 }
 0x41c   :  { %v1638_v17 = vpop.f32.mrf.mxu2  ;;  %v2260_v13 = vpop.f32.mrf.mxu1 }
 0x41d   :  { %v1639_v59 = vadd.f32 %v1638_v17, %v1470_v29  ;;  %v2362_v37 = vpack.c.bf16 %v2260_v13, %v2258_v56  ;;  %v5865_v13 = vld [vmem:[#allocation47_spill] sm:$0xff] }
 0x41f   :  { %v1808_v42 = vadd.f32 %v1807_v2, %v1639_v59  ;;  %v1820_v59 = vpop.f32.mrf.mxu3  ;;  %v1989_v62 = vpop.f32.mrf.mxu0 }
 0x421   :  { %v1977_v43 = vadd.f32 %v1976_v15, %v1808_v42  ;;  %2392 = vmatmul.bf16.vlgmr.msra.gmra.mxu2 %v4345_v36 }
 0x423   :  { %v2066_v16 = vmax.f32 %v1977_v43, 0.0 }
 0x424   :  { %v1641_v14 = vpop.f32.mrf.mxu2  ;;  %v2263_v50 = vpop.f32.mrf.mxu1 }
 0x425   :  { %v2106_v54 = vpack.c.bf16 %v2066_v16, %v2065_v10  ;;  %v1642_v41 = vadd.f32 %v1641_v14, %v1473_v55  ;;  %v5863_v16 = vld [vmem:[#allocation17_spill] sm:$0xff] }
 0x427   :  { %2302 = vmatmul.bf16.gmra.mxu1 %v2106_v54  ;;  %v1811_v61 = vadd.f32 %v1810_v34, %v1642_v41  ;;  %v5864_v34 = vld [vmem:[#allocation45_spill] sm:$0xff]  ;;  %v1822_v56 = vpop.f32.mrf.mxu3  ;;  %v1480_v41 = vadd.f32 %v5135_v22, %v5865_v13 }
 0x428   :  { %v1478_v54 = vadd.f32 %v5135_v22, %v5864_v34 }
 0x429   :  { %v1980_v58 = vadd.f32 %v1979_v9, %v1811_v61 }
 0x42b   :  { %v2067_v43 = vmax.f32 %v1980_v58, 0.0 }
 0x42c   :  { %v1643_v2 = vpop.f32.mrf.mxu2  ;;  %v2265_v15 = vpop.f32.mrf.mxu1 }
 0x42d   :  { %v1644_v29 = vadd.f32 %v1643_v2, %v1475_v25  ;;  %v2363_v36 = vpack.c.bf16 %v2265_v15, %v2263_v50  ;;  %v2361_v50 = vpack.c.bf16 %v2255_v28, %v5312_v1  ;;  %v1991_v25 = vpop.f32.mrf.mxu0 }
 0x42f   :  { %v1813_v17 = vadd.f32 %v1812_v33, %v1644_v29  ;;  %2553 = vmatpush.bf16.msra.mxu3 %v2363_v36  ;;  %v5866_v36 = vpack.c.bf16 %v5284_v0, %v5272_v47  ;;  %v5870_v0 = vpack.c.bf16 %v5224_v51, %v5204_v21 }
 0x431   :  { %v1982_v42 = vadd.f32 %v1981_v38, %v1813_v17  ;;  %2397 = vmatmul.bf16.gmra.mxu2 %v5863_v16  ;;  %v2360_v38 = vpack.c.bf16 %v5304_v3, %v5297_v19  ;;  %v5867_v3 = vld [vmem:[#allocation19_spill] sm:$0xff] }
 0x433   :  { %2554 = vmatpush.bf16.msra.mxu3 %v2362_v37  ;;  %v2068_v10 = vmax.f32 %v1982_v42, 0.0  ;;  %v1825_v37 = vpop.f32.mrf.mxu3 }
 0x434   :  { %v1646_v14 = vpop.f32.mrf.mxu2  ;;  %v5334_v55 = vpop.f32.mrf.mxu1 }
 0x435   :  { %v2107_v9 = vpack.c.bf16 %v2068_v10, %v2067_v43  ;;  %v1647_v33 = vadd.f32 %v1646_v14, %v1478_v54  ;;  %v5869_v43 = vld [vmem:[#allocation51_spill] sm:$0xff]  ;;  %v1994_v10 = vpop.f32.mrf.mxu0  ;;  %v5872_v14 = vpack.c.bf16 %v5181_v32, %v5163_v11 }
 0x437   :  { %2307 = vmatmul.bf16.gmra.mxu1 %v2107_v9  ;;  %2555 = vmatpush.bf16.msra.mxu3 %v2361_v50  ;;  %v1816_v7 = vadd.f32 %v1815_v52, %v1647_v33  ;;  %v5868_v52 = vpack.c.bf16 %v5255_v24, %v5241_v57 }
 0x439   :  { %v1985_v28 = vadd.f32 %v1984_v12, %v1816_v7  ;;  %v1483_v12 = vadd.f32 %v5135_v22, %v5869_v43  ;;  %v5874_v7 = vld [vmem:[#allocation21_spill] sm:$0xff]  ;;  %v5877_v43 = vld [vmem:[#allocation42_spill] sm:$0xff] }
 0x43b   :  { %2556 = vmatpush.bf16.msra.mxu3 %v2360_v38  ;;  %v2069_v58 = vmax.f32 %v1985_v28, 0.0  ;;  %v1827_v33 = vpop.f32.mrf.mxu3  ;;  %v5873_v38 = vld [vmem:[#allocation37_spill] sm:$0xff] }
 0x43c   :  { %v1648_v61 = vpop.f32.mrf.mxu2  ;;  %v5343_v2 = vpop.f32.mrf.mxu1 }
 0x43d   :  { %v1649_v15 = vadd.f32 %v1648_v61, %v1480_v41  ;;  %v2364_v1 = vpack.c.bf16 %v5343_v2, %v5334_v55  ;;  %v1996_v13 = vpop.f32.mrf.mxu0 }
 0x43f   :  { %v1818_v29 = vadd.f32 %v1817_v26, %v1649_v15  ;;  %2557 = vmatpush.bf16.msra.mxu3 %v5866_v36  ;;  %v5875_v15 = vld [vmem:[#allocation57_spill] sm:$0xff] }
 0x440   :  { %v1488_v28 = vadd.f32 %v5135_v22, %v5875_v15 }
 0x441   :  { %v1987_v19 = vadd.f32 %v1986_v8, %v1818_v29  ;;  %2402 = vmatmul.bf16.gmra.mxu2 %v5867_v3  ;;  %v5871_v8 = vld [vmem:[#allocation53_spill] sm:$0xff] }
 0x442   :  { %v1485_v57 = vadd.f32 %v5135_v22, %v5871_v8  ;;  %v5878_v8 = vld [vmem:[#allocation23_spill] sm:$0xff] }
 0x443   :  { %2558 = vmatpush.bf16.msra.mxu3 %v5868_v52  ;;  %v2070_v17 = vmax.f32 %v1987_v19, 0.0  ;;  %v1830_v19 = vpop.f32.mrf.mxu3 }
 0x444   :  { %v1651_v42 = vpop.f32.mrf.mxu2  ;;  %v5354_v16 = vpop.f32.mrf.mxu1 }
 0x445   :  { %v2108_v26 = vpack.c.bf16 %v2070_v17, %v2069_v58  ;;  %v1652_v47 = vadd.f32 %v1651_v42, %v1483_v12  ;;  %v1999_v3 = vpop.f32.mrf.mxu0  ;;  %v5876_v58 = vld [vmem:[#allocation59_spill] sm:$0xff] }
 0x447   :  { %2312 = vmatmul.bf16.gmra.mxu1 %v2108_v26  ;;  %2559 = vmatpush.bf16.msra.mxu3 %v5870_v0  ;;  %v1821_v24 = vadd.f32 %v1820_v59, %v1652_v47 }
 0x449   :  { %v1990_v21 = vadd.f32 %v1989_v62, %v1821_v24  ;;  %v1490_v62 = vadd.f32 %v5135_v22, %v5876_v58 }
 0x44b   :  { %2560 = vmatpush.bf16.msra.mxu3 %v5872_v14  ;;  %v2071_v59 = vmax.f32 %v1990_v21, 0.0  ;;  %v1832_v0 = vpop.f32.mrf.mxu3 }
 0x44c   :  { %v1653_v34 = vpop.f32.mrf.mxu2  ;;  %v5366_v54 = vpop.f32.mrf.mxu1 }
 0x44d   :  { %v1654_v50 = vadd.f32 %v1653_v34, %v1485_v57  ;;  %v2365_v9 = vpack.c.bf16 %v5366_v54, %v5354_v16  ;;  %v2001_v14 = vpop.f32.mrf.mxu0  ;;  %v5903_v54 = vld [vmem:[#allocation36_spill] sm:$0xff] }
 0x44e   :  { %2561 = vmatmul.bf16.vlgmr.msra.gmra.mxu3 %v5873_v38 }
 0x44f   :  { %v1823_v51 = vadd.f32 %v1822_v56, %v1654_v50  ;;  %v5879_v50 = vld [vmem:[#allocation63_spill] sm:$0xff] }
 0x450   :  { %v1493_v38 = vadd.f32 %v5135_v22, %v5879_v50 }
 0x451   :  { %v1992_v41 = vadd.f32 %v1991_v25, %v1823_v51  ;;  %2407 = vmatmul.bf16.gmra.mxu2 %v5874_v7 }
 0x453   :  { %v2072_v61 = vmax.f32 %v1992_v41, 0.0  ;;  %v5880_v41 = vld [vmem:[#allocation65_spill] sm:$0xff] }
 0x454   :  { %v1656_v11 = vpop.f32.mrf.mxu2  ;;  %v5372_v32 = vpop.f32.mrf.mxu1 }
 0x455   :  { %v2109_v29 = vpack.c.bf16 %v2072_v61, %v2071_v59  ;;  %v1657_v36 = vadd.f32 %v1656_v11, %v1488_v28  ;;  %v2004_v15 = vpop.f32.mrf.mxu0  ;;  %v5881_v28 = vld [vmem:[#allocation48_spill] sm:$0xff] }
 0x457   :  { %2317 = vmatmul.bf16.gmra.mxu1 %v2109_v29  ;;  %v1826_v56 = vadd.f32 %v1825_v37, %v1657_v36 }
 0x459   :  { %v1995_v12 = vadd.f32 %v1994_v10, %v1826_v56  ;;  %v1495_v10 = vadd.f32 %v5135_v22, %v5880_v41 }
 0x45b   :  { %v2073_v57 = vmax.f32 %v1995_v12, 0.0 }
 0x45c   :  { %v1658_v25 = vpop.f32.mrf.mxu2  ;;  %v5378_v52 = vpop.f32.mrf.mxu1 }
 0x45d   :  { %v1659_v17 = vadd.f32 %v1658_v25, %v1490_v62  ;;  %v2366_v42 = vpack.c.bf16 %v5378_v52, %v5372_v32  ;;  %v5882_v62 = vld [vmem:[#allocation25_spill] sm:$0xff]  ;;  %v5902_v32 = vld [vmem:[#allocation32_spill] sm:$0xff] }
 0x45e   :  { %2566 = vmatmul.bf16.gmra.mxu3 %v5877_v43  ;;  %v5883_v43 = vld [vmem:[#allocation69_spill] sm:$0xff] }
 0x45f   :  { %v1828_v26 = vadd.f32 %v1827_v33, %v1659_v17  ;;  %v1498_v12 = vadd.f32 %v5135_v22, %v5883_v43 }
 0x461   :  { %v1997_v47 = vadd.f32 %v1996_v13, %v1828_v26  ;;  %2412 = vmatmul.bf16.gmra.mxu2 %v5878_v8  ;;  %v1835_v13 = vpop.f32.mrf.mxu3 }
 0x463   :  { %v2074_v24 = vmax.f32 %v1997_v47, 0.0 }
 0x464   :  { %v1661_v34 = vpop.f32.mrf.mxu2  ;;  %v5384_v37 = vpop.f32.mrf.mxu1 }
 0x465   :  { %v2110_v21 = vpack.c.bf16 %v2074_v24, %v2073_v57  ;;  %v1662_v51 = vadd.f32 %v1661_v34, %v1493_v38  ;;  %v2006_v57 = vpop.f32.mrf.mxu0  ;;  %v5884_v24 = vld [vmem:[#allocation71_spill] sm:$0xff]  ;;  %v5885_v38 = vld [vmem:[#allocation54_spill] sm:$0xff] }
 0x467   :  { %2322 = vmatmul.bf16.gmra.mxu1 %v2110_v21  ;;  %v1831_v33 = vadd.f32 %v1830_v19, %v1662_v51 }
 0x469   :  { %v2000_v29 = vadd.f32 %v1999_v3, %v1831_v33  ;;  %v1837_v26 = vpop.f32.mrf.mxu3  ;;  %v1500_v3 = vadd.f32 %v5135_v22, %v5884_v24 }
 0x46b   :  { %v2075_v56 = vmax.f32 %v2000_v29, 0.0 }
 0x46c   :  { %v1663_v7 = vpop.f32.mrf.mxu2  ;;  %v5390_v59 = vpop.f32.mrf.mxu1 }
 0x46d   :  { %v1664_v61 = vadd.f32 %v1663_v7, %v1495_v10  ;;  %v2367_v11 = vpack.c.bf16 %v5390_v59, %v5384_v37  ;;  %v2009_v33 = vpop.f32.mrf.mxu0  ;;  %v5886_v7 = vld [vmem:[#allocation27_spill] sm:$0xff]  ;;  %v5901_v59 = vld [vmem:[#allocation49_spill] sm:$0xff] }
 0x46e   :  { %2571 = vmatmul.bf16.gmra.mxu3 %v5881_v28  ;;  %v5900_v37 = vld [vmem:[#allocation83_spill] sm:$0xff] }
 0x46f   :  { %v1833_v36 = vadd.f32 %v1832_v0, %v1664_v61 }
 0x471   :  { %v2002_v58 = vadd.f32 %v2001_v14, %v1833_v36  ;;  %2417 = vmatmul.bf16.gmra.mxu2 %v5882_v62  ;;  %v1840_v41 = vpop.f32.mrf.mxu3 }
 0x473   :  { %v2076_v25 = vmax.f32 %v2002_v58, 0.0  ;;  %v5887_v58 = vld [vmem:[#allocation75_spill] sm:$0xff] }
 0x474   :  { %v1666_v17 = vpop.f32.mrf.mxu2  ;;  %v5396_v19 = vpop.f32.mrf.mxu1 }
 0x475   :  { %v2111_v47 = vpack.c.bf16 %v2076_v25, %v2075_v56  ;;  %v1667_v8 = vadd.f32 %v1666_v17, %v1498_v12  ;;  %v5888_v17 = vld [vmem:[#allocation77_spill] sm:$0xff]  ;;  %v2011_v12 = vpop.f32.mrf.mxu0 }
 0x477   :  { %2327 = vmatmul.bf16.gmra.mxu1 %v2111_v47  ;;  %v1836_v0 = vadd.f32 %v1835_v13, %v1667_v8  ;;  %v1503_v13 = vadd.f32 %v5135_v22, %v5887_v58  ;;  %v5892_v58 = vld [vmem:[#allocation82_spill] sm:$0xff] }
 0x479   :  { %v2005_v21 = vadd.f32 %v2004_v15, %v1836_v0  ;;  %v1842_v25 = vpop.f32.mrf.mxu3  ;;  %v1505_v15 = vadd.f32 %v5135_v22, %v5888_v17 }
 0x47b   :  { %v2077_v61 = vmax.f32 %v2005_v21, 0.0 }
 0x47c   :  { %v1668_v14 = vpop.f32.mrf.mxu2  ;;  %v5402_v34 = vpop.f32.mrf.mxu1 }
 0x47d   :  { %v1669_v50 = vadd.f32 %v1668_v14, %v1500_v3  ;;  %v5890_v14 = vld [vmem:[#allocation30_spill] sm:$0xff] }
 0x47e   :  { %2576 = vmatmul.bf16.gmra.mxu3 %v5885_v38 }
 0x47f   :  { %v1838_v51 = vadd.f32 %v1837_v26, %v1669_v50 }
 0x481   :  { %v2007_v10 = vadd.f32 %v2006_v57, %v1838_v51  ;;  %2422 = vmatmul.bf16.gmra.mxu2 %v5886_v7  ;;  %v5889_v57 = vld [vmem:[#allocation60_spill] sm:$0xff]  ;;  %v1845_v38 = vpop.f32.mrf.mxu3 }
 0x482   :  { %v5891_v7 = vld [vmem:[#allocation80_spill] sm:$0xff] }
 0x483   :  { %v2078_v28 = vmax.f32 %v2007_v10, 0.0 }
 0x484   :  { %v1671_v29 = vpop.f32.mrf.mxu2  ;;  %v2293_v36 = vpop.f32.mrf.mxu1 }
 0x485   :  { %v2112_v62 = vpack.c.bf16 %v2078_v28, %v2077_v61  ;;  %v1672_v56 = vadd.f32 %v1671_v29, %v1503_v13  ;;  %v1508_v61 = vadd.f32 %v5135_v22, %v5891_v7  ;;  %v2014_v28 = vpop.f32.mrf.mxu0  ;;  %v1510_v13 = vadd.f32 %v5135_v22, %v5892_v58  ;;  %v5898_v58 = vld [vmem:[#allocation43_spill] sm:$0xff] }
 0x487   :  { %2332 = vmatmul.bf16.gmra.mxu1 %v2112_v62  ;;  %v1841_v43 = vadd.f32 %v1840_v41, %v1672_v56 }
 0x489   :  { %v2010_v24 = vadd.f32 %v2009_v33, %v1841_v43  ;;  %v1847_v17 = vpop.f32.mrf.mxu3 }
 0x48b   :  { %v2079_v50 = vmax.f32 %v2010_v24, 0.0 }
 0x48c   :  { %v1673_v26 = vpop.f32.mrf.mxu2  ;;  %v2295_v47 = vpop.f32.mrf.mxu1 }
 0x48d   :  { %v1674_v8 = vadd.f32 %v1673_v26, %v1505_v15  ;;  %v5893_v15 = vld [vmem:[#allocation66_spill] sm:$0xff]  ;;  %v2016_v26 = vpop.f32.mrf.mxu0 }
 0x48e   :  { %2581 = vmatmul.bf16.gmra.mxu3 %v5889_v57  ;;  %v5894_v57 = vld [vmem:[#allocation34_spill] sm:$0xff] }
 0x48f   :  { %v1843_v3 = vadd.f32 %v1842_v25, %v1674_v8 }
 0x491   :  { %v2012_v0 = vadd.f32 %v2011_v12, %v1843_v3  ;;  %2427 = vmatmul.bf16.gmra.mxu2 %v5890_v14 }
 0x493   :  { %v2080_v21 = vmax.f32 %v2012_v0, 0.0 }
 0x494   :  { %v1676_v51 = vpop.f32.mrf.mxu2  ;;  %v2298_v10 = vpop.f32.mrf.mxu1 }
 0x495   :  { %v2113_v41 = vpack.c.bf16 %v2080_v21, %v2079_v50  ;;  %v1677_v29 = vadd.f32 %v1676_v51, %v1508_v61  ;;  %v5896_v51 = vld [vmem:[#allocation38_spill] sm:$0xff]  ;;  %v2369_v61 = vpack.c.bf16 %v2295_v47, %v2293_v36 }
 0x497   :  { %2337 = vmatmul.bf16.gmra.mxu1 %v2113_v41  ;;  %v1846_v33 = vadd.f32 %v1845_v38, %v1677_v29  ;;  %v5895_v38 = vld [vmem:[#allocation72_spill] sm:$0xff]  ;;  %v2368_v41 = vpack.c.bf16 %v5402_v34, %v5396_v19  ;;  %v5897_v29 = vld [vmem:[#allocation78_spill] sm:$0xff] }
 0x498   :  { %v5899_v34 = vld [vmem:[#allocation28_spill] sm:$0xff] }
 0x499   :  { %v2015_v43 = vadd.f32 %v2014_v28, %v1846_v33 }
 0x49b   :  { %v2081_v24 = vmax.f32 %v2015_v43, 0.0 }
 0x49c   :  { %v1678_v62 = vpop.f32.mrf.mxu2  ;;  %v2300_v56 = vpop.f32.mrf.mxu1 }
 0x49d   :  { %v1679_v25 = vadd.f32 %v1678_v62, %v1510_v13  ;;  %v2370_v21 = vpack.c.bf16 %v2300_v56, %v2298_v10  ;;  %v5906_v13 = vld [vmem:[#allocation46_spill] sm:$0xff]  ;;  %v5907_v56 = vld [vmem:[#allocation52_spill] sm:$0xff] }
 0x49e   :  { %2586 = vmatmul.bf16.gmra.mxu3 %v5893_v15  ;;  %v5908_v15 = vld [vmem:[#allocation58_spill] sm:$0xff] }
 0x49f   :  { %v1848_v12 = vadd.f32 %v1847_v17, %v1679_v25 }
 0x4a1   :  { %v2017_v8 = vadd.f32 %v2016_v26, %v1848_v12  ;;  %2432 = vmatmul.bf16.gmra.mxu2 %v5894_v57 }
 0x4a3   :  { %v2082_v3 = vmax.f32 %v2017_v8, 0.0  ;;  %v5909_v8 = vld [vmem:[#allocation64_spill] sm:$0xff] }
 0x4a4   :  { %v2303_v0 = vpop.f32.mrf.mxu1 }
 0x4a5   :  { %v2114_v14 = vpack.c.bf16 %v2082_v3, %v2081_v24 }
 0x4a7   :  { %2342 = vmatmul.bf16.gmra.mxu1 %v2114_v14  ;;  %v5911_v14 = vld [vmem:[#allocation70_spill] sm:$0xff] }
 0x4ac   :  { %v2305_v50 = vpop.f32.mrf.mxu1 }
 0x4ad   :  { %v2371_v22 = vpack.c.bf16 %v2305_v50, %v2303_v0  ;;  %v5910_v0 = vld [vmem:[#allocation31_spill] sm:$0xff] }
 0x4ae   :  { %2591 = vmatmul.bf16.gmra.mxu3 %v5895_v38  ;;  %v5912_v50 = vld [vmem:[#allocation35_spill] sm:$0xff] }
 0x4af   :  { %2722 = vmatpush.bf16.msra.mxu0 %v2371_v22  ;;  %v5913_v22 = vld [vmem:[#allocation76_spill] sm:$0xff]  ;;  %v5914_v38 = vld [vmem:[#allocation39_spill] sm:$0xff] }
 0x4b1   :  { %2437 = vmatmul.bf16.gmra.mxu2 %v5896_v51  ;;  %v5916_v51 = vld [vmem:[#allocation44_spill] sm:$0xff] }
 0x4b3   :  { %2723 = vmatpush.bf16.msra.mxu0 %v2370_v21  ;;  %v5915_v21 = vld [vmem:[#allocation81_spill] sm:$0xff] }
 0x4b4   :  { %v2308_v7 = vpop.f32.mrf.mxu1 }
 0x4b7   :  { %2724 = vmatpush.bf16.msra.mxu0 %v2369_v61  ;;  %v5917_v61 = vld [vmem:[#allocation85_spill] sm:$0xff] }
 0x4bb   :  { %2725 = vmatpush.bf16.msra.mxu0 %v2368_v41  ;;  %v5918_v41 = vld [vmem:[#allocation50_spill] sm:$0xff] }
 0x4bc   :  { %v2310_v28 = vpop.f32.mrf.mxu1 }
 0x4bd   :  { %v2372_v3 = vpack.c.bf16 %v2310_v28, %v2308_v7  ;;  %v2393_v7 = vpop.f32.mrf.mxu2  ;;  %v5919_v28 = vld [vmem:[#allocation56_spill] sm:$0xff] }
 0x4be   :  { %2596 = vmatmul.bf16.gmra.mxu3 %v5897_v29 }
 0x4bf   :  { %2726 = vmatpush.bf16.msra.mxu0 %v2367_v11 }
 0x4c1   :  { %2442 = vmatmul.bf16.gmra.mxu2 %v5898_v58 }
 0x4c3   :  { %2727 = vmatpush.bf16.msra.mxu0 %v2366_v42 }
 0x4c4   :  { %v2313_v10 = vpop.f32.mrf.mxu1 }
 0x4c7   :  { %2728 = vmatpush.bf16.msra.mxu0 %v2365_v9  ;;  %v5904_v9 = vld [vmem:[#allocation88_spill] sm:$0xff] }
 0x4cb   :  { %2729 = vmatpush.bf16.msra.mxu0 %v2364_v1  ;;  %v5905_v1 = vld [vmem:[#allocation40_spill] sm:$0xff] }
 0x4cc   :  { %v2315_v19 = vpop.f32.mrf.mxu1 }
 0x4cd   :  { %v2373_v24 = vpack.c.bf16 %v2315_v19, %v2313_v10  ;;  %v2395_v10 = vpop.f32.mrf.mxu2  ;;  %v5920_v19 = vld [vmem:[#allocation55_spill] sm:$0xff] }
 0x4ce   :  { %2730 = vmatmul.bf16.vlgmr.msra.gmra.mxu0 %v5899_v34  ;;  %2601 = vmatmul.bf16.gmra.mxu3 %v5900_v37  ;;  %v5921_v37 = vld [vmem:[#allocation93_spill] sm:$0xff] }
 0x4d1   :  { %2447 = vmatmul.bf16.gmra.mxu2 %v5901_v59  ;;  %v2562_v29 = vpop.f32.mrf.mxu3 }
 0x4d4   :  { %v2318_v11 = vpop.f32.mrf.mxu1 }
 0x4d9   :  { %v2564_v34 = vpop.f32.mrf.mxu3 }
 0x4dc   :  { %v2320_v36 = vpop.f32.mrf.mxu1 }
 0x4dd   :  { %v2374_v57 = vpack.c.bf16 %v2320_v36, %v2318_v11  ;;  %v5922_v11 = vld [vmem:[#allocation87_spill] sm:$0xff]  ;;  %v2398_v36 = vpop.f32.mrf.mxu2 }
 0x4de   :  { %2735 = vmatmul.bf16.gmra.mxu0 %v5902_v32  ;;  %2606 = vmatmul.bf16.gmra.mxu3 %v4684_v4  ;;  %v5923_v32 = vld [vmem:[#allocation62_spill] sm:$0xff] }
 0x4e1   :  { %2452 = vmatmul.bf16.gmra.mxu2 %v5920_v19  ;;  %v5933_v19 = vld [vmem:[#allocation95_spill] sm:$0xff] }
 0x4e4   :  { %v2323_v52 = vpop.f32.mrf.mxu1 }
 0x4ec   :  { %v2325_v16 = vpop.f32.mrf.mxu1 }
 0x4ee   :  { %2740 = vmatmul.bf16.gmra.mxu0 %v5903_v54  ;;  %2611 = vmatmul.bf16.gmra.mxu3 %v5904_v9  ;;  %v2400_v54 = vpop.f32.mrf.mxu2  ;;  %v5924_v9 = vld [vmem:[#allocation61_spill] sm:$0xff] }
 0x4f1   :  { %2457 = vmatmul.bf16.gmra.mxu2 %v5924_v9 }
 0x4f4   :  { %v2328_v55 = vpop.f32.mrf.mxu1 }
 0x4fc   :  { %v2330_v2 = vpop.f32.mrf.mxu1 }
 0x4fd   :  { %v2376_v26 = vpack.c.bf16 %v2330_v2, %v2328_v55  ;;  %v5925_v2 = vld [vmem:[#allocation96_spill] sm:$0xff] }
 0x4fe   :  { %2745 = vmatmul.bf16.gmra.mxu0 %v5905_v1  ;;  %2616 = vmatmul.bf16.gmra.mxu3 %v4740_v20  ;;  %v2375_v20 = vpack.c.bf16 %v2325_v16, %v2323_v52  ;;  %v2567_v52 = vpop.f32.mrf.mxu3 }
 0x504   :  { %v2333_v42 = vpop.f32.mrf.mxu1 }
 0x506   :  { %v2569_v55 = vpop.f32.mrf.mxu3 }
 0x50c   :  { %v2335_v47 = vpop.f32.mrf.mxu1 }
 0x50d   :  { %v2377_v12 = vpack.c.bf16 %v2335_v47, %v2333_v42  ;;  %v5926_v42 = vld [vmem:[#allocation90_spill] sm:$0xff]  ;;  %v5469_v47 = vld [vmem:[%s5627_s5] ss:$0 sm:$0xff] }
 0x50e   :  { %2750 = vmatmul.bf16.gmra.mxu0 %v5906_v13  ;;  %2621 = vmatmul.bf16.gmra.mxu3 %v5921_v37  ;;  %v2403_v13 = vpop.f32.mrf.mxu2 }
 0x50f   :  { %v2404_v9 = vadd.f32 %v5469_v47, %v2403_v13 }
 0x514   :  { %v2338_v33 = vpop.f32.mrf.mxu1 }
 0x51c   :  { %v2340_v62 = vpop.f32.mrf.mxu1 }
 0x51d   :  { %v2378_v43 = vpack.c.bf16 %v2340_v62, %v2338_v33  ;;  %v5927_v33 = vld [vmem:[#allocation68_spill] sm:$0xff]  ;;  %v2572_v62 = vpop.f32.mrf.mxu3 }
 0x51e   :  { %2755 = vmatmul.bf16.gmra.mxu0 %v5907_v56  ;;  %2626 = vmatmul.bf16.gmra.mxu3 %v5925_v2  ;;  %v2394_v56 = vadd.f32 %v5469_v47, %v2393_v7  ;;  %v5931_v7 = vld [vmem:[#allocation73_spill] sm:$0xff] }
 0x524   :  { %v2343_v4 = vpop.f32.mrf.mxu1 }
 0x52c   :  { %v2345_v25 = vpop.f32.mrf.mxu1 }
 0x52d   :  { %v2379_v17 = vpack.c.bf16 %v2345_v25, %v2343_v4  ;;  %v2563_v25 = vadd.f32 %v2562_v29, %v2394_v56  ;;  %v5932_v29 = vld [vmem:[#allocation101_spill] sm:$0xff] }
 0x52e   :  { %2760 = vmatmul.bf16.gmra.mxu0 %v5908_v15  ;;  %v5928_v15 = vld [vmem:[#allocation67_spill] sm:$0xff] }
 0x52f   :  { %2891 = vmatpush.bf16.msra.mxu1 %v2379_v17  ;;  %v2405_v17 = vpop.f32.mrf.mxu2  ;;  %2462 = vmatmul.bf16.gmra.mxu2 %v5928_v15  ;;  %v5935_v15 = vld [vmem:[#allocation8_spill] sm:$0xff] }
 0x533   :  { %2892 = vmatpush.bf16.msra.mxu1 %v2378_v43  ;;  %v2574_v43 = vpop.f32.mrf.mxu3  ;;  %2631 = vmatmul.bf16.gmra.mxu3 %v4825_v6 }
 0x537   :  { %2893 = vmatpush.bf16.msra.mxu1 %v2377_v12 }
 0x53b   :  { %2894 = vmatpush.bf16.msra.mxu1 %v2376_v26 }
 0x53e   :  { %2765 = vmatmul.bf16.gmra.mxu0 %v5909_v8  ;;  %v2396_v8 = vadd.f32 %v5469_v47, %v2395_v10 }
 0x53f   :  { %2895 = vmatpush.bf16.msra.mxu1 %v2375_v20  ;;  %v5929_v20 = vld [vmem:[#allocation92_spill] sm:$0xff] }
 0x543   :  { %2896 = vmatpush.bf16.msra.mxu1 %v2374_v57 }
 0x547   :  { %2897 = vmatpush.bf16.msra.mxu1 %v2373_v24 }
 0x54b   :  { %2898 = vmatpush.bf16.msra.mxu1 %v2372_v3  ;;  %v2731_v58 = vpop.f32.mrf.mxu0  ;;  %v2408_v3 = vpop.f32.mrf.mxu2 }
 0x54c   :  { %v2732_v12 = vadd.f32 %v2731_v58, %v2563_v25 }
 0x54e   :  { %2899 = vmatmul.bf16.vlgmr.msra.gmra.mxu1 %v5910_v0  ;;  %2770 = vmatmul.bf16.gmra.mxu0 %v5911_v14  ;;  %v5930_v0 = vld [vmem:[#allocation74_spill] sm:$0xff]  ;;  %v2565_v14 = vadd.f32 %v2564_v34, %v2396_v8  ;;  %v2401_v34 = vadd.f32 %v5469_v47, %v2400_v54 }
 0x553   :  { %v2733_v59 = vpop.f32.mrf.mxu0 }
 0x55b   :  { %v2736_v16 = vpop.f32.mrf.mxu0 }
 0x55e   :  { %2904 = vmatmul.bf16.gmra.mxu1 %v5912_v50  ;;  %2775 = vmatmul.bf16.gmra.mxu0 %v5913_v22  ;;  %v2577_v50 = vpop.f32.mrf.mxu3  ;;  %v2399_v22 = vadd.f32 %v5469_v47, %v2398_v36 }
 0x563   :  { %v2738_v1 = vpop.f32.mrf.mxu0 }
 0x56b   :  { %v2741_v4 = vpop.f32.mrf.mxu0 }
 0x56e   :  { %2909 = vmatmul.bf16.gmra.mxu1 %v5914_v38  ;;  %2780 = vmatmul.bf16.gmra.mxu0 %v5915_v21  ;;  %v2734_v21 = vadd.f32 %v2733_v59, %v2565_v14  ;;  %v5934_v59 = vld [vmem:[#allocation79_spill] sm:$0xff] }
 0x573   :  { %v2743_v26 = vpop.f32.mrf.mxu0 }
 0x57b   :  { %v2746_v38 = vpop.f32.mrf.mxu0 }
 0x57e   :  { %2914 = vmatmul.bf16.gmra.mxu1 %v5916_v51  ;;  %2785 = vmatmul.bf16.gmra.mxu0 %v5917_v61  ;;  %v2568_v61 = vadd.f32 %v2567_v52, %v2399_v22  ;;  %v2409_v22 = vadd.f32 %v5469_v47, %v2408_v3 }
 0x580   :  { %v2737_v58 = vadd.f32 %v2736_v16, %v2568_v61  ;;  %v2573_v16 = vadd.f32 %v2572_v62, %v2404_v9 }
 0x583   :  { %v2748_v10 = vpop.f32.mrf.mxu0 }
 0x58b   :  { %v2751_v2 = vpop.f32.mrf.mxu0 }
 0x58e   :  { %2919 = vmatmul.bf16.gmra.mxu1 %v5918_v41  ;;  %2790 = vmatmul.bf16.gmra.mxu0 %v5922_v11  ;;  %v2410_v41 = vpop.f32.mrf.mxu2 }
 0x58f   :  { %2467 = vmatmul.bf16.gmra.mxu2 %v5931_v7 }
 0x593   :  { %v2753_v8 = vpop.f32.mrf.mxu0 }
 0x596   :  { %v2413_v36 = vpop.f32.mrf.mxu2 }
 0x597   :  { %v2414_v9 = vadd.f32 %v5469_v47, %v2413_v36 }
 0x59e   :  { %2924 = vmatmul.bf16.gmra.mxu1 %v5919_v28  ;;  %2795 = vmatmul.bf16.gmra.mxu0 %v5926_v42  ;;  %v2579_v28 = vpop.f32.mrf.mxu3  ;;  %v2415_v25 = vpop.f32.mrf.mxu2 }
 0x59f   :  { %2636 = vmatmul.bf16.gmra.mxu3 %v5932_v29  ;;  %2472 = vmatmul.bf16.gmra.mxu2 %v5935_v15  ;;  %v5939_v29 = vld [vmem:[#allocation9_spill] sm:$0xff] }
 0x5a6   :  { %v2582_v52 = vpop.f32.mrf.mxu3 }
 0x5ae   :  { %2929 = vmatmul.bf16.gmra.mxu1 %v5923_v32  ;;  %2800 = vmatmul.bf16.gmra.mxu0 %v5929_v20  ;;  %v2570_v32 = vadd.f32 %v2569_v55, %v2401_v34  ;;  %v2584_v54 = vpop.f32.mrf.mxu3  ;;  %v2742_v20 = vadd.f32 %v2741_v4, %v2573_v16  ;;  %v2406_v55 = vadd.f32 %v5469_v47, %v2405_v17 }
 0x5af   :  { %v2578_v4 = vadd.f32 %v2577_v50, %v2409_v22 }
 0x5b0   :  { %v2739_v42 = vadd.f32 %v2738_v1, %v2570_v32  ;;  %v5938_v1 = vld [vmem:[#allocation84_spill] sm:$0xff]  ;;  %v2575_v62 = vadd.f32 %v2574_v43, %v2406_v55  ;;  %v2411_v43 = vadd.f32 %v5469_v47, %v2410_v41 }
 0x5b2   :  { %v2580_v50 = vadd.f32 %v2579_v28, %v2411_v43  ;;  %v2416_v28 = vadd.f32 %v5469_v47, %v2415_v25 }
 0x5b6   :  { %v2587_v14 = vpop.f32.mrf.mxu3 }
 0x5be   :  { %2934 = vmatmul.bf16.gmra.mxu1 %v5927_v33  ;;  %2805 = vmatmul.bf16.gmra.mxu0 %v5933_v19  ;;  %v2589_v17 = vpop.f32.mrf.mxu3  ;;  %v2747_v19 = vadd.f32 %v2746_v38, %v2578_v4  ;;  %v2583_v38 = vadd.f32 %v2582_v52, %v2414_v9  ;;  %v2585_v52 = vadd.f32 %v2584_v54, %v2416_v28 }
 0x5c6   :  { %v2592_v32 = vpop.f32.mrf.mxu3 }
 0x5cb   :  { %v2900_v57 = vpop.f32.mrf.mxu1 }
 0x5cc   :  { %v2901_v24 = vadd.f32 %v2900_v57, %v2732_v12  ;;  %v5936_v12 = vld [vmem:[#allocation104_spill] sm:$0xff]  ;;  %v5937_v57 = vld [vmem:[#allocation98_spill] sm:$0xff] }
 0x5cd   :  { %2641 = vmatmul.bf16.gmra.mxu3 %v5936_v12  ;;  %v5943_v12 = vld [vmem:[#allocation10_spill] sm:$0xff] }
 0x5ce   :  { %3060 = vst [vmem:[#allocation5] sm:$0xff] %v2901_v24  ;;  %2939 = vmatmul.bf16.gmra.mxu1 %v5930_v0  ;;  %2810 = vmatmul.bf16.gmra.mxu0 %v5937_v57  ;;  %v2418_v0 = vpop.f32.mrf.mxu2  ;;  %v2594_v41 = vpop.f32.mrf.mxu3  ;;  %v2752_v57 = vadd.f32 %v2751_v2, %v2583_v38 }
 0x5cf   :  { %v2419_v22 = vadd.f32 %v5469_v47, %v2418_v0 }
 0x5d1   :  { %v2588_v2 = vadd.f32 %v2587_v14, %v2419_v22 }
 0x5d3   :  { %v2902_v51 = vpop.f32.mrf.mxu1 }
 0x5d4   :  { %v2903_v6 = vadd.f32 %v2902_v51, %v2734_v21  ;;  %v2756_v21 = vpop.f32.mrf.mxu0  ;;  %v2744_v51 = vadd.f32 %v2743_v26, %v2575_v62  ;;  %v5942_v26 = vld [vmem:[#allocation86_spill] sm:$0xff] }
 0x5d6   :  { %3061 = vst [vmem:[#allocation5 + $0x8] sm:$0xff] %v2903_v6  ;;  %v2420_v7 = vpop.f32.mrf.mxu2  ;;  %2477 = vmatmul.bf16.gmra.mxu2 %v5939_v29  ;;  %v2597_v62 = vpop.f32.mrf.mxu3 }
 0x5d7   :  { %v2421_v54 = vadd.f32 %v5469_v47, %v2420_v7 }
 0x5d9   :  { %v2590_v14 = vadd.f32 %v2589_v17, %v2421_v54 }
 0x5db   :  { %v2905_v37 = vpop.f32.mrf.mxu1 }
 0x5dc   :  { %v2906_v11 = vadd.f32 %v2905_v37, %v2737_v58  ;;  %v5940_v58 = vld [vmem:[#allocation107_spill] sm:$0xff]  ;;  %v2758_v34 = vpop.f32.mrf.mxu0  ;;  %v5941_v37 = vld [vmem:[#allocation100_spill] sm:$0xff] }
 0x5dd   :  { %2646 = vmatmul.bf16.gmra.mxu3 %v5940_v58  ;;  %v5947_v58 = vld [vmem:[#allocation11_spill] sm:$0xff] }
 0x5de   :  { %3062 = vst [vmem:[#allocation5 + $0x10] sm:$0xff] %v2906_v11  ;;  %2944 = vmatmul.bf16.gmra.mxu1 %v5934_v59  ;;  %2815 = vmatmul.bf16.gmra.mxu0 %v5941_v37  ;;  %v2423_v59 = vpop.f32.mrf.mxu2  ;;  %v2599_v25 = vpop.f32.mrf.mxu3  ;;  %v2757_v37 = vadd.f32 %v2756_v21, %v2588_v2 }
 0x5df   :  { %v2424_v9 = vadd.f32 %v5469_v47, %v2423_v59 }
 0x5e1   :  { %v2593_v21 = vadd.f32 %v2592_v32, %v2424_v9 }
 0x5e3   :  { %v2907_v33 = vpop.f32.mrf.mxu1 }
 0x5e4   :  { %v2908_v56 = vadd.f32 %v2907_v33, %v2739_v42  ;;  %v2761_v42 = vpop.f32.mrf.mxu0  ;;  %v2749_v33 = vadd.f32 %v2748_v10, %v2580_v50  ;;  %v5946_v10 = vld [vmem:[#allocation89_spill] sm:$0xff] }
 0x5e6   :  { %3063 = vst [vmem:[#allocation5 + $0x18] sm:$0xff] %v2908_v56  ;;  %v2425_v15 = vpop.f32.mrf.mxu2  ;;  %2482 = vmatmul.bf16.gmra.mxu2 %v5943_v12  ;;  %v2602_v50 = vpop.f32.mrf.mxu3 }
 0x5e7   :  { %v2426_v17 = vadd.f32 %v5469_v47, %v2425_v15 }
 0x5e9   :  { %v2595_v32 = vadd.f32 %v2594_v41, %v2426_v17 }
 0x5eb   :  { %v2910_v24 = vpop.f32.mrf.mxu1 }
 0x5ec   :  { %v2911_v13 = vadd.f32 %v2910_v24, %v2742_v20  ;;  %v5944_v20 = vld [vmem:[#allocation110_spill] sm:$0xff]  ;;  %v2763_v55 = vpop.f32.mrf.mxu0  ;;  %v5945_v24 = vld [vmem:[#allocation103_spill] sm:$0xff] }
 0x5ed   :  { %2651 = vmatmul.bf16.gmra.mxu3 %v5944_v20  ;;  %v5951_v20 = vld [vmem:[#allocation12_spill] sm:$0xff] }
 0x5ee   :  { %3064 = vst [vmem:[#allocation5 + $0x20] sm:$0xff] %v2911_v13  ;;  %2949 = vmatmul.bf16.gmra.mxu1 %v5938_v1  ;;  %2820 = vmatmul.bf16.gmra.mxu0 %v5945_v24  ;;  %v2428_v1 = vpop.f32.mrf.mxu2  ;;  %v2604_v7 = vpop.f32.mrf.mxu3  ;;  %v2762_v24 = vadd.f32 %v2761_v42, %v2593_v21 }
 0x5ef   :  { %v2429_v22 = vadd.f32 %v5469_v47, %v2428_v1 }
 0x5f1   :  { %v2598_v42 = vadd.f32 %v2597_v62, %v2429_v22 }
 0x5f3   :  { %v2912_v6 = vpop.f32.mrf.mxu1 }
 0x5f4   :  { %v2913_v61 = vadd.f32 %v2912_v6, %v2744_v51  ;;  %v2766_v51 = vpop.f32.mrf.mxu0  ;;  %v2754_v6 = vadd.f32 %v2753_v8, %v2585_v52  ;;  %v5950_v8 = vld [vmem:[#allocation91_spill] sm:$0xff] }
 0x5f6   :  { %3065 = vst [vmem:[#allocation5 + $0x28] sm:$0xff] %v2913_v61  ;;  %v2430_v29 = vpop.f32.mrf.mxu2  ;;  %2487 = vmatmul.bf16.gmra.mxu2 %v5947_v58  ;;  %v2607_v52 = vpop.f32.mrf.mxu3 }
 0x5f7   :  { %v2431_v41 = vadd.f32 %v5469_v47, %v2430_v29 }
 0x5f9   :  { %v2600_v62 = vadd.f32 %v2599_v25, %v2431_v41 }
 0x5fb   :  { %v2915_v11 = vpop.f32.mrf.mxu1 }
 0x5fc   :  { %v2916_v3 = vadd.f32 %v2915_v11, %v2747_v19  ;;  %v5948_v19 = vld [vmem:[#allocation113_spill] sm:$0xff]  ;;  %v2768_v43 = vpop.f32.mrf.mxu0  ;;  %v5949_v11 = vld [vmem:[#allocation106_spill] sm:$0xff] }
 0x5fd   :  { %2656 = vmatmul.bf16.gmra.mxu3 %v5948_v19  ;;  %v5955_v19 = vld [vmem:[#allocation13_spill] sm:$0xff] }
 0x5fe   :  { %3066 = vst [vmem:[#allocation5 + $0x30] sm:$0xff] %v2916_v3  ;;  %2954 = vmatmul.bf16.gmra.mxu1 %v5942_v26  ;;  %2825 = vmatmul.bf16.gmra.mxu0 %v5949_v11  ;;  %v2433_v26 = vpop.f32.mrf.mxu2  ;;  %v2609_v15 = vpop.f32.mrf.mxu3  ;;  %v2767_v11 = vadd.f32 %v2766_v51, %v2598_v42 }
 0x5ff   :  { %v2434_v9 = vadd.f32 %v5469_v47, %v2433_v26 }
 0x601   :  { %v2603_v51 = vadd.f32 %v2602_v50, %v2434_v9 }
 0x603   :  { %v2917_v56 = vpop.f32.mrf.mxu1 }
 0x604   :  { %v2918_v16 = vadd.f32 %v2917_v56, %v2749_v33  ;;  %v2771_v33 = vpop.f32.mrf.mxu0  ;;  %v2759_v56 = vadd.f32 %v2758_v34, %v2590_v14  ;;  %v5954_v34 = vld [vmem:[#allocation94_spill] sm:$0xff] }
 0x606   :  { %3067 = vst [vmem:[#allocation5 + $0x38] sm:$0xff] %v2918_v16  ;;  %v2435_v12 = vpop.f32.mrf.mxu2  ;;  %2492 = vmatmul.bf16.gmra.mxu2 %v5951_v20  ;;  %v2612_v14 = vpop.f32.mrf.mxu3 }
 0x607   :  { %v2436_v25 = vadd.f32 %v5469_v47, %v2435_v12 }
 0x609   :  { %v2605_v50 = vadd.f32 %v2604_v7, %v2436_v25 }
 0x60b   :  { %v2920_v13 = vpop.f32.mrf.mxu1 }
 0x60c   :  { %v2921_v36 = vadd.f32 %v2920_v13, %v2752_v57  ;;  %v5952_v57 = vld [vmem:[#allocation116_spill] sm:$0xff]  ;;  %v2773_v28 = vpop.f32.mrf.mxu0  ;;  %v5953_v13 = vld [vmem:[#allocation109_spill] sm:$0xff] }
 0x60d   :  { %2661 = vmatmul.bf16.gmra.mxu3 %v5952_v57  ;;  %v5959_v57 = vld [vmem:[#allocation14_spill] sm:$0xff] }
 0x60e   :  { %3068 = vst [vmem:[#allocation5 + $0x40] sm:$0xff] %v2921_v36  ;;  %2959 = vmatmul.bf16.gmra.mxu1 %v5946_v10  ;;  %2830 = vmatmul.bf16.gmra.mxu0 %v5953_v13  ;;  %v2438_v10 = vpop.f32.mrf.mxu2  ;;  %v2614_v29 = vpop.f32.mrf.mxu3  ;;  %v2772_v13 = vadd.f32 %v2771_v33, %v2603_v51 }
 0x60f   :  { %v2439_v22 = vadd.f32 %v5469_v47, %v2438_v10 }
 0x611   :  { %v2608_v33 = vadd.f32 %v2607_v52, %v2439_v22 }
 0x613   :  { %v2922_v61 = vpop.f32.mrf.mxu1 }
 0x614   :  { %v2923_v4 = vadd.f32 %v2922_v61, %v2754_v6  ;;  %v2776_v6 = vpop.f32.mrf.mxu0  ;;  %v2764_v61 = vadd.f32 %v2763_v55, %v2595_v32  ;;  %v5958_v55 = vld [vmem:[#allocation97_spill] sm:$0xff] }
 0x616   :  { %3069 = vst [vmem:[#allocation5 + $0x48] sm:$0xff] %v2923_v4  ;;  %v2440_v58 = vpop.f32.mrf.mxu2  ;;  %2497 = vmatmul.bf16.gmra.mxu2 %v5955_v19  ;;  %v2617_v32 = vpop.f32.mrf.mxu3 }
 0x617   :  { %v2441_v7 = vadd.f32 %v5469_v47, %v2440_v58 }
 0x619   :  { %v2610_v52 = vadd.f32 %v2609_v15, %v2441_v7  ;;  %v5972_v7 = vld [vmem:[#allocation124_spill] sm:$0xff] }
 0x61b   :  { %v2925_v3 = vpop.f32.mrf.mxu1 }
 0x61c   :  { %v2926_v0 = vadd.f32 %v2925_v3, %v2757_v37  ;;  %v5956_v37 = vld [vmem:[#allocation119_spill] sm:$0xff]  ;;  %v2778_v54 = vpop.f32.mrf.mxu0  ;;  %v5957_v3 = vld [vmem:[#allocation112_spill] sm:$0xff] }
 0x61d   :  { %2666 = vmatmul.bf16.gmra.mxu3 %v5956_v37  ;;  %v5963_v37 = vld [vmem:[#allocation15_spill] sm:$0xff] }
 0x61e   :  { %3070 = vst [vmem:[#allocation5 + $0x50] sm:$0xff] %v2926_v0  ;;  %2964 = vmatmul.bf16.gmra.mxu1 %v5950_v8  ;;  %2835 = vmatmul.bf16.gmra.mxu0 %v5957_v3  ;;  %v2443_v8 = vpop.f32.mrf.mxu2  ;;  %v2619_v12 = vpop.f32.mrf.mxu3  ;;  %v2777_v3 = vadd.f32 %v2776_v6, %v2608_v33 }
 0x61f   :  { %v2444_v9 = vadd.f32 %v5469_v47, %v2443_v8 }
 0x621   :  { %v2613_v6 = vadd.f32 %v2612_v14, %v2444_v9 }
 0x623   :  { %v2927_v16 = vpop.f32.mrf.mxu1 }
 0x624   :  { %v2928_v38 = vadd.f32 %v2927_v16, %v2759_v56  ;;  %v2781_v56 = vpop.f32.mrf.mxu0  ;;  %v2769_v16 = vadd.f32 %v2768_v43, %v2600_v62  ;;  %v5962_v43 = vld [vmem:[#allocation99_spill] sm:$0xff] }
 0x626   :  { %3071 = vst [vmem:[#allocation5 + $0x58] sm:$0xff] %v2928_v38  ;;  %v2445_v20 = vpop.f32.mrf.mxu2  ;;  %2502 = vmatmul.bf16.gmra.mxu2 %v5959_v57  ;;  %v2622_v62 = vpop.f32.mrf.mxu3 }
 0x627   :  { %v2446_v15 = vadd.f32 %v5469_v47, %v2445_v20 }
 0x629   :  { %v2615_v14 = vadd.f32 %v2614_v29, %v2446_v15 }
 0x62b   :  { %v2930_v36 = vpop.f32.mrf.mxu1 }
 0x62c   :  { %v2931_v59 = vadd.f32 %v2930_v36, %v2762_v24  ;;  %v5960_v24 = vld [vmem:[#allocation122_spill] sm:$0xff]  ;;  %v2783_v17 = vpop.f32.mrf.mxu0  ;;  %v5961_v36 = vld [vmem:[#allocation115_spill] sm:$0xff] }
 0x62d   :  { %2671 = vmatmul.bf16.gmra.mxu3 %v5960_v24  ;;  %v5967_v24 = vld [vmem:[#allocation16_spill] sm:$0xff] }
 0x62e   :  { %3072 = vst [vmem:[#allocation5 + $0x60] sm:$0xff] %v2931_v59  ;;  %2969 = vmatmul.bf16.gmra.mxu1 %v5954_v34  ;;  %2840 = vmatmul.bf16.gmra.mxu0 %v5961_v36  ;;  %v2448_v34 = vpop.f32.mrf.mxu2  ;;  %v2624_v58 = vpop.f32.mrf.mxu3  ;;  %v2782_v36 = vadd.f32 %v2781_v56, %v2613_v6  ;;  %v5974_v6 = vld [vmem:[#allocation20_spill] sm:$0xff] }
 0x62f   :  { %v2449_v22 = vadd.f32 %v5469_v47, %v2448_v34 }
 0x631   :  { %v2618_v56 = vadd.f32 %v2617_v32, %v2449_v22 }
 0x633   :  { %v2932_v4 = vpop.f32.mrf.mxu1 }
 0x634   :  { %v2933_v2 = vadd.f32 %v2932_v4, %v2764_v61  ;;  %v2786_v61 = vpop.f32.mrf.mxu0  ;;  %v2774_v4 = vadd.f32 %v2773_v28, %v2605_v50  ;;  %v5966_v28 = vld [vmem:[#allocation102_spill] sm:$0xff] }
 0x636   :  { %3073 = vst [vmem:[#allocation5 + $0x68] sm:$0xff] %v2933_v2  ;;  %v2450_v19 = vpop.f32.mrf.mxu2  ;;  %2507 = vmatmul.bf16.gmra.mxu2 %v5963_v37  ;;  %v2627_v50 = vpop.f32.mrf.mxu3 }
 0x637   :  { %v2451_v29 = vadd.f32 %v5469_v47, %v2450_v19 }
 0x639   :  { %v2620_v32 = vadd.f32 %v2619_v12, %v2451_v29 }
 0x63b   :  { %v2935_v0 = vpop.f32.mrf.mxu1 }
 0x63c   :  { %v2936_v1 = vadd.f32 %v2935_v0, %v2767_v11  ;;  %v5964_v11 = vld [vmem:[#allocation125_spill] sm:$0xff]  ;;  %v2788_v41 = vpop.f32.mrf.mxu0  ;;  %v5965_v0 = vld [vmem:[#allocation118_spill] sm:$0xff] }
 0x63d   :  { %2676 = vmatmul.bf16.gmra.mxu3 %v5964_v11  ;;  %v5971_v11 = vld [vmem:[#allocation18_spill] sm:$0xff] }
 0x63e   :  { %3074 = vst [vmem:[#allocation5 + $0x70] sm:$0xff] %v2936_v1  ;;  %2974 = vmatmul.bf16.gmra.mxu1 %v5958_v55  ;;  %2845 = vmatmul.bf16.gmra.mxu0 %v5965_v0  ;;  %v2453_v55 = vpop.f32.mrf.mxu2  ;;  %v2629_v20 = vpop.f32.mrf.mxu3 }
 0x643   :  { %v2937_v38 = vpop.f32.mrf.mxu1 }
 0x644   :  { %v2938_v21 = vadd.f32 %v2937_v38, %v2769_v16  ;;  %v2791_v16 = vpop.f32.mrf.mxu0  ;;  %v2779_v38 = vadd.f32 %v2778_v54, %v2610_v52  ;;  %v5970_v54 = vld [vmem:[#allocation105_spill] sm:$0xff]  ;;  %v2454_v52 = vadd.f32 %v5469_v47, %v2453_v55 }
 0x646   :  { %3075 = vst [vmem:[#allocation5 + $0x78] sm:$0xff] %v2938_v21  ;;  %v2455_v57 = vpop.f32.mrf.mxu2  ;;  %2512 = vmatmul.bf16.gmra.mxu2 %v5967_v24 }
 0x647   :  { %v2456_v12 = vadd.f32 %v5469_v47, %v2455_v57 }
 0x64b   :  { %v2940_v59 = vpop.f32.mrf.mxu1 }
 0x64c   :  { %v2941_v26 = vadd.f32 %v2940_v59, %v2772_v13  ;;  %v5968_v13 = vld [vmem:[#allocation128_spill] sm:$0xff]  ;;  %v2793_v25 = vpop.f32.mrf.mxu0  ;;  %v5969_v59 = vld [vmem:[#allocation121_spill] sm:$0xff] }
 0x64d   :  { %2681 = vmatmul.bf16.gmra.mxu3 %v5968_v13 }
 0x64e   :  { %3076 = vst [vmem:[#allocation5 + $0x80] sm:$0xff] %v2941_v26  ;;  %2979 = vmatmul.bf16.gmra.mxu1 %v5962_v43  ;;  %2850 = vmatmul.bf16.gmra.mxu0 %v5969_v59  ;;  %v2458_v43 = vpop.f32.mrf.mxu2 }
 0x653   :  { %v2942_v2 = vpop.f32.mrf.mxu1 }
 0x654   :  { %v2943_v42 = vadd.f32 %v2942_v2, %v2774_v4  ;;  %v2796_v4 = vpop.f32.mrf.mxu0  ;;  %v2784_v2 = vadd.f32 %v2783_v17, %v2615_v14  ;;  %v5973_v17 = vld [vmem:[#allocation108_spill] sm:$0xff] }
 0x656   :  { %3077 = vst [vmem:[#allocation5 + $0x88] sm:$0xff] %v2943_v42  ;;  %v2460_v37 = vpop.f32.mrf.mxu2  ;;  %2517 = vmatmul.bf16.gmra.mxu2 %v5971_v11 }
 0x65b   :  { %v2945_v1 = vpop.f32.mrf.mxu1 }
 0x65c   :  { %v2946_v10 = vadd.f32 %v2945_v1, %v2777_v3  ;;  %v2787_v3 = vadd.f32 %v2786_v61, %v2618_v56  ;;  %v2798_v0 = vpop.f32.mrf.mxu0  ;;  %v2623_v61 = vadd.f32 %v2622_v62, %v2454_v52  ;;  %v2625_v62 = vadd.f32 %v2624_v58, %v2456_v12  ;;  %v5979_v52 = vld [vmem:[#allocation24_spill] sm:$0xff] }
 0x65d   :  { %2686 = vmatmul.bf16.gmra.mxu3 %v5149_v40  ;;  %v2461_v58 = vadd.f32 %v5469_v47, %v2460_v37 }
 0x65e   :  { %3078 = vst [vmem:[#allocation5 + $0x90] sm:$0xff] %v2946_v10  ;;  %2984 = vmatmul.bf16.gmra.mxu1 %v5966_v28  ;;  %2855 = vmatmul.bf16.gmra.mxu0 %v5972_v7  ;;  %v2463_v10 = vpop.f32.mrf.mxu2  ;;  %v2632_v28 = vpop.f32.mrf.mxu3  ;;  %v2792_v24 = vadd.f32 %v2791_v16, %v2623_v61  ;;  %v2794_v14 = vadd.f32 %v2793_v25, %v2625_v62  ;;  %v5978_v25 = vld [vmem:[#allocation114_spill] sm:$0xff] }
 0x65f   :  { %v2464_v29 = vadd.f32 %v5469_v47, %v2463_v10 }
 0x663   :  { %v2947_v21 = vpop.f32.mrf.mxu1 }
 0x664   :  { %v2948_v51 = vadd.f32 %v2947_v21, %v2779_v38  ;;  %v2801_v9 = vpop.f32.mrf.mxu0  ;;  %v2789_v38 = vadd.f32 %v2788_v41, %v2620_v32  ;;  %v5976_v41 = vld [vmem:[#allocation111_spill] sm:$0xff] }
 0x666   :  { %3079 = vst [vmem:[#allocation5 + $0x98] sm:$0xff] %v2948_v51  ;;  %v2465_v51 = vpop.f32.mrf.mxu2  ;;  %2522 = vmatmul.bf16.gmra.mxu2 %v5974_v6  ;;  %v2634_v19 = vpop.f32.mrf.mxu3 }
 0x66b   :  { %v2950_v26 = vpop.f32.mrf.mxu1 }
 0x66c   :  { %v2951_v8 = vadd.f32 %v2950_v26, %v2782_v36  ;;  %v2803_v13 = vpop.f32.mrf.mxu0  ;;  %v5975_v36 = vld [vmem:[#allocation127_spill] sm:$0xff] }
 0x66d   :  { %2691 = vmatmul.bf16.gmra.mxu3 %v5185_v44 }
 0x66e   :  { %3080 = vst [vmem:[#allocation5 + $0xa0] sm:$0xff] %v2951_v8  ;;  %2989 = vmatmul.bf16.gmra.mxu1 %v5970_v54  ;;  %2860 = vmatmul.bf16.gmra.mxu0 %v5975_v36  ;;  %v2468_v15 = vpop.f32.mrf.mxu2  ;;  %v2637_v26 = vpop.f32.mrf.mxu3  ;;  %v2459_v8 = vadd.f32 %v5469_v47, %v2458_v43 }
 0x66f   :  { %v2469_v6 = vadd.f32 %v5469_v47, %v2468_v15 }
 0x670   :  { %v2628_v16 = vadd.f32 %v2627_v50, %v2459_v8  ;;  %v2630_v50 = vadd.f32 %v2629_v20, %v2461_v58  ;;  %v2466_v20 = vadd.f32 %v5469_v47, %v2465_v51  ;;  %v5983_v58 = vld [vmem:[#allocation29_spill] sm:$0xff] }
 0x673   :  { %v2952_v42 = vpop.f32.mrf.mxu1 }
 0x674   :  { %v2953_v33 = vadd.f32 %v2952_v42, %v2784_v2  ;;  %v2806_v54 = vpop.f32.mrf.mxu0  ;;  %v5977_v42 = vld [vmem:[#allocation22_spill] sm:$0xff] }
 0x676   :  { %3081 = vst [vmem:[#allocation5 + $0xa8] sm:$0xff] %v2953_v33  ;;  %v2470_v2 = vpop.f32.mrf.mxu2  ;;  %2527 = vmatmul.bf16.gmra.mxu2 %v5977_v42  ;;  %v2639_v57 = vpop.f32.mrf.mxu3  ;;  %v2797_v33 = vadd.f32 %v2796_v4, %v2628_v16  ;;  %v2633_v4 = vadd.f32 %v2632_v28, %v2464_v29  ;;  %v2635_v28 = vadd.f32 %v2634_v19, %v2466_v20 }
 0x677   :  { %v2471_v19 = vadd.f32 %v5469_v47, %v2470_v2 }
 0x678   :  { %v2802_v37 = vadd.f32 %v2801_v9, %v2633_v4  ;;  %v2804_v36 = vadd.f32 %v2803_v13, %v2635_v28  ;;  %v2638_v9 = vadd.f32 %v2637_v26, %v2469_v6  ;;  %v5982_v13 = vld [vmem:[#allocation120_spill] sm:$0xff] }
 0x679   :  { %v2640_v26 = vadd.f32 %v2639_v57, %v2471_v19 }
 0x67a   :  { %v2807_v51 = vadd.f32 %v2806_v54, %v2638_v9 }
 0x67b   :  { %v2955_v1 = vpop.f32.mrf.mxu1 }
 0x67c   :  { %v2956_v34 = vadd.f32 %v2955_v1, %v2787_v3  ;;  %v2808_v56 = vpop.f32.mrf.mxu0 }
 0x67d   :  { %2696 = vmatmul.bf16.gmra.mxu3 %v5228_v49  ;;  %v2809_v16 = vadd.f32 %v2808_v56, %v2640_v26  ;;  %v5984_v56 = vld [vmem:[#allocation123_spill] sm:$0xff] }
 0x67e   :  { %3082 = vst [vmem:[#allocation5 + $0xb0] sm:$0xff] %v2956_v34  ;;  %2994 = vmatmul.bf16.gmra.mxu1 %v5973_v17  ;;  %2865 = vmatmul.bf16.gmra.mxu0 %v5143_v60  ;;  %v2473_v3 = vpop.f32.mrf.mxu2  ;;  %v2642_v7 = vpop.f32.mrf.mxu3  ;;  %v2799_v34 = vadd.f32 %v2798_v0, %v2630_v50  ;;  %v5980_v0 = vld [vmem:[#allocation117_spill] sm:$0xff] }
 0x683   :  { %v2957_v21 = vpop.f32.mrf.mxu1 }
 0x684   :  { %v2958_v40 = vadd.f32 %v2957_v21, %v2789_v38  ;;  %v2811_v1 = vpop.f32.mrf.mxu0 }
 0x686   :  { %3083 = vst [vmem:[#allocation5 + $0xb8] sm:$0xff] %v2958_v40  ;;  %v2475_v32 = vpop.f32.mrf.mxu2  ;;  %2532 = vmatmul.bf16.gmra.mxu2 %v5979_v52  ;;  %v2644_v60 = vpop.f32.mrf.mxu3  ;;  %v5985_v52 = vld [vmem:[#allocation33_spill] sm:$0xff] }
 0x687   :  { %v2476_v57 = vadd.f32 %v5469_v47, %v2475_v32 }
 0x689   :  { %v2645_v50 = vadd.f32 %v2644_v60, %v2476_v57 }
 0x68b   :  { %v2960_v59 = vpop.f32.mrf.mxu1 }
 0x68c   :  { %v2961_v55 = vadd.f32 %v2960_v59, %v2792_v24  ;;  %v2813_v38 = vpop.f32.mrf.mxu0 }
 0x68d   :  { %2701 = vmatmul.bf16.gmra.mxu3 %v5259_v35 }
 0x68e   :  { %3084 = vst [vmem:[#allocation5 + $0xc0] sm:$0xff] %v2961_v55  ;;  %2999 = vmatmul.bf16.gmra.mxu1 %v5976_v41  ;;  %2870 = vmatmul.bf16.gmra.mxu0 %v5175_v45  ;;  %v2478_v40 = vpop.f32.mrf.mxu2  ;;  %v2647_v61 = vpop.f32.mrf.mxu3  ;;  %v5981_v55 = vld [vmem:[#allocation26_spill] sm:$0xff] }
 0x68f   :  { %v2479_v29 = vadd.f32 %v5469_v47, %v2478_v40 }
 0x693   :  { %v2962_v22 = vpop.f32.mrf.mxu1 }
 0x694   :  { %v2963_v44 = vadd.f32 %v2962_v22, %v2794_v14  ;;  %v2816_v24 = vpop.f32.mrf.mxu0  ;;  %v2474_v22 = vadd.f32 %v5469_v47, %v2473_v3 }
 0x696   :  { %3085 = vst [vmem:[#allocation5 + $0xc8] sm:$0xff] %v2963_v44  ;;  %v2480_v59 = vpop.f32.mrf.mxu2  ;;  %2537 = vmatmul.bf16.gmra.mxu2 %v5981_v55  ;;  %v2649_v45 = vpop.f32.mrf.mxu3  ;;  %v2643_v54 = vadd.f32 %v2642_v7, %v2474_v22 }
 0x697   :  { %v2481_v60 = vadd.f32 %v5469_v47, %v2480_v59 }
 0x698   :  { %v2812_v2 = vadd.f32 %v2811_v1, %v2643_v54  ;;  %v2648_v1 = vadd.f32 %v2647_v61, %v2479_v29 }
 0x699   :  { %v2650_v40 = vadd.f32 %v2649_v45, %v2481_v60  ;;  %v5987_v45 = vld [vmem:[#allocation129_spill] sm:$0xff] }
 0x69a   :  { %v2817_v32 = vadd.f32 %v2816_v24, %v2648_v1 }
 0x69b   :  { %v2965_v11 = vpop.f32.mrf.mxu1 }
 0x69c   :  { %v2966_v43 = vadd.f32 %v2965_v11, %v2797_v33  ;;  %v2818_v41 = vpop.f32.mrf.mxu0 }
 0x69d   :  { %2706 = vmatmul.bf16.gmra.mxu3 %v5288_v30  ;;  %v2819_v6 = vadd.f32 %v2818_v41, %v2650_v40 }
 0x69e   :  { %3086 = vst [vmem:[#allocation5 + $0xd0] sm:$0xff] %v2966_v43  ;;  %3004 = vmatmul.bf16.gmra.mxu1 %v5978_v25  ;;  %2875 = vmatmul.bf16.gmra.mxu0 %v5215_v18  ;;  %v2483_v8 = vpop.f32.mrf.mxu2  ;;  %v2652_v14 = vpop.f32.mrf.mxu3 }
 0x69f   :  { %v2484_v28 = vadd.f32 %v5469_v47, %v2483_v8 }
 0x6a1   :  { %v2653_v24 = vadd.f32 %v2652_v14, %v2484_v28 }
 0x6a3   :  { %v2967_v17 = vpop.f32.mrf.mxu1 }
 0x6a4   :  { %v2968_v49 = vadd.f32 %v2967_v17, %v2799_v34  ;;  %v2821_v44 = vpop.f32.mrf.mxu0  ;;  %v2814_v17 = vadd.f32 %v2813_v38, %v2645_v50  ;;  %v5986_v38 = vld [vmem:[#allocation126_spill] sm:$0xff] }
 0x6a6   :  { %3087 = vst [vmem:[#allocation5 + $0xd8] sm:$0xff] %v2968_v49  ;;  %v2485_v33 = vpop.f32.mrf.mxu2  ;;  %2542 = vmatmul.bf16.gmra.mxu2 %v5983_v58  ;;  %v2654_v18 = vpop.f32.mrf.mxu3 }
 0x6a7   :  { %v2486_v59 = vadd.f32 %v5469_v47, %v2485_v33 }
 0x6ab   :  { %v2970_v21 = vpop.f32.mrf.mxu1 }
 0x6ac   :  { %v2971_v10 = vadd.f32 %v2970_v21, %v2802_v37  ;;  %v2823_v11 = vpop.f32.mrf.mxu0 }
 0x6ad   :  { %2711 = vmatmul.bf16.gmra.mxu3 %v5306_v48 }
 0x6ae   :  { %3088 = vst [vmem:[#allocation5 + $0xe0] sm:$0xff] %v2971_v10  ;;  %3009 = vmatmul.bf16.gmra.mxu1 %v5980_v0  ;;  %2880 = vmatmul.bf16.gmra.mxu0 %v5249_v39  ;;  %v2488_v25 = vpop.f32.mrf.mxu2  ;;  %v2657_v7 = vpop.f32.mrf.mxu3 }
 0x6af   :  { %v2489_v41 = vadd.f32 %v5469_v47, %v2488_v25 }
 0x6b1   :  { %v2658_v22 = vadd.f32 %v2657_v7, %v2489_v41 }
 0x6b3   :  { %v2972_v12 = vpop.f32.mrf.mxu1 }
 0x6b4   :  { %v2973_v35 = vadd.f32 %v2972_v12, %v2804_v36  ;;  %v2826_v34 = vpop.f32.mrf.mxu0 }
 0x6b6   :  { %3089 = vst [vmem:[#allocation5 + $0xe8] sm:$0xff] %v2973_v35  ;;  %v2490_v4 = vpop.f32.mrf.mxu2  ;;  %2547 = vmatmul.bf16.gmra.mxu2 %v5985_v52  ;;  %v2659_v39 = vpop.f32.mrf.mxu3  ;;  %v2822_v35 = vadd.f32 %v2821_v44, %v2653_v24 }
 0x6b7   :  { %v2491_v54 = vadd.f32 %v5469_v47, %v2490_v4 }
 0x6bb   :  { %v2975_v62 = vpop.f32.mrf.mxu1 }
 0x6bc   :  { %v2976_v15 = vadd.f32 %v2975_v62, %v2807_v51  ;;  %v2828_v37 = vpop.f32.mrf.mxu0  ;;  %v2655_v62 = vadd.f32 %v2654_v18, %v2486_v59  ;;  %v2660_v18 = vadd.f32 %v2659_v39, %v2491_v54 }
 0x6bd   :  { %2716 = vmatmul.bf16.gmra.mxu3 %v5319_v46 }
 0x6be   :  { %3090 = vst [vmem:[#allocation5 + $0xf0] sm:$0xff] %v2976_v15  ;;  %3014 = vmatmul.bf16.gmra.mxu1 %v5982_v13  ;;  %2885 = vmatmul.bf16.gmra.mxu0 %v5278_v5  ;;  %v2493_v10 = vpop.f32.mrf.mxu2  ;;  %v2662_v0 = vpop.f32.mrf.mxu3  ;;  %v2824_v13 = vadd.f32 %v2823_v11, %v2655_v62 }
 0x6bf   :  { %v2494_v11 = vadd.f32 %v5469_v47, %v2493_v10 }
 0x6c1   :  { %v2663_v50 = vadd.f32 %v2662_v0, %v2494_v11 }
 0x6c3   :  { %v2977_v42 = vpop.f32.mrf.mxu1 }
 0x6c4   :  { %v2978_v30 = vadd.f32 %v2977_v42, %v2809_v16  ;;  %v2831_v61 = vpop.f32.mrf.mxu0  ;;  %v2827_v42 = vadd.f32 %v2826_v34, %v2658_v22 }
 0x6c5   :  { %v2832_v34 = vadd.f32 %v2831_v61, %v2663_v50 }
 0x6c6   :  { %3091 = vst [vmem:[#allocation5 + $0xf8] sm:$0xff] %v2978_v30  ;;  %v2495_v12 = vpop.f32.mrf.mxu2  ;;  %v2664_v5 = vpop.f32.mrf.mxu3 }
 0x6cb   :  { %v2980_v43 = vpop.f32.mrf.mxu1 }
 0x6cc   :  { %v2981_v3 = vadd.f32 %v2980_v43, %v2812_v2  ;;  %v2833_v9 = vpop.f32.mrf.mxu0 }
 0x6ce   :  { %3092 = vst [vmem:[#allocation5 + $0x100] sm:$0xff] %v2981_v3  ;;  %3019 = vmatmul.bf16.gmra.mxu1 %v5984_v56  ;;  %v2498_v19 = vpop.f32.mrf.mxu2  ;;  %v2667_v15 = vpop.f32.mrf.mxu3  ;;  %v2829_v3 = vadd.f32 %v2828_v37, %v2660_v18 }
 0x6cf   :  { %v2499_v52 = vadd.f32 %v5469_v47, %v2498_v19 }
 0x6d3   :  { %v2982_v49 = vpop.f32.mrf.mxu1 }
 0x6d4   :  { %v2983_v48 = vadd.f32 %v2982_v49, %v2814_v17  ;;  %v2836_v8 = vpop.f32.mrf.mxu0  ;;  %v2496_v17 = vadd.f32 %v5469_v47, %v2495_v12 }
 0x6d6   :  { %3093 = vst [vmem:[#allocation5 + $0x108] sm:$0xff] %v2983_v48  ;;  %v2500_v16 = vpop.f32.mrf.mxu2  ;;  %v2669_v44 = vpop.f32.mrf.mxu3 }
 0x6d7   :  { %v2501_v40 = vadd.f32 %v5469_v47, %v2500_v16 }
 0x6db   :  { %v2985_v20 = vpop.f32.mrf.mxu1 }
 0x6dc   :  { %v2986_v21 = vadd.f32 %v2985_v20, %v2817_v32  ;;  %v2838_v30 = vpop.f32.mrf.mxu0  ;;  %v2668_v20 = vadd.f32 %v2667_v15, %v2499_v52 }
 0x6de   :  { %3094 = vst [vmem:[#allocation5 + $0x110] sm:$0xff] %v2986_v21  ;;  %3024 = vmatmul.bf16.gmra.mxu1 %v5986_v38  ;;  %v2503_v2 = vpop.f32.mrf.mxu2  ;;  %v2672_v57 = vpop.f32.mrf.mxu3  ;;  %v2837_v38 = vadd.f32 %v2836_v8, %v2668_v20 }
 0x6e3   :  { %v2987_v36 = vpop.f32.mrf.mxu1 }
 0x6e4   :  { %v2988_v46 = vadd.f32 %v2987_v36, %v2819_v6  ;;  %v2841_v43 = vpop.f32.mrf.mxu0  ;;  %v2504_v36 = vadd.f32 %v5469_v47, %v2503_v2 }
 0x6e6   :  { %3095 = vst [vmem:[#allocation5 + $0x118] sm:$0xff] %v2988_v46  ;;  %v2505_v7 = vpop.f32.mrf.mxu2  ;;  %v2674_v29 = vpop.f32.mrf.mxu3 }
 0x6eb   :  { %v2990_v55 = vpop.f32.mrf.mxu1 }
 0x6ec   :  { %v2991_v51 = vadd.f32 %v2990_v55, %v2822_v35  ;;  %v2843_v48 = vpop.f32.mrf.mxu0  ;;  %v2673_v35 = vadd.f32 %v2672_v57, %v2504_v36 }
 0x6ee   :  { %3096 = vst [vmem:[#allocation5 + $0x120] sm:$0xff] %v2991_v51  ;;  %3029 = vmatmul.bf16.gmra.mxu1 %v5987_v45  ;;  %v2508_v4 = vpop.f32.mrf.mxu2  ;;  %v2677_v39 = vpop.f32.mrf.mxu3  ;;  %v2842_v59 = vadd.f32 %v2841_v43, %v2673_v35  ;;  %v2506_v51 = vadd.f32 %v5469_v47, %v2505_v7 }
 0x6ef   :  { %v2509_v41 = vadd.f32 %v5469_v47, %v2508_v4 }
 0x6f1   :  { %v2678_v22 = vadd.f32 %v2677_v39, %v2509_v41 }
 0x6f3   :  { %v2992_v26 = vpop.f32.mrf.mxu1 }
 0x6f4   :  { %v2993_v14 = vadd.f32 %v2992_v26, %v2824_v13  ;;  %v2846_v21 = vpop.f32.mrf.mxu0 }
 0x6f6   :  { %3097 = vst [vmem:[#allocation5 + $0x128] sm:$0xff] %v2993_v14  ;;  %v2510_v10 = vpop.f32.mrf.mxu2  ;;  %v2679_v28 = vpop.f32.mrf.mxu3 }
 0x6fb   :  { %v2995_v33 = vpop.f32.mrf.mxu1 }
 0x6fc   :  { %v2996_v58 = vadd.f32 %v2995_v33, %v2827_v42  ;;  %v2848_v6 = vpop.f32.mrf.mxu0 }
 0x6fe   :  { %3098 = vst [vmem:[#allocation5 + $0x130] sm:$0xff] %v2996_v58  ;;  %3034 = vmatmul.bf16.gmra.mxu1 %v5160_v23  ;;  %v2665_v23 = vadd.f32 %v2664_v5, %v2496_v17  ;;  %v2513_v46 = vpop.f32.mrf.mxu2 }
 0x6ff   :  { %v2514_v18 = vadd.f32 %v5469_v47, %v2513_v46 }
 0x700   :  { %v2834_v32 = vadd.f32 %v2833_v9, %v2665_v23  ;;  %v2682_v9 = vpop.f32.mrf.mxu3 }
 0x703   :  { %v2997_v25 = vpop.f32.mrf.mxu1 }
 0x704   :  { %v2998_v56 = vadd.f32 %v2997_v25, %v2829_v3  ;;  %v2851_v55 = vpop.f32.mrf.mxu0  ;;  %v2683_v25 = vadd.f32 %v2682_v9, %v2514_v18 }
 0x706   :  { %3099 = vst [vmem:[#allocation5 + $0x138] sm:$0xff] %v2998_v56  ;;  %v2515_v45 = vpop.f32.mrf.mxu2  ;;  %v2852_v50 = vadd.f32 %v2851_v55, %v2683_v25 }
 0x708   :  { %v2684_v15 = vpop.f32.mrf.mxu3 }
 0x70b   :  { %v3000_v49 = vpop.f32.mrf.mxu1 }
 0x70c   :  { %v3001_v1 = vadd.f32 %v3000_v49, %v2832_v34  ;;  %v2853_v26 = vpop.f32.mrf.mxu0 }
 0x70e   :  { %3100 = vst [vmem:[#allocation5 + $0x140] sm:$0xff] %v3001_v1  ;;  %3039 = vmatmul.bf16.gmra.mxu1 %v5198_v63  ;;  %v2670_v63 = vadd.f32 %v2669_v44, %v2501_v40  ;;  %v2518_v16 = vpop.f32.mrf.mxu2  ;;  %v2847_v44 = vadd.f32 %v2846_v21, %v2678_v22 }
 0x710   :  { %v2839_v24 = vadd.f32 %v2838_v30, %v2670_v63  ;;  %v2687_v42 = vpop.f32.mrf.mxu3  ;;  %v2511_v30 = vadd.f32 %v5469_v47, %v2510_v10 }
 0x713   :  { %v3002_v37 = vpop.f32.mrf.mxu1 }
 0x714   :  { %v3003_v60 = vadd.f32 %v3002_v37, %v2834_v32  ;;  %v2856_v58 = vpop.f32.mrf.mxu0 }
 0x716   :  { %3101 = vst [vmem:[#allocation5 + $0x148] sm:$0xff] %v3003_v60  ;;  %v2520_v2 = vpop.f32.mrf.mxu2 }
 0x718   :  { %v2689_v43 = vpop.f32.mrf.mxu3 }
 0x71b   :  { %v3005_v0 = vpop.f32.mrf.mxu1 }
 0x71c   :  { %v3006_v61 = vadd.f32 %v3005_v0, %v2837_v38  ;;  %v2858_v56 = vpop.f32.mrf.mxu0 }
 0x71e   :  { %3102 = vst [vmem:[#allocation5 + $0x150] sm:$0xff] %v3006_v61  ;;  %3044 = vmatmul.bf16.gmra.mxu1 %v5238_v53  ;;  %v2675_v53 = vadd.f32 %v2674_v29, %v2506_v51  ;;  %v2523_v7 = vpop.f32.mrf.mxu2  ;;  %v5602_v29 = vld [vmem:[%s5627_s5] ss:$0 sm:$0xff]  ;;  %s4094_s5 = smov [#allocation5]  }
 0x71f   :  { %v2521_v20 = vadd.f32 %v5602_v29, %v2520_v2  ;;  %s3128_s11 = sshll.u32 %s4094_s5, 4  ;;  %s3129_s11 = int_to_ptr.vmem [resolvable:$true] %s3128_s11 }
 0x720   :  { %v2844_v8 = vadd.f32 %v2843_v48, %v2675_v53  ;;  %v2692_v49 = vpop.f32.mrf.mxu3  ;;  %v2519_v48 = vadd.f32 %v5602_v29, %v2518_v16 }
 0x721   :  { %v2690_v0 = vadd.f32 %v2689_v43, %v2521_v20 }
 0x722   :  { %v2688_v32 = vadd.f32 %v2687_v42, %v2519_v48 }
 0x723   :  { %v3007_v12 = vpop.f32.mrf.mxu1  ;;  %v2859_v63 = vadd.f32 %v2858_v56, %v2690_v0 }
 0x724   :  { %v3008_v5 = vadd.f32 %v3007_v12, %v2839_v24  ;;  %v2861_v1 = vpop.f32.mrf.mxu0  ;;  %v2857_v60 = vadd.f32 %v2856_v58, %v2688_v32 }
 0x726   :  { %3103 = vst [vmem:[#allocation5 + $0x158] sm:$0xff] %v3008_v5  ;;  %v2525_v52 = vpop.f32.mrf.mxu2 }
 0x727   :  { %v2526_v35 = vadd.f32 %v5602_v29, %v2525_v52 }
 0x728   :  { %v2694_v37 = vpop.f32.mrf.mxu3 }
 0x729   :  { %v2695_v51 = vadd.f32 %v2694_v37, %v2526_v35 }
 0x72b   :  { %v3010_v19 = vpop.f32.mrf.mxu1 }
 0x72c   :  { %v3011_v62 = vadd.f32 %v3010_v19, %v2842_v59  ;;  %v2863_v10 = vpop.f32.mrf.mxu0 }
 0x72d   :  { %v2864_v53 = vadd.f32 %v2863_v10, %v2695_v51 }
 0x72e   :  { %3104 = vst [vmem:[#allocation5 + $0x160] sm:$0xff] %v3011_v62  ;;  %3049 = vmatmul.bf16.gmra.mxu1 %v5269_v27  ;;  %v2680_v27 = vadd.f32 %v2679_v28, %v2511_v30  ;;  %v2528_v40 = vpop.f32.mrf.mxu2  ;;  %v2524_v28 = vadd.f32 %v5602_v29, %v2523_v7 }
 0x730   :  { %v2849_v57 = vadd.f32 %v2848_v6, %v2680_v27  ;;  %v2697_v61 = vpop.f32.mrf.mxu3  ;;  %v2693_v46 = vadd.f32 %v2692_v49, %v2524_v28 }
 0x732   :  { %v2862_v5 = vadd.f32 %v2861_v1, %v2693_v46 }
 0x733   :  { %v3012_v13 = vpop.f32.mrf.mxu1 }
 0x734   :  { %v3013_v14 = vadd.f32 %v3012_v13, %v2844_v8  ;;  %v2866_v24 = vpop.f32.mrf.mxu0 }
 0x736   :  { %3105 = vst [vmem:[#allocation5 + $0x168] sm:$0xff] %v3013_v14  ;;  %v2530_v12 = vpop.f32.mrf.mxu2 }
 0x737   :  { %v2531_v22 = vadd.f32 %v5602_v29, %v2530_v12 }
 0x738   :  { %v2699_v59 = vpop.f32.mrf.mxu3 }
 0x739   :  { %v2700_v30 = vadd.f32 %v2699_v59, %v2531_v22 }
 0x73b   :  { %v3015_v54 = vpop.f32.mrf.mxu1 }
 0x73c   :  { %v3016_v33 = vadd.f32 %v3015_v54, %v2847_v44  ;;  %v2868_v19 = vpop.f32.mrf.mxu0 }
 0x73d   :  { %v2869_v58 = vadd.f32 %v2868_v19, %v2700_v30 }
 0x73e   :  { %3106 = vst [vmem:[#allocation5 + $0x170] sm:$0xff] %v3016_v33  ;;  %3054 = vmatmul.bf16.gmra.mxu1 %v5294_v31  ;;  %v2516_v31 = vadd.f32 %v5602_v29, %v2515_v45  ;;  %v2529_v45 = vadd.f32 %v5602_v29, %v2528_v40  ;;  %v2533_v62 = vpop.f32.mrf.mxu2 }
 0x73f   :  { %v2534_v33 = vadd.f32 %v5602_v29, %v2533_v62 }
 0x740   :  { %v2685_v47 = vadd.f32 %v2684_v15, %v2516_v31  ;;  %v2698_v8 = vadd.f32 %v2697_v61, %v2529_v45  ;;  %v2702_v13 = vpop.f32.mrf.mxu3 }
 0x742   :  { %v2854_v4 = vadd.f32 %v2853_v26, %v2685_v47  ;;  %v2867_v26 = vadd.f32 %v2866_v24, %v2698_v8 }
 0x743   :  { %v3017_v11 = vpop.f32.mrf.mxu1 }
 0x744   :  { %v3018_v3 = vadd.f32 %v3017_v11, %v2849_v57  ;;  %v2871_v14 = vpop.f32.mrf.mxu0  ;;  %v2703_v57 = vadd.f32 %v2702_v13, %v2534_v33 }
 0x746   :  { %3107 = vst [vmem:[#allocation5 + $0x178] sm:$0xff] %v3018_v3  ;;  %v2535_v44 = vpop.f32.mrf.mxu2  ;;  %v2872_v43 = vadd.f32 %v2871_v14, %v2703_v57 }
 0x747   :  { %v2536_v25 = vadd.f32 %v5602_v29, %v2535_v44 }
 0x748   :  { %v2704_v54 = vpop.f32.mrf.mxu3 }
 0x749   :  { %v2705_v31 = vadd.f32 %v2704_v54, %v2536_v25 }
 0x74b   :  { %v3020_v34 = vpop.f32.mrf.mxu1 }
 0x74c   :  { %v3021_v17 = vadd.f32 %v3020_v34, %v2852_v50  ;;  %v2873_v2 = vpop.f32.mrf.mxu0 }
 0x74d   :  { %v2874_v49 = vadd.f32 %v2873_v2, %v2705_v31 }
 0x74e   :  { %3108 = vst [vmem:[#allocation5 + $0x180] sm:$0xff] %v3021_v17  ;;  %v2538_v11 = vpop.f32.mrf.mxu2 }
 0x74f   :  { %v2539_v17 = vadd.f32 %v5602_v29, %v2538_v11 }
 0x750   :  { %v2707_v3 = vpop.f32.mrf.mxu3 }
 0x753   :  { %v3022_v23 = vpop.f32.mrf.mxu1 }
 0x754   :  { %v3023_v39 = vadd.f32 %v3022_v23, %v2854_v4  ;;  %v2876_v7 = vpop.f32.mrf.mxu0  ;;  %v2708_v4 = vadd.f32 %v2707_v3, %v2539_v17 }
 0x756   :  { %3109 = vst [vmem:[#allocation5 + $0x188] sm:$0xff] %v3023_v39  ;;  %v2540_v34 = vpop.f32.mrf.mxu2  ;;  %v2877_v52 = vadd.f32 %v2876_v7, %v2708_v4 }
 0x757   :  { %v2541_v32 = vadd.f32 %v5602_v29, %v2540_v34 }
 0x758   :  { %v2709_v48 = vpop.f32.mrf.mxu3 }
 0x75b   :  { %v3025_v21 = vpop.f32.mrf.mxu1 }
 0x75c   :  { %v3026_v38 = vadd.f32 %v3025_v21, %v2857_v60  ;;  %v2878_v23 = vpop.f32.mrf.mxu0  ;;  %v2710_v21 = vadd.f32 %v2709_v48, %v2541_v32 }
 0x75e   :  { %3110 = vst [vmem:[#allocation5 + $0x190] sm:$0xff] %v3026_v38  ;;  %v2543_v39 = vpop.f32.mrf.mxu2  ;;  %v2879_v40 = vadd.f32 %v2878_v23, %v2710_v21 }
 0x75f   :  { %v2544_v10 = vadd.f32 %v5602_v29, %v2543_v39 }
 0x760   :  { %v2712_v20 = vpop.f32.mrf.mxu3 }
 0x763   :  { %v3027_v6 = vpop.f32.mrf.mxu1 }
 0x764   :  { %v3028_v36 = vadd.f32 %v3027_v6, %v2859_v63  ;;  %v2881_v38 = vpop.f32.mrf.mxu0  ;;  %v2713_v63 = vadd.f32 %v2712_v20, %v2544_v10 }
 0x766   :  { %3111 = vst [vmem:[#allocation5 + $0x198] sm:$0xff] %v3028_v36  ;;  %v2545_v28 = vpop.f32.mrf.mxu2  ;;  %v2882_v36 = vadd.f32 %v2881_v38, %v2713_v63 }
 0x767   :  { %v2546_v46 = vadd.f32 %v5602_v29, %v2545_v28 }
 0x768   :  { %v2714_v6 = vpop.f32.mrf.mxu3 }
 0x76b   :  { %v3030_v9 = vpop.f32.mrf.mxu1 }
 0x76c   :  { %v3031_v55 = vadd.f32 %v3030_v9, %v2862_v5  ;;  %v2883_v12 = vpop.f32.mrf.mxu0  ;;  %v2715_v9 = vadd.f32 %v2714_v6, %v2546_v46 }
 0x76e   :  { %3112 = vst [vmem:[#allocation5 + $0x1a0] sm:$0xff] %v3031_v55  ;;  %v2548_v35 = vpop.f32.mrf.mxu2  ;;  %v2884_v51 = vadd.f32 %v2883_v12, %v2715_v9 }
 0x76f   :  { %v2549_v59 = vadd.f32 %v5602_v29, %v2548_v35 }
 0x770   :  { %v2717_v55 = vpop.f32.mrf.mxu3 }
 0x771   :  { %v2718_v62 = vadd.f32 %v2717_v55, %v2549_v59 }
 0x773   :  { %v3032_v15 = vpop.f32.mrf.mxu1 }
 0x774   :  { %v3033_v41 = vadd.f32 %v3032_v15, %v2864_v53  ;;  %v2886_v53 = vpop.f32.mrf.mxu0 }
 0x776   :  { %3113 = vst [vmem:[#allocation5 + $0x1a8] sm:$0xff] %v3033_v41  ;;  %v2550_v15 = vpop.f32.mrf.mxu2  ;;  %v2887_v41 = vadd.f32 %v2886_v53, %v2718_v62 }
 0x777   :  { %v2551_v8 = vadd.f32 %v5602_v29, %v2550_v15 }
 0x77b   :  { %v3035_v16 = vpop.f32.mrf.mxu1 }
 0x77c   :  { %v3036_v42 = vadd.f32 %v3035_v16, %v2867_v26  ;;  %v2719_v26 = vpop.f32.mrf.mxu3  ;;  %v2888_v16 = vpop.f32.mrf.mxu0 }
 0x77d   :  { %v2720_v22 = vadd.f32 %v2719_v26, %v2551_v8 }
 0x77e   :  { %3114 = vst [vmem:[#allocation5 + $0x1b0] sm:$0xff] %v3036_v42 }
 0x77f   :  { %v2889_v44 = vadd.f32 %v2888_v16, %v2720_v22 }
 0x783   :  { %v3037_v27 = vpop.f32.mrf.mxu1 }
 0x784   :  { %v3038_v18 = vadd.f32 %v3037_v27, %v2869_v58 }
 0x786   :  { %3115 = vst [vmem:[#allocation5 + $0x1b8] sm:$0xff] %v3038_v18 }
 0x78b   :  { %v3040_v56 = vpop.f32.mrf.mxu1 }
 0x78c   :  { %v3041_v50 = vadd.f32 %v3040_v56, %v2872_v43 }
 0x78e   :  { %3116 = vst [vmem:[#allocation5 + $0x1c0] sm:$0xff] %v3041_v50 }
 0x793   :  { %v3042_v47 = vpop.f32.mrf.mxu1 }
 0x794   :  { %v3043_v1 = vadd.f32 %v3042_v47, %v2874_v49 }
 0x796   :  { %3117 = vst [vmem:[#allocation5 + $0x1c8] sm:$0xff] %v3043_v1 }
 0x79b   :  { %v3045_v37 = vpop.f32.mrf.mxu1 }
 0x79c   :  { %v3046_v60 = vadd.f32 %v3045_v37, %v2877_v52 }
 0x79e   :  { %3118 = vst [vmem:[#allocation5 + $0x1d0] sm:$0xff] %v3046_v60 }
 0x7a3   :  { %v3047_v0 = vpop.f32.mrf.mxu1 }
 0x7a4   :  { %v3048_v61 = vadd.f32 %v3047_v0, %v2879_v40 }
 0x7a6   :  { %3119 = vst [vmem:[#allocation5 + $0x1d8] sm:$0xff] %v3048_v61 }
 0x7ab   :  { %v3050_v24 = vpop.f32.mrf.mxu1 }
 0x7ac   :  { %v3051_v5 = vadd.f32 %v3050_v24, %v2882_v36 }
 0x7ae   :  { %3120 = vst [vmem:[#allocation5 + $0x1e0] sm:$0xff] %v3051_v5 }
 0x7b3   :  { %v3052_v19 = vpop.f32.mrf.mxu1 }
 0x7b4   :  { %v3053_v45 = vadd.f32 %v3052_v19, %v2884_v51 }
 0x7b6   :  { %3121 = vst [vmem:[#allocation5 + $0x1e8] sm:$0xff] %v3053_v45 }
 0x7bb   :  { %v3055_v13 = vpop.f32.mrf.mxu1 }
 0x7bc   :  { %v3056_v14 = vadd.f32 %v3055_v13, %v2887_v41 }
 0x7be   :  { %3122 = vst [vmem:[#allocation5 + $0x1f0] sm:$0xff] %v3056_v14 }
 0x7c3   :  { %v3057_v42 = vpop.f32.mrf.mxu1 }
 0x7c4   :  { %v3058_v30 = vadd.f32 %v3057_v42, %v2889_v44 }
 0x7c6   :  { %3123 = vst [vmem:[#allocation5 + $0x1f8] sm:$0xff] %v3058_v30 }
 0x7c7   :  { %3136 = dma.vmem_to_hbm [thread:$0]  %s3129_s11, 8192, %s3131_s14, [#allocation4], %s4095_s15, %s4095_s15, %s4096_s1  }
 0x7c8   :  { %4089 = dma.done.wait [#allocation4], 8192  }
 0x7c9   :  { %4090 = vsyncadd [#allocation4], 4294959104 }
 0x7ca   :  { %3141 = vsyncpa [#allocation3], 1 }
 0x7cb   :  { %3142 = vsyncpa [#allocation4], 1 }

</bundles_post_ra>
